<compile_context>
chip_gen: v5e
topology: v5e:2x2
jax: 0.10.0
libtpu: 0.0.40
codegen_flags: <defaults>
</compile_context>

<pallas_src>
import functools

import jax
import jax.numpy as jnp
from jax import lax
from jax.experimental import pallas as pl
from jax.experimental.pallas import tpu as pltpu


def _attention_kernel(x_ref, wqkv_ref, wout_ref, bo_ref, y_ref, out_sc, *,
                      heads, dim_head):
    hidden = heads * dim_head

    # Fused qkv projection (scale already folded into the q rows of the weight).
    # f32 operands at DEFAULT precision -> MXU rounds to bf16 internally; cast
    # the (3*hidden, N) result to bf16 in a single pass.
    qkv = jnp.dot(wqkv_ref[...], x_ref[...],
                  preferred_element_type=jnp.float32).astype(jnp.bfloat16)

    for hd in range(heads):                       # heads is tiny; static loop
        lo = hd * dim_head
        q = qkv[lo:lo + dim_head, :]                                # (Dh, Nq) bf16
        k = qkv[hidden + lo:hidden + lo + dim_head, :]              # (Dh, Nk) bf16
        v = qkv[2 * hidden + lo:2 * hidden + lo + dim_head, :]      # (Dh, Nk) bf16

        # simT[j, i] = sum_d k[d, j] * q_scaled[d, i]  (keys on sublanes,
        # queries on lanes) == sim[i, j] of the reference.
        simT = lax.dot_general(k, q, (((0,), (0,)), ((), ())),
                               preferred_element_type=jnp.float32)  # (Nk, Nq) f32
        simT = simT - jnp.max(simT, axis=0, keepdims=True)
        p = jnp.exp(simT)                                           # unnormalized
        denom = jnp.sum(p, axis=0, keepdims=True)                   # (1, Nq) f32

        # o[e, i] = sum_j v[e, j] * p[j, i]  -- canonical (M,K)x(K,N); no
        # transpose of p required.
        o = lax.dot_general(v, p.astype(jnp.bfloat16), (((1,), (0,)), ((), ())),
                            preferred_element_type=jnp.float32)     # (Dh, Nq) f32
        # Normalize after the matmul: (Dh, Nq) multiply instead of (Nk, Nq).
        o = o * pl.reciprocal(denom, approx=True)
        out_sc[lo:lo + dim_head, :] = o.astype(jnp.bfloat16)

    # Output 1x1 conv over all heads in one matmul, bias added, straight to y_ref.
    proj = jnp.dot(wout_ref[...], out_sc[...],
                   preferred_element_type=jnp.float32)               # (C, N) f32
    y_ref[...] = (proj + bo_ref[...]).astype(y_ref.dtype)


def attention(x, w_qkv, w_out, b_out, *, heads, dim_head):
    """x: (B, C, H, W) f32.  w_qkv: (3*heads*dim_head, C) (PyTorch to_qkv conv
    weight, squeezed).  w_out: (C, heads*dim_head), b_out: (C,).  Returns
    (B, C, H, W) f32."""
    b, c, h, w = x.shape
    n = h * w
    hidden = heads * dim_head
    scale = dim_head ** (-0.5)

    x3 = x.reshape(b, c, n)                         # stays f32; no wrapper-side cast

    # PyTorch's `.view(b, heads, dim_head, 3, h*w)` interprets the qkv output
    # channels as [head, d, qkv]; reorder rows to [qkv, head, d] so the kernel
    # gets contiguous per-head q/k/v slices, and fold the softmax scale into
    # the q rows (free, one-time).
    w_r = jnp.transpose(w_qkv.reshape(heads, dim_head, 3, c), (2, 0, 1, 3))
    w_r = w_r.at[0].multiply(scale)
    w_r = w_r.reshape(3 * hidden, c).astype(jnp.float32)

    wo = w_out.astype(jnp.bfloat16)                 # (C, hidden); pairs with bf16 scratch
    bo = b_out.reshape(c, 1).astype(jnp.float32)

    kernel = functools.partial(_attention_kernel, heads=heads, dim_head=dim_head)

    y = pl.pallas_call(
        kernel,
        out_shape=jax.ShapeDtypeStruct((b, c, n), jnp.float32),
        grid_spec=pltpu.PrefetchScalarGridSpec(
            num_scalar_prefetch=0,
            grid=(b,),                                                # batch only
            in_specs=[
                pl.BlockSpec((pl.Squeezed(), c, n), lambda bi: (bi, 0, 0)),   # x (f32)
                pl.BlockSpec((3 * hidden, c), lambda bi: (0, 0)),             # qkv weight (reordered, q pre-scaled)
                pl.BlockSpec((c, hidden), lambda bi: (0, 0)),                 # to_out weight
                pl.BlockSpec((c, 1), lambda bi: (0, 0)),                      # to_out bias
            ],
            out_specs=pl.BlockSpec((pl.Squeezed(), c, n), lambda bi: (bi, 0, 0)),
            scratch_shapes=[pltpu.VMEM((hidden, n), jnp.bfloat16)],           # per-head outputs, head-major
        ),
        compiler_params=pltpu.CompilerParams(
            dimension_semantics=("parallel",)),
    )(x3, w_r, wo, bo)

    return y.reshape(b, c, h, w)


def attention_reference(x, w_qkv, w_out, b_out, *, heads, dim_head):
    """Pure-JAX reference matching the PyTorch module semantics (full f32)."""
    b, c, h, w = x.shape
    n = h * w
    scale = dim_head ** (-0.5)
    prec = lax.Precision.HIGHEST
    xf = x.reshape(b, c, n)
    qkv = jnp.einsum('oc,bcn->bon', w_qkv, xf, precision=prec)
    qkv = qkv.reshape(b, heads, dim_head, 3, n)
    q, k, v = qkv[..., 0, :], qkv[..., 1, :], qkv[..., 2, :]       # (b, heads, dh, n)
    q = q * scale
    sim = jnp.einsum('bhdi,bhdj->bhij', q, k, precision=prec)
    sim = sim - jnp.max(sim, axis=-1, keepdims=True)
    attn = jax.nn.softmax(sim, axis=-1)
    out = jnp.einsum('bhij,bhej->bhei', attn, v, precision=prec)   # (b, heads, dh, n)
    out = out.reshape(b, heads * dim_head, n)
    y = jnp.einsum('oi,bin->bon', w_out, out, precision=prec) + b_out[None, :, None]
    return y.reshape(b, c, h, w)


if __name__ == "__main__":
    # Shapes implied by the module defaults: dim=4, heads=4, dim_head=32, 16x16 spatial.
    B, DIM, H, W = 2, 4, 16, 16
    HEADS, DIM_HEAD = 4, 32
    HIDDEN = HEADS * DIM_HEAD

    key = jax.random.PRNGKey(0)
    kx, kqkv, kout, kb = jax.random.split(key, 4)

    x = jax.random.normal(kx, (B, DIM, H, W), dtype=jnp.float32)
    w_qkv = jax.random.normal(kqkv, (HIDDEN * 3, DIM), dtype=jnp.float32) * 0.1   # Conv2d 1x1, no bias
    w_out = jax.random.normal(kout, (DIM, HIDDEN), dtype=jnp.float32) * 0.1       # Conv2d 1x1
    b_out = jax.random.normal(kb, (DIM,), dtype=jnp.float32) * 0.1

    y = attention(x, w_qkv, w_out, b_out, heads=HEADS, dim_head=DIM_HEAD)
    y = jax.block_until_ready(y)

    y_ref = attention_reference(x, w_qkv, w_out, b_out, heads=HEADS, dim_head=DIM_HEAD)
    assert y.shape == (B, DIM, H, W)
    # Tolerance accounts for bf16 MXU operands / approx reciprocal (kernel)
    # vs full-f32 reference.
    assert jnp.allclose(y, y_ref, atol=2e-3, rtol=2e-3), "mismatch vs reference"

    print("KERNEL_OK")
</pallas_src>

<mosaic_0001>
module attributes {stable_mosaic.version = 11 : i64} {
  func.func @_attention_kernel(%arg0: i32, %arg1: memref<1x4x256xf32, #tpu.memory_space<vmem>>, %arg2: memref<384x4xf32, #tpu.memory_space<vmem>>, %arg3: memref<4x128xbf16, #tpu.memory_space<vmem>>, %arg4: memref<4x1xf32, #tpu.memory_space<vmem>>, %arg5: memref<1x4x256xf32, #tpu.memory_space<vmem>>, %arg6: memref<128x256xbf16, #tpu.memory_space<vmem>>) attributes {dimension_semantics = [#tpu.dimension_semantics<parallel>], iteration_bounds = array<i64: 2>, scalar_prefetch = 0 : i64, scratch_operands = 1 : i64, tpu.core_type = #tpu.core_type<tc>, window_params = [{transform_indices = @transform_0, window_bounds = array<i64: 1, 4, 256>}, {pipeline_mode = #tpu.pipeline_mode<synchronous>, transform_indices = @transform_1, window_bounds = array<i64: 384, 4>}, {pipeline_mode = #tpu.pipeline_mode<synchronous>, transform_indices = @transform_2, window_bounds = array<i64: 4, 128>}, {pipeline_mode = #tpu.pipeline_mode<synchronous>, transform_indices = @transform_3, window_bounds = array<i64: 4, 1>}, {transform_indices = @transform_4, window_bounds = array<i64: 1, 4, 256>}]} {
    %c0 = arith.constant 0 : index
    %c0_0 = arith.constant 0 : index
    %0 = vector.load %arg2[%c0, %c0_0] : memref<384x4xf32, #tpu.memory_space<vmem>>, vector<384x4xf32>
    %c0_1 = arith.constant 0 : index
    %c0_2 = arith.constant 0 : index
    %c0_3 = arith.constant 0 : index
    %1 = vector.load %arg1[%c0_1, %c0_2, %c0_3] : memref<1x4x256xf32, #tpu.memory_space<vmem>>, vector<1x4x256xf32>
    %2 = vector.shape_cast %1 : vector<1x4x256xf32> to vector<4x256xf32>
    %cst = arith.constant dense<0.000000e+00> : vector<384x256xf32>
    %3 = tpu.matmul %0, %2, %cst {dimension_numbers = #tpu.dot_dimension_numbers<[1], [0], [0], [1], [0, 0, 1, 1], [], []>} : vector<384x4xf32>, vector<4x256xf32>, vector<384x256xf32> -> vector<384x256xf32>
    %4 = arith.truncf %3 : vector<384x256xf32> to vector<384x256xbf16>
    %5 = vector.extract_strided_slice %4 {offsets = [0, 0], sizes = [32, 256], strides = [1, 1]} : vector<384x256xbf16> to vector<32x256xbf16>
    %6 = vector.extract_strided_slice %4 {offsets = [128, 0], sizes = [32, 256], strides = [1, 1]} : vector<384x256xbf16> to vector<32x256xbf16>
    %7 = vector.extract_strided_slice %4 {offsets = [256, 0], sizes = [32, 256], strides = [1, 1]} : vector<384x256xbf16> to vector<32x256xbf16>
    %cst_4 = arith.constant dense<0.000000e+00> : vector<256x256xf32>
    %8 = tpu.matmul %6, %5, %cst_4 {dimension_numbers = #tpu.dot_dimension_numbers<[0], [0], [1], [1], [0, 1, 1, 1], [], []>} : vector<32x256xbf16>, vector<32x256xbf16>, vector<256x256xf32> -> vector<256x256xf32>
    %cst_5 = arith.constant dense<0xFF800000> : vector<256xf32>
    %9 = vector.multi_reduction <maximumf>, %8, %cst_5 [0] : vector<256x256xf32> to vector<256xf32>
    %10 = vector.shape_cast %9 : vector<256xf32> to vector<1x256xf32>
    %11 = vector.broadcast %10 : vector<1x256xf32> to vector<256x256xf32>
    %12 = arith.subf %8, %11 : vector<256x256xf32>
    %13 = math.exp %12 : vector<256x256xf32>
    %cst_6 = arith.constant dense<0.000000e+00> : vector<256xf32>
    %14 = vector.multi_reduction <add>, %13, %cst_6 [0] : vector<256x256xf32> to vector<256xf32>
    %15 = vector.shape_cast %14 : vector<256xf32> to vector<1x256xf32>
    %16 = arith.truncf %13 : vector<256x256xf32> to vector<256x256xbf16>
    %cst_7 = arith.constant dense<0.000000e+00> : vector<32x256xf32>
    %17 = tpu.matmul %7, %16, %cst_7 {dimension_numbers = #tpu.dot_dimension_numbers<[1], [0], [0], [1], [0, 0, 1, 1], [], []>} : vector<32x256xbf16>, vector<256x256xbf16>, vector<32x256xf32> -> vector<32x256xf32>
    %18 = tpu.reciprocal %15 {approx = true} : vector<1x256xf32> -> vector<1x256xf32>
    %19 = vector.broadcast %18 : vector<1x256xf32> to vector<32x256xf32>
    %20 = arith.mulf %17, %19 : vector<32x256xf32>
    %21 = arith.truncf %20 : vector<32x256xf32> to vector<32x256xbf16>
    %c0_8 = arith.constant 0 : index
    %c0_9 = arith.constant 0 : index
    %22 = vector.load %arg6[%c0_8, %c0_9] : memref<128x256xbf16, #tpu.memory_space<vmem>>, vector<32x256xbf16>
    tpu.vector_store %arg6[%c0_8, %c0_9], %21 {strides = array<i32>} : memref<128x256xbf16, #tpu.memory_space<vmem>>, vector<32x256xbf16>,
    %23 = vector.extract_strided_slice %4 {offsets = [32, 0], sizes = [32, 256], strides = [1, 1]} : vector<384x256xbf16> to vector<32x256xbf16>
    %24 = vector.extract_strided_slice %4 {offsets = [160, 0], sizes = [32, 256], strides = [1, 1]} : vector<384x256xbf16> to vector<32x256xbf16>
    %25 = vector.extract_strided_slice %4 {offsets = [288, 0], sizes = [32, 256], strides = [1, 1]} : vector<384x256xbf16> to vector<32x256xbf16>
    %cst_10 = arith.constant dense<0.000000e+00> : vector<256x256xf32>
    %26 = tpu.matmul %24, %23, %cst_10 {dimension_numbers = #tpu.dot_dimension_numbers<[0], [0], [1], [1], [0, 1, 1, 1], [], []>} : vector<32x256xbf16>, vector<32x256xbf16>, vector<256x256xf32> -> vector<256x256xf32>
    %cst_11 = arith.constant dense<0xFF800000> : vector<256xf32>
    %27 = vector.multi_reduction <maximumf>, %26, %cst_11 [0] : vector<256x256xf32> to vector<256xf32>
    %28 = vector.shape_cast %27 : vector<256xf32> to vector<1x256xf32>
    %29 = vector.broadcast %28 : vector<1x256xf32> to vector<256x256xf32>
    %30 = arith.subf %26, %29 : vector<256x256xf32>
    %31 = math.exp %30 : vector<256x256xf32>
    %cst_12 = arith.constant dense<0.000000e+00> : vector<256xf32>
    %32 = vector.multi_reduction <add>, %31, %cst_12 [0] : vector<256x256xf32> to vector<256xf32>
    %33 = vector.shape_cast %32 : vector<256xf32> to vector<1x256xf32>
    %34 = arith.truncf %31 : vector<256x256xf32> to vector<256x256xbf16>
    %cst_13 = arith.constant dense<0.000000e+00> : vector<32x256xf32>
    %35 = tpu.matmul %25, %34, %cst_13 {dimension_numbers = #tpu.dot_dimension_numbers<[1], [0], [0], [1], [0, 0, 1, 1], [], []>} : vector<32x256xbf16>, vector<256x256xbf16>, vector<32x256xf32> -> vector<32x256xf32>
    %36 = tpu.reciprocal %33 {approx = true} : vector<1x256xf32> -> vector<1x256xf32>
    %37 = vector.broadcast %36 : vector<1x256xf32> to vector<32x256xf32>
    %38 = arith.mulf %35, %37 : vector<32x256xf32>
    %39 = arith.truncf %38 : vector<32x256xf32> to vector<32x256xbf16>
    %c32 = arith.constant 32 : index
    %c0_14 = arith.constant 0 : index
    %40 = vector.load %arg6[%c32, %c0_14] : memref<128x256xbf16, #tpu.memory_space<vmem>>, vector<32x256xbf16>
    tpu.vector_store %arg6[%c32, %c0_14], %39 {strides = array<i32>} : memref<128x256xbf16, #tpu.memory_space<vmem>>, vector<32x256xbf16>,
    %41 = vector.extract_strided_slice %4 {offsets = [64, 0], sizes = [32, 256], strides = [1, 1]} : vector<384x256xbf16> to vector<32x256xbf16>
    %42 = vector.extract_strided_slice %4 {offsets = [192, 0], sizes = [32, 256], strides = [1, 1]} : vector<384x256xbf16> to vector<32x256xbf16>
    %43 = vector.extract_strided_slice %4 {offsets = [320, 0], sizes = [32, 256], strides = [1, 1]} : vector<384x256xbf16> to vector<32x256xbf16>
    %cst_15 = arith.constant dense<0.000000e+00> : vector<256x256xf32>
    %44 = tpu.matmul %42, %41, %cst_15 {dimension_numbers = #tpu.dot_dimension_numbers<[0], [0], [1], [1], [0, 1, 1, 1], [], []>} : vector<32x256xbf16>, vector<32x256xbf16>, vector<256x256xf32> -> vector<256x256xf32>
    %cst_16 = arith.constant dense<0xFF800000> : vector<256xf32>
    %45 = vector.multi_reduction <maximumf>, %44, %cst_16 [0] : vector<256x256xf32> to vector<256xf32>
    %46 = vector.shape_cast %45 : vector<256xf32> to vector<1x256xf32>
    %47 = vector.broadcast %46 : vector<1x256xf32> to vector<256x256xf32>
    %48 = arith.subf %44, %47 : vector<256x256xf32>
    %49 = math.exp %48 : vector<256x256xf32>
    %cst_17 = arith.constant dense<0.000000e+00> : vector<256xf32>
    %50 = vector.multi_reduction <add>, %49, %cst_17 [0] : vector<256x256xf32> to vector<256xf32>
    %51 = vector.shape_cast %50 : vector<256xf32> to vector<1x256xf32>
    %52 = arith.truncf %49 : vector<256x256xf32> to vector<256x256xbf16>
    %cst_18 = arith.constant dense<0.000000e+00> : vector<32x256xf32>
    %53 = tpu.matmul %43, %52, %cst_18 {dimension_numbers = #tpu.dot_dimension_numbers<[1], [0], [0], [1], [0, 0, 1, 1], [], []>} : vector<32x256xbf16>, vector<256x256xbf16>, vector<32x256xf32> -> vector<32x256xf32>
    %54 = tpu.reciprocal %51 {approx = true} : vector<1x256xf32> -> vector<1x256xf32>
    %55 = vector.broadcast %54 : vector<1x256xf32> to vector<32x256xf32>
    %56 = arith.mulf %53, %55 : vector<32x256xf32>
    %57 = arith.truncf %56 : vector<32x256xf32> to vector<32x256xbf16>
    %c64 = arith.constant 64 : index
    %c0_19 = arith.constant 0 : index
    %58 = vector.load %arg6[%c64, %c0_19] : memref<128x256xbf16, #tpu.memory_space<vmem>>, vector<32x256xbf16>
    tpu.vector_store %arg6[%c64, %c0_19], %57 {strides = array<i32>} : memref<128x256xbf16, #tpu.memory_space<vmem>>, vector<32x256xbf16>,
    %59 = vector.extract_strided_slice %4 {offsets = [96, 0], sizes = [32, 256], strides = [1, 1]} : vector<384x256xbf16> to vector<32x256xbf16>
    %60 = vector.extract_strided_slice %4 {offsets = [224, 0], sizes = [32, 256], strides = [1, 1]} : vector<384x256xbf16> to vector<32x256xbf16>
    %61 = vector.extract_strided_slice %4 {offsets = [352, 0], sizes = [32, 256], strides = [1, 1]} : vector<384x256xbf16> to vector<32x256xbf16>
    %cst_20 = arith.constant dense<0.000000e+00> : vector<256x256xf32>
    %62 = tpu.matmul %60, %59, %cst_20 {dimension_numbers = #tpu.dot_dimension_numbers<[0], [0], [1], [1], [0, 1, 1, 1], [], []>} : vector<32x256xbf16>, vector<32x256xbf16>, vector<256x256xf32> -> vector<256x256xf32>
    %cst_21 = arith.constant dense<0xFF800000> : vector<256xf32>
    %63 = vector.multi_reduction <maximumf>, %62, %cst_21 [0] : vector<256x256xf32> to vector<256xf32>
    %64 = vector.shape_cast %63 : vector<256xf32> to vector<1x256xf32>
    %65 = vector.broadcast %64 : vector<1x256xf32> to vector<256x256xf32>
    %66 = arith.subf %62, %65 : vector<256x256xf32>
    %67 = math.exp %66 : vector<256x256xf32>
    %cst_22 = arith.constant dense<0.000000e+00> : vector<256xf32>
    %68 = vector.multi_reduction <add>, %67, %cst_22 [0] : vector<256x256xf32> to vector<256xf32>
    %69 = vector.shape_cast %68 : vector<256xf32> to vector<1x256xf32>
    %70 = arith.truncf %67 : vector<256x256xf32> to vector<256x256xbf16>
    %cst_23 = arith.constant dense<0.000000e+00> : vector<32x256xf32>
    %71 = tpu.matmul %61, %70, %cst_23 {dimension_numbers = #tpu.dot_dimension_numbers<[1], [0], [0], [1], [0, 0, 1, 1], [], []>} : vector<32x256xbf16>, vector<256x256xbf16>, vector<32x256xf32> -> vector<32x256xf32>
    %72 = tpu.reciprocal %69 {approx = true} : vector<1x256xf32> -> vector<1x256xf32>
    %73 = vector.broadcast %72 : vector<1x256xf32> to vector<32x256xf32>
    %74 = arith.mulf %71, %73 : vector<32x256xf32>
    %75 = arith.truncf %74 : vector<32x256xf32> to vector<32x256xbf16>
    %c96 = arith.constant 96 : index
    %c0_24 = arith.constant 0 : index
    %76 = vector.load %arg6[%c96, %c0_24] : memref<128x256xbf16, #tpu.memory_space<vmem>>, vector<32x256xbf16>
    tpu.vector_store %arg6[%c96, %c0_24], %75 {strides = array<i32>} : memref<128x256xbf16, #tpu.memory_space<vmem>>, vector<32x256xbf16>,
    %c0_25 = arith.constant 0 : index
    %c0_26 = arith.constant 0 : index
    %77 = vector.load %arg3[%c0_25, %c0_26] : memref<4x128xbf16, #tpu.memory_space<vmem>>, vector<4x128xbf16>
    %c0_27 = arith.constant 0 : index
    %c0_28 = arith.constant 0 : index
    %78 = vector.load %arg6[%c0_27, %c0_28] : memref<128x256xbf16, #tpu.memory_space<vmem>>, vector<128x256xbf16>
    %cst_29 = arith.constant dense<0.000000e+00> : vector<4x256xf32>
    %79 = tpu.matmul %77, %78, %cst_29 {dimension_numbers = #tpu.dot_dimension_numbers<[1], [0], [0], [1], [0, 0, 1, 1], [], []>} : vector<4x128xbf16>, vector<128x256xbf16>, vector<4x256xf32> -> vector<4x256xf32>
    %c0_30 = arith.constant 0 : index
    %c0_31 = arith.constant 0 : index
    %80 = vector.load %arg4[%c0_30, %c0_31] : memref<4x1xf32, #tpu.memory_space<vmem>>, vector<4x1xf32>
    %81 = vector.broadcast %80 : vector<4x1xf32> to vector<4x256xf32>
    %82 = arith.addf %79, %81 : vector<4x256xf32>
    %c0_32 = arith.constant 0 : index
    %c0_33 = arith.constant 0 : index
    %c0_34 = arith.constant 0 : index
    %83 = vector.load %arg5[%c0_32, %c0_33, %c0_34] : memref<1x4x256xf32, #tpu.memory_space<vmem>>, vector<1x4x256xf32>
    %84 = vector.shape_cast %83 : vector<1x4x256xf32> to vector<4x256xf32>
    %85 = vector.shape_cast %82 : vector<4x256xf32> to vector<1x4x256xf32>
    tpu.vector_store %arg5[%c0_32, %c0_33, %c0_34], %85 {strides = array<i32>} : memref<1x4x256xf32, #tpu.memory_space<vmem>>, vector<1x4x256xf32>,
    return
  }
  func.func @transform_0(%arg0: i32) -> (i32, i32, i32) {
    %c0_i32 = arith.constant 0 : i32
    %c0_i32_0 = arith.constant 0 : i32
    %c0_i32_1 = arith.constant 0 : i32
    return %arg0, %c0_i32, %c0_i32_0 : i32, i32, i32
  }
  func.func @transform_1(%arg0: i32) -> (i32, i32) {
    %c0_i32 = arith.constant 0 : i32
    %c0_i32_0 = arith.constant 0 : i32
    %c0_i32_1 = arith.constant 0 : i32
    return %c0_i32, %c0_i32_0 : i32, i32
  }
  func.func @transform_2(%arg0: i32) -> (i32, i32) {
    %c0_i32 = arith.constant 0 : i32
    %c0_i32_0 = arith.constant 0 : i32
    %c0_i32_1 = arith.constant 0 : i32
    return %c0_i32, %c0_i32_0 : i32, i32
  }
  func.func @transform_3(%arg0: i32) -> (i32, i32) {
    %c0_i32 = arith.constant 0 : i32
    %c0_i32_0 = arith.constant 0 : i32
    %c0_i32_1 = arith.constant 0 : i32
    return %c0_i32, %c0_i32_0 : i32, i32
  }
  func.func @transform_4(%arg0: i32) -> (i32, i32, i32) {
    %c0_i32 = arith.constant 0 : i32
    %c0_i32_0 = arith.constant 0 : i32
    %c0_i32_1 = arith.constant 0 : i32
    return %arg0, %c0_i32, %c0_i32_0 : i32, i32, i32
  }
}

</mosaic_0001>

<bundles_post_ra>
// kernel: tpu_custom_call.1
= control target key start
LH: loop header
LB: loop body
LE: loop exit
PB: predicated region body
PF: predicated region fallthrough
CT: control target
= control target key end

     0   :  { %9 = vsyncpa [#allocation4], 0  ;;  %s8074_s0 = inlined_call_operand.vmem [shape: f32[2,4,256], index: 0, kind: input, shape index: {}]   ;;  %s8075_s1 = inlined_call_operand.vmem [shape: f32[384,4], index: 1, kind: input, shape index: {}]   ;;  %s8076_s2 = inlined_call_operand.vmem [shape: bf16[4,128], index: 2, kind: input, shape index: {}]   ;;  %s8077_s3 = inlined_call_operand.vmem [shape: f32[4,1], index: 3, kind: input, shape index: {}]   ;;  %s8078_s4 = inlined_call_operand.hbm [shape: f32[2,4,256], index: 4, kind: output, shape index: {}]  }
   0x1   :  { %11 = vsyncpa [#allocation4 + $0x1], 0  ;;  %s5070_s15 = smov 0   ;;  %s5072_s16 = smov 0  }
   0x2   :  { %s5074_s17 = smov 0   ;;  %s5076_s18 = smov 0  }
   0x3 LB: > { %s5091_s19 = sadd.s32 4294967295, %s5042_s18   ;;  %s4086_s20 = sadd.s32 4294967294, %s5042_s18   ;;  %s5042_s18 = sphi %s5076_s18, %s8472_s18   ;;  %s5038_s17 = sphi %s5074_s17, %s8471_s17   ;;  %s5034_s16 = sphi %s5072_s16, %s8470_s16   ;;  %s5030_s15 = sphi %s5070_s15, %s8469_s15  }
   0x4   : > { %s5095_s21 = sadd.s32 1, %s5042_s18   ;;  %s113_s22 = sadd.s32 1, %s5038_s17 }
   0x5   : > { %s110_s23 = ssub.s32 %s5042_s18, %s5095_s21  ;;  %p123_p0 = scmp.ne.s32.totalorder %s5038_s17, %s5034_s16 }
   0x6   : > { %p111_p1 = scmp.eq.s32.totalorder %s110_s23, 0  ;;  %p124_p2 = scmp.eq.s32.totalorder %s5091_s19, 1 }
   0x7   : > { %p129_p3 = scmp.ne.s32.totalorder %s5034_s16, %s5030_s15  ;;  %p130_p4 = scmp.eq.s32.totalorder %s4086_s20, 1 }
   0x8   : > { %s5106_s24 = scalar_select %p111_p1, %s5038_s17, %s113_s22  }
   0x9   : > { %p5108_p5 = por %p124_p2, %p123_p0  ;;  %p5112_p6 = por %p130_p4, %p129_p3 }
   0xa   : > { %p4089_p7 = scmp.ge.s32.totalorder %s5042_s18, 1  ;;  %p165_p8 = scmp.lt.s32.totalorder %s5042_s18, 3 }
   0xc   : > { %p166_p9 = pnand %p4089_p7, %p165_p8 }
   0xe   : > { %169 = sbr.rel (%p166_p9) target bundleno = 2905 (0xb59), region = 36 }
  0x13   : > { %p191_p10 = scmp.lt.s32.totalorder %s5091_s19, 1  ;;  %vm395_vm0 = vcmask 1043456   ;;  %v197_v1 = vld [vmem:[%s8075_s1] sm:$0xff]  ;;  %vm250_vm1 = vcmask 31744   ;;  %v198_v4 = vld [vmem:[%s8075_s1 + $0x8] sm:$0xff]  ;;  %v199_v5 = vld [vmem:[%s8075_s1 + $0x10] sm:$0xff] }
  0x14   : > { %v200_v6 = vld [vmem:[%s8075_s1 + $0x18] sm:$0xff]  ;;  %v201_v7 = vld [vmem:[%s8075_s1 + $0x20] sm:$0xff]  ;;  %v202_v8 = vld [vmem:[%s8075_s1 + $0x28] sm:$0xff]  ;;  %vm834_vm2 = vcmask 261120   ;;  %s188_s30 = sand.u32 1, %s5034_s16   ;;  %s4405_s6 = sshll.u32 %s5091_s19, 3 }
  0x15   : > { %s192_s27 = scalar_select %p191_p10, %s5091_s19, 1  ;;  %v203_v9 = vld [vmem:[%s8075_s1 + $0x30] sm:$0xff]  ;;  %v204_v10 = vld [vmem:[%s8075_s1 + $0x38] sm:$0xff]  ;;  %v205_v11 = vld [vmem:[%s8075_s1 + $0x40] sm:$0xff] }
  0x16   : > { %v206_v12 = vld [vmem:[%s8075_s1 + $0x48] sm:$0xff]  ;;  %v207_v13 = vld [vmem:[%s8075_s1 + $0x50] sm:$0xff]  ;;  %v208_v14 = vld [vmem:[%s8075_s1 + $0x58] sm:$0xff]  ;;  %s4022_s9 = scalar_lea.hbm %s8078_s4, %s4405_s6  ;;  %s4011_s19 = scalar_lea.sflag [#allocation4], %s188_s30 }
  0x17   : > { %s4388_s28 = sshll.u32 %s192_s27, 3  ;;  %v209_v15 = vld [vmem:[%s8075_s1 + $0x60] sm:$0xff]  ;;  %v210_v16 = vld [vmem:[%s8075_s1 + $0x68] sm:$0xff]  ;;  %v211_v17 = vld [vmem:[%s8075_s1 + $0x70] sm:$0xff]  ;;  %s4026_s12 = sshll.u32 %s4022_s9, 4  ;;  %s4027_s12 = int_to_ptr.hbm [resolvable:$true] %s4026_s12 }
  0x18   : > { %s195_s5 = scalar_lea.vmem %s8074_s0, %s4388_s28  ;;  %v212_v18 = vld [vmem:[%s8075_s1 + $0x78] sm:$0xff]  ;;  %v213_v21 = vld [vmem:[%s8075_s1 + $0x80] sm:$0xff]  ;;  %v214_v24 = vld [vmem:[%s8075_s1 + $0x88] sm:$0xff]  ;;  %s4994_s13 = sshra.s32 %s4027_s12, 4  ;;  %s4995_s13 = int_to_ptr.hbm [resolvable:$true] %s4994_s13 }
  0x19   : > { %v245_v0 = vld [vmem:[%s195_s5] sm:$0xff]  ;;  %v215_v27 = vld [vmem:[%s8075_s1 + $0x90] sm:$0xff]  ;;  %v216_v31 = vld [vmem:[%s8075_s1 + $0x98] sm:$0xff]  ;;  %s4090_s5 = sshll.u32 %s188_s30, 3  ;;  %s4996_s14 = scalar_lea.hbm %s4995_s13, 8 }
  0x1a   : > { %247 = vst [vmem:[#allocation1] ss:$2 sm:$0xff] %v245_v0  ;;  %v217_v55 = vld [vmem:[%s8075_s1 + $0xa0] sm:$0xff]  ;;  %v218_v58 = vld [vmem:[%s8075_s1 + $0xa8] sm:$0xff]  ;;  %v219_v61 = vld [vmem:[%s8075_s1 + $0xb0] sm:$0xff]  ;;  %s190_s10 = scalar_lea.vmem [#allocation3], %s4090_s5  ;;  %p4997_p11 = scmp.ne.s32.totalorder %s4995_s13, %s4996_s14 }
  0x1b   : > { %v220_v0 = vld [vmem:[%s8075_s1 + $0xb8] sm:$0xff]  ;;  %s4024_s11 = sshll.u32 %s190_s10, 4  ;;  %s5000_s23 = scalar_lea.hbm %s8078_s4, 16  ;;  %s4025_s11 = int_to_ptr.vmem [resolvable:$true] %s4024_s11 }
  0x1c   : > { %p4998_p12 = pnand %p4997_p11, %p5108_p5  ;;  %p5001_p0 = scmp.lt.s32.totalorder %s4995_s13, %s8078_s4 }
  0x1d   : > { %p5002_p1 = scmp.lt.s32.totalorder %s5000_s23, %s4996_s14 }
  0x1e   : > { %p4999_p13 = pneg %p4998_p12 }
  0x1f   : > { %p5003_p2 = por %p5002_p1, %p5001_p0 }
  0x21   : > { %v248_v2 = vld.sshfl [vmem:[#allocation1] sm:$0xff pattern:$0x75316420]  ;;  %v249_v3 = vld.sshfl [vmem:[#allocation1 + $0x8] sm:$0xff pattern:$0x75316420]  ;;  %p5004_p3 = pnand %p5003_p2, %p4999_p13 }
  0x22   : > { %4093 = vmatpush.msk.msra.mxu0 %vm395_vm0, %v248_v2  ;;  %4142 = vmatpush.msk.msra.mxu1 %vm395_vm0, %v249_v3  ;;  %v221_v3 = vld [vmem:[%s8075_s1 + $0xc0] sm:$0xff] }
  0x23   : > { %4094 = vmatmul.msk.f32.vlgmr.msra.gmra.mxu0 %vm250_vm1, %v197_v1  ;;  %4143 = vmatmul.msk.f32.vlgmr.msra.gmra.mxu1 %vm250_vm1, %v197_v1 }
  0x2b   : > { %4095 = vmatmul.msk.f32.gmra.mxu0 %vm250_vm1, %v198_v4  ;;  %4144 = vmatmul.msk.f32.gmra.mxu1 %vm250_vm1, %v198_v4 }
  0x33   : > { %4096 = vmatmul.msk.f32.gmra.mxu0 %vm250_vm1, %v199_v5  ;;  %4145 = vmatmul.msk.f32.gmra.mxu1 %vm250_vm1, %v199_v5 }
  0x3b   : > { %4097 = vmatmul.msk.f32.gmra.mxu0 %vm250_vm1, %v200_v6  ;;  %4146 = vmatmul.msk.f32.gmra.mxu1 %vm250_vm1, %v200_v6  ;;  %v222_v6 = vld [vmem:[%s8075_s1 + $0xc8] sm:$0xff] }
  0x43   : > { %4098 = vmatmul.msk.f32.gmra.mxu0 %vm250_vm1, %v201_v7  ;;  %4147 = vmatmul.msk.f32.gmra.mxu1 %vm250_vm1, %v201_v7 }
  0x4b   : > { %4099 = vmatmul.msk.f32.gmra.mxu0 %vm250_vm1, %v202_v8  ;;  %4148 = vmatmul.msk.f32.gmra.mxu1 %vm250_vm1, %v202_v8 }
  0x53   : > { %4100 = vmatmul.msk.f32.gmra.mxu0 %vm250_vm1, %v203_v9  ;;  %4149 = vmatmul.msk.f32.gmra.mxu1 %vm250_vm1, %v203_v9  ;;  %v223_v9 = vld [vmem:[%s8075_s1 + $0xd0] sm:$0xff] }
  0x5b   : > { %4101 = vmatmul.msk.f32.gmra.mxu0 %vm250_vm1, %v204_v10  ;;  %4150 = vmatmul.msk.f32.gmra.mxu1 %vm250_vm1, %v204_v10 }
  0x63   : > { %4102 = vmatmul.msk.f32.gmra.mxu0 %vm250_vm1, %v205_v11  ;;  %4151 = vmatmul.msk.f32.gmra.mxu1 %vm250_vm1, %v205_v11 }
  0x6b   : > { %4103 = vmatmul.msk.f32.gmra.mxu0 %vm250_vm1, %v206_v12  ;;  %4152 = vmatmul.msk.f32.gmra.mxu1 %vm250_vm1, %v206_v12  ;;  %v224_v12 = vld [vmem:[%s8075_s1 + $0xd8] sm:$0xff] }
  0x73   : > { %4104 = vmatmul.msk.f32.gmra.mxu0 %vm250_vm1, %v207_v13  ;;  %4153 = vmatmul.msk.f32.gmra.mxu1 %vm250_vm1, %v207_v13 }
  0x7b   : > { %4105 = vmatmul.msk.f32.gmra.mxu0 %vm250_vm1, %v208_v14  ;;  %4154 = vmatmul.msk.f32.gmra.mxu1 %vm250_vm1, %v208_v14 }
  0x83   : > { %4106 = vmatmul.msk.f32.gmra.mxu0 %vm250_vm1, %v209_v15  ;;  %4155 = vmatmul.msk.f32.gmra.mxu1 %vm250_vm1, %v209_v15  ;;  %v225_v15 = vld [vmem:[%s8075_s1 + $0xe0] sm:$0xff] }
  0x8b   : > { %4107 = vmatmul.msk.f32.gmra.mxu0 %vm250_vm1, %v210_v16  ;;  %4156 = vmatmul.msk.f32.gmra.mxu1 %vm250_vm1, %v210_v16 }
  0x93   : > { %4108 = vmatmul.msk.f32.gmra.mxu0 %vm250_vm1, %v211_v17  ;;  %4157 = vmatmul.msk.f32.gmra.mxu1 %vm250_vm1, %v211_v17 }
  0x9b   : > { %4109 = vmatmul.msk.f32.gmra.mxu0 %vm250_vm1, %v212_v18  ;;  %4158 = vmatmul.msk.f32.gmra.mxu1 %vm250_vm1, %v212_v18  ;;  %v226_v18 = vld [vmem:[%s8075_s1 + $0xe8] sm:$0xff] }
  0xa0   : > { %v417_v19 = vpop.f32.mrf.mxu0  ;;  %v578_v20 = vpop.f32.mrf.mxu1 }
  0xa1   : > { %v722_v34 = vpack.c.bf16 %v578_v20, %v417_v19 }
  0xa3   : > { %4110 = vmatmul.msk.f32.gmra.mxu0 %vm250_vm1, %v213_v21  ;;  %4159 = vmatmul.msk.f32.gmra.mxu1 %vm250_vm1, %v213_v21  ;;  %v818_v43 = vunpack.c.l.b16 %v722_v34  ;;  %v819_v46 = vunpack.c.h.b16 %v722_v34 }
  0xa8   : > { %v420_v22 = vpop.f32.mrf.mxu0  ;;  %v581_v23 = vpop.f32.mrf.mxu1 }
  0xa9   : > { %v723_v32 = vpack.c.bf16 %v581_v23, %v420_v22  ;;  %v227_v23 = vld [vmem:[%s8075_s1 + $0xf0] sm:$0xff] }
  0xab   : > { %4111 = vmatmul.msk.f32.gmra.mxu0 %vm250_vm1, %v214_v24  ;;  %4160 = vmatmul.msk.f32.gmra.mxu1 %vm250_vm1, %v214_v24  ;;  %v820_v41 = vunpack.c.l.b16 %v723_v32  ;;  %v821_v42 = vunpack.c.h.b16 %v723_v32  ;;  %v228_v32 = vld [vmem:[%s8075_s1 + $0xf8] sm:$0xff] }
  0xad   : > { %v826_v47 = vpack.c.b16 %v820_v41, %v818_v43  ;;  %v827_v48 = vpack.c.b16 %v821_v42, %v819_v46  ;;  %v230_v46 = vld [vmem:[%s8075_s1 + $0x108] sm:$0xff] }
  0xb0   : > { %v423_v25 = vpop.f32.mrf.mxu0  ;;  %v584_v26 = vpop.f32.mrf.mxu1 }
  0xb1   : > { %v724_v28 = vpack.c.bf16 %v584_v26, %v423_v25 }
  0xb3   : > { %4112 = vmatmul.msk.f32.gmra.mxu0 %vm250_vm1, %v215_v27  ;;  %4161 = vmatmul.msk.f32.gmra.mxu1 %vm250_vm1, %v215_v27  ;;  %v822_v35 = vunpack.c.l.b16 %v724_v28  ;;  %v823_v37 = vunpack.c.h.b16 %v724_v28 }
  0xb8   : > { %v426_v29 = vpop.f32.mrf.mxu0  ;;  %v587_v30 = vpop.f32.mrf.mxu1 }
  0xb9   : > { %v725_v33 = vpack.c.bf16 %v587_v30, %v426_v29 }
  0xbb   : > { %4113 = vmatmul.msk.f32.gmra.mxu0 %vm250_vm1, %v216_v31  ;;  %4162 = vmatmul.msk.f32.gmra.mxu1 %vm250_vm1, %v216_v31  ;;  %v824_v36 = vunpack.c.l.b16 %v725_v33  ;;  %v825_v38 = vunpack.c.h.b16 %v725_v33 }
  0xbd   : > { %v828_v39 = vpack.c.b16 %v824_v36, %v822_v35  ;;  %v829_v40 = vpack.c.b16 %v825_v38, %v823_v37  ;;  %v229_v37 = vld [vmem:[%s8075_s1 + $0x100] sm:$0xff] }
  0xbf   : > { %889 = vmatpush.bf16.msrb.mxu0 %v828_v39  ;;  %4406 = vmatpush.bf16.msra.mxu2 %v828_v39 }
  0xc0   : > { %978 = vmatpush.bf16.msrb.mxu1 %v829_v40  ;;  %4408 = vmatpush.bf16.msra.mxu3 %v829_v40  ;;  %v5225_v44 = vpop.f32.mrf.mxu0  ;;  %v5227_v45 = vpop.f32.mrf.mxu1 }
  0xc1   : > { %8179 = vst [vmem:[#allocation6_spill] sm:$0xff] %v5225_v44 }
  0xc2   : > { %8180 = vst [vmem:[#allocation7_spill] sm:$0xff] %v5227_v45 }
  0xc3   : > { %890 = vmatpush.bf16.msrb.mxu0 %v826_v47  ;;  %4407 = vmatpush.bf16.msra.mxu2 %v826_v47  ;;  %v231_v47 = vld [vmem:[%s8075_s1 + $0x110] sm:$0xff] }
  0xc4   : > { %979 = vmatpush.bf16.msrb.mxu1 %v827_v48  ;;  %4409 = vmatpush.bf16.msra.mxu3 %v827_v48  ;;  %v232_v48 = vld [vmem:[%s8075_s1 + $0x118] sm:$0xff] }
  0xc5   : > { %4114 = vmatmul.msk.f32.gmra.mxu0 %vm250_vm1, %v217_v55  ;;  %4163 = vmatmul.msk.f32.gmra.mxu1 %vm250_vm1, %v217_v55 }
  0xc8   : > { %v5229_v49 = vpop.f32.mrf.mxu0  ;;  %v5231_v50 = vpop.f32.mrf.mxu1 }
  0xc9   : > { %8181 = vst [vmem:[#allocation8_spill] sm:$0xff] %v5229_v49 }
  0xca   : > { %8182 = vst [vmem:[#allocation9_spill] sm:$0xff] %v5231_v50 }
  0xcd   : > { %4115 = vmatmul.msk.f32.gmra.mxu0 %vm250_vm1, %v218_v58  ;;  %4164 = vmatmul.msk.f32.gmra.mxu1 %vm250_vm1, %v218_v58 }
  0xd0   : > { %v5233_v51 = vpop.f32.mrf.mxu0  ;;  %v5235_v52 = vpop.f32.mrf.mxu1 }
  0xd1   : > { %8183 = vst [vmem:[#allocation10_spill] sm:$0xff] %v5233_v51 }
  0xd2   : > { %8184 = vst [vmem:[#allocation11_spill] sm:$0xff] %v5235_v52 }
  0xd5   : > { %4116 = vmatmul.msk.f32.gmra.mxu0 %vm250_vm1, %v219_v61  ;;  %4165 = vmatmul.msk.f32.gmra.mxu1 %vm250_vm1, %v219_v61  ;;  %v233_v61 = vld [vmem:[%s8075_s1 + $0x120] sm:$0xff] }
  0xd8   : > { %v5237_v53 = vpop.f32.mrf.mxu0  ;;  %v5239_v54 = vpop.f32.mrf.mxu1 }
  0xd9   : > { %8185 = vst [vmem:[#allocation12_spill] sm:$0xff] %v5237_v53 }
  0xda   : > { %8186 = vst [vmem:[#allocation13_spill] sm:$0xff] %v5239_v54 }
  0xdd   : > { %4117 = vmatmul.msk.f32.gmra.mxu0 %vm250_vm1, %v220_v0  ;;  %4166 = vmatmul.msk.f32.gmra.mxu1 %vm250_vm1, %v220_v0 }
  0xe0   : > { %v5246_v56 = vpop.f32.mrf.mxu0  ;;  %v5248_v57 = vpop.f32.mrf.mxu1 }
  0xe1   : > { %8187 = vst [vmem:[#allocation14_spill] sm:$0xff] %v5246_v56 }
  0xe2   : > { %8188 = vst [vmem:[#allocation15_spill] sm:$0xff] %v5248_v57 }
  0xe5   : > { %4118 = vmatmul.msk.f32.gmra.mxu0 %vm250_vm1, %v221_v3  ;;  %4167 = vmatmul.msk.f32.gmra.mxu1 %vm250_vm1, %v221_v3 }
  0xe8   : > { %v5255_v59 = vpop.f32.mrf.mxu0  ;;  %v5257_v60 = vpop.f32.mrf.mxu1 }
  0xe9   : > { %8189 = vst [vmem:[#allocation16_spill] sm:$0xff] %v5255_v59 }
  0xea   : > { %8190 = vst [vmem:[#allocation17_spill] sm:$0xff] %v5257_v60 }
  0xed   : > { %4119 = vmatmul.msk.f32.gmra.mxu0 %vm250_vm1, %v222_v6  ;;  %4168 = vmatmul.msk.f32.gmra.mxu1 %vm250_vm1, %v222_v6  ;;  %v234_v6 = vld [vmem:[%s8075_s1 + $0x128] sm:$0xff] }
  0xf0   : > { %v5264_v62 = vpop.f32.mrf.mxu0  ;;  %v5266_v63 = vpop.f32.mrf.mxu1 }
  0xf1   : > { %8191 = vst [vmem:[#allocation18_spill] sm:$0xff] %v5264_v62 }
  0xf2   : > { %8192 = vst [vmem:[#allocation19_spill] sm:$0xff] %v5266_v63 }
  0xf5   : > { %4120 = vmatmul.msk.f32.gmra.mxu0 %vm250_vm1, %v223_v9  ;;  %4169 = vmatmul.msk.f32.gmra.mxu1 %vm250_vm1, %v223_v9 }
  0xf8   : > { %v5273_v1 = vpop.f32.mrf.mxu0  ;;  %v5275_v2 = vpop.f32.mrf.mxu1 }
  0xf9   : > { %8193 = vst [vmem:[#allocation20_spill] sm:$0xff] %v5273_v1 }
  0xfa   : > { %8194 = vst [vmem:[#allocation21_spill] sm:$0xff] %v5275_v2 }
  0xfd   : > { %4121 = vmatmul.msk.f32.gmra.mxu0 %vm250_vm1, %v224_v12  ;;  %4170 = vmatmul.msk.f32.gmra.mxu1 %vm250_vm1, %v224_v12 }
 0x100   : > { %v5282_v4 = vpop.f32.mrf.mxu0  ;;  %v5284_v5 = vpop.f32.mrf.mxu1 }
 0x101   : > { %8195 = vst [vmem:[#allocation22_spill] sm:$0xff] %v5282_v4 }
 0x102   : > { %8196 = vst [vmem:[#allocation23_spill] sm:$0xff] %v5284_v5 }
 0x105   : > { %4122 = vmatmul.msk.f32.gmra.mxu0 %vm250_vm1, %v225_v15  ;;  %4171 = vmatmul.msk.f32.gmra.mxu1 %vm250_vm1, %v225_v15  ;;  %v235_v15 = vld [vmem:[%s8075_s1 + $0x130] sm:$0xff] }
 0x108   : > { %v5291_v7 = vpop.f32.mrf.mxu0  ;;  %v5293_v8 = vpop.f32.mrf.mxu1 }
 0x109   : > { %8197 = vst [vmem:[#allocation24_spill] sm:$0xff] %v5291_v7 }
 0x10a   : > { %8198 = vst [vmem:[#allocation25_spill] sm:$0xff] %v5293_v8 }
 0x10d   : > { %4123 = vmatmul.msk.f32.gmra.mxu0 %vm250_vm1, %v226_v18  ;;  %4172 = vmatmul.msk.f32.gmra.mxu1 %vm250_vm1, %v226_v18  ;;  %v236_v18 = vld [vmem:[%s8075_s1 + $0x138] sm:$0xff] }
 0x110   : > { %v5300_v10 = vpop.f32.mrf.mxu0  ;;  %v5302_v11 = vpop.f32.mrf.mxu1 }
 0x111   : > { %8199 = vst [vmem:[#allocation26_spill] sm:$0xff] %v5300_v10 }
 0x112   : > { %8200 = vst [vmem:[#allocation27_spill] sm:$0xff] %v5302_v11 }
 0x115   : > { %4124 = vmatmul.msk.f32.gmra.mxu0 %vm250_vm1, %v227_v23  ;;  %4173 = vmatmul.msk.f32.gmra.mxu1 %vm250_vm1, %v227_v23 }
 0x118   : > { %v5309_v13 = vpop.f32.mrf.mxu0  ;;  %v5311_v14 = vpop.f32.mrf.mxu1 }
 0x119   : > { %8201 = vst [vmem:[#allocation28_spill] sm:$0xff] %v5309_v13 }
 0x11a   : > { %8202 = vst [vmem:[#allocation29_spill] sm:$0xff] %v5311_v14 }
 0x11d   : > { %4125 = vmatmul.msk.f32.gmra.mxu0 %vm250_vm1, %v228_v32  ;;  %4174 = vmatmul.msk.f32.gmra.mxu1 %vm250_vm1, %v228_v32  ;;  %v240_v32 = vld [vmem:[%s8075_s1 + $0x158] sm:$0xff] }
 0x120   : > { %v465_v16 = vpop.f32.mrf.mxu0  ;;  %v626_v17 = vpop.f32.mrf.mxu1 }
 0x121   : > { %v738_v19 = vpack.c.bf16 %v626_v17, %v465_v16 }
 0x123   : > { %v774_v24 = vunpack.c.l.b16 %v738_v19  ;;  %v775_v25 = vunpack.c.h.b16 %v738_v19 }
 0x125   : > { %4126 = vmatmul.msk.f32.gmra.mxu0 %vm250_vm1, %v229_v37  ;;  %4175 = vmatmul.msk.f32.gmra.mxu1 %vm250_vm1, %v229_v37 }
 0x128   : > { %v468_v20 = vpop.f32.mrf.mxu0  ;;  %v629_v21 = vpop.f32.mrf.mxu1 }
 0x129   : > { %v739_v22 = vpack.c.bf16 %v629_v21, %v468_v20  ;;  %v237_v21 = vld [vmem:[%s8075_s1 + $0x140] sm:$0xff] }
 0x12b   : > { %v776_v26 = vunpack.c.l.b16 %v739_v22  ;;  %v777_v27 = vunpack.c.h.b16 %v739_v22 }
 0x12d   : > { %v782_v28 = vpack.c.b16 %v776_v26, %v774_v24  ;;  %v783_v29 = vpack.c.b16 %v777_v27, %v775_v25  ;;  %4127 = vmatmul.msk.f32.gmra.mxu0 %vm250_vm1, %v230_v46  ;;  %4176 = vmatmul.msk.f32.gmra.mxu1 %vm250_vm1, %v230_v46  ;;  %v238_v25 = vld [vmem:[%s8075_s1 + $0x148] sm:$0xff] }
 0x12f   : > { %790 = vxpose.binary.xlu0.c.b16.start [1/4] (short) %v783_v29, %v782_v28, 128  ;;  %v239_v28 = vld [vmem:[%s8075_s1 + $0x150] sm:$0xff] }
 0x130   : > { %v471_v30 = vpop.f32.mrf.mxu0  ;;  %v632_v31 = vpop.f32.mrf.mxu1 }
 0x131   : > { %v740_v33 = vpack.c.bf16 %v632_v31, %v471_v30 }
 0x133   : > { %v778_v38 = vunpack.c.l.b16 %v740_v33  ;;  %v779_v39 = vunpack.c.h.b16 %v740_v33 }
 0x135   : > { %4128 = vmatmul.msk.f32.gmra.mxu0 %vm250_vm1, %v231_v47  ;;  %4177 = vmatmul.msk.f32.gmra.mxu1 %vm250_vm1, %v231_v47  ;;  %v244_v47 = vld [vmem:[%s8075_s1 + $0x178] sm:$0xff] }
 0x138   : > { %v474_v34 = vpop.f32.mrf.mxu0  ;;  %v635_v35 = vpop.f32.mrf.mxu1 }
 0x139   : > { %v741_v36 = vpack.c.bf16 %v635_v35, %v474_v34  ;;  %v241_v35 = vld [vmem:[%s8075_s1 + $0x160] sm:$0xff] }
 0x13b   : > { %v780_v40 = vunpack.c.l.b16 %v741_v36  ;;  %v781_v41 = vunpack.c.h.b16 %v741_v36 }
 0x13d   : > { %v784_v42 = vpack.c.b16 %v780_v40, %v778_v38  ;;  %v785_v43 = vpack.c.b16 %v781_v41, %v779_v39  ;;  %4129 = vmatmul.msk.f32.gmra.mxu0 %vm250_vm1, %v232_v48  ;;  %4178 = vmatmul.msk.f32.gmra.mxu1 %vm250_vm1, %v232_v48  ;;  %v242_v39 = vld [vmem:[%s8075_s1 + $0x168] sm:$0xff] }
 0x13f   : > { %791 = vxpose.binary.xlu0.c.b16.end [2/4] (short) %v785_v43, %v784_v42, 128  ;;  %v243_v42 = vld [vmem:[%s8075_s1 + $0x170] sm:$0xff] }
 0x142   : > { %v5353_v55 = vpop.f32.mrf.mxu0  ;;  %v5355_v58 = vpop.f32.mrf.mxu1 }
 0x143   : > { %v742_v14 = vpack.c.bf16 %v5355_v58, %v5353_v55 }
 0x145   : > { %4130 = vmatmul.msk.f32.gmra.mxu0 %vm250_vm1, %v233_v61  ;;  %4179 = vmatmul.msk.f32.gmra.mxu1 %vm250_vm1, %v233_v61 }
 0x14a   : > { %v5362_v0 = vpop.f32.mrf.mxu0  ;;  %v5364_v3 = vpop.f32.mrf.mxu1 }
 0x14b   : > { %v743_v13 = vpack.c.bf16 %v5364_v3, %v5362_v0 }
 0x14d   : > { %4131 = vmatmul.msk.f32.gmra.mxu0 %vm250_vm1, %v234_v6  ;;  %4180 = vmatmul.msk.f32.gmra.mxu1 %vm250_vm1, %v234_v6 }
 0x152   : > { %v5371_v9 = vpop.f32.mrf.mxu0  ;;  %v5373_v12 = vpop.f32.mrf.mxu1 }
 0x155   : > { %4132 = vmatmul.msk.f32.gmra.mxu0 %vm250_vm1, %v235_v15  ;;  %4181 = vmatmul.msk.f32.gmra.mxu1 %vm250_vm1, %v235_v15 }
 0x15a   : > { %v5380_v16 = vpop.f32.mrf.mxu0  ;;  %v5382_v17 = vpop.f32.mrf.mxu1 }
 0x15d   : > { %4133 = vmatmul.msk.f32.gmra.mxu0 %vm250_vm1, %v236_v18  ;;  %4182 = vmatmul.msk.f32.gmra.mxu1 %vm250_vm1, %v236_v18 }
 0x162   : > { %v489_v19 = vpop.f32.mrf.mxu0  ;;  %v650_v20 = vpop.f32.mrf.mxu1 }
 0x163   : > { %v5392_v22 = vpack.c.bf16 %v650_v20, %v489_v19 }
 0x165   : > { %4134 = vmatmul.msk.f32.gmra.mxu0 %vm250_vm1, %v237_v21  ;;  %4183 = vmatmul.msk.f32.gmra.mxu1 %vm250_vm1, %v237_v21 }
 0x16a   : > { %v5396_v23 = vpop.f32.mrf.mxu0  ;;  %v5398_v24 = vpop.f32.mrf.mxu1 }
 0x16d   : > { %4135 = vmatmul.msk.f32.gmra.mxu0 %vm250_vm1, %v238_v25  ;;  %4184 = vmatmul.msk.f32.gmra.mxu1 %vm250_vm1, %v238_v25 }
 0x172   : > { %v495_v26 = vpop.f32.mrf.mxu0  ;;  %v656_v27 = vpop.f32.mrf.mxu1 }
 0x173   : > { %v5408_v29 = vpack.c.bf16 %v656_v27, %v495_v26 }
 0x175   : > { %4136 = vmatmul.msk.f32.gmra.mxu0 %vm250_vm1, %v239_v28  ;;  %4185 = vmatmul.msk.f32.gmra.mxu1 %vm250_vm1, %v239_v28 }
 0x17a   : > { %v5412_v30 = vpop.f32.mrf.mxu0  ;;  %v5414_v31 = vpop.f32.mrf.mxu1 }
 0x17d   : > { %4137 = vmatmul.msk.f32.gmra.mxu0 %vm250_vm1, %v240_v32  ;;  %4186 = vmatmul.msk.f32.gmra.mxu1 %vm250_vm1, %v240_v32 }
 0x182   : > { %v501_v33 = vpop.f32.mrf.mxu0  ;;  %v662_v34 = vpop.f32.mrf.mxu1 }
 0x183   : > { %v5424_v36 = vpack.c.bf16 %v662_v34, %v501_v33 }
 0x185   : > { %4138 = vmatmul.msk.f32.gmra.mxu0 %vm250_vm1, %v241_v35  ;;  %4187 = vmatmul.msk.f32.gmra.mxu1 %vm250_vm1, %v241_v35 }
 0x18a   : > { %v5428_v37 = vpop.f32.mrf.mxu0  ;;  %v5430_v38 = vpop.f32.mrf.mxu1 }
 0x18d   : > { %4139 = vmatmul.msk.f32.gmra.mxu0 %vm250_vm1, %v242_v39  ;;  %4188 = vmatmul.msk.f32.gmra.mxu1 %vm250_vm1, %v242_v39 }
 0x192   : > { %v5437_v40 = vpop.f32.mrf.mxu0  ;;  %v5439_v41 = vpop.f32.mrf.mxu1 }
 0x195   : > { %4140 = vmatmul.msk.f32.gmra.mxu0 %vm250_vm1, %v243_v42  ;;  %4189 = vmatmul.msk.f32.gmra.mxu1 %vm250_vm1, %v243_v42 }
 0x19a   : > { %v5446_v43 = vpop.f32.mrf.mxu0  ;;  %v5448_v46 = vpop.f32.mrf.mxu1 }
 0x19d   : > { %4141 = vmatmul.msk.f32.gmra.mxu0 %vm250_vm1, %v244_v47  ;;  %4190 = vmatmul.msk.f32.gmra.mxu1 %vm250_vm1, %v244_v47 }
 0x1a2   : > { %v513_v48 = vpop.f32.mrf.mxu0  ;;  %v674_v61 = vpop.f32.mrf.mxu1 }
 0x1a3   : > { %v5455_v6 = vpack.c.bf16 %v674_v61, %v513_v48 }
 0x1a5   : > { %8203 = vst [vmem:[#allocation30_spill] sm:$0xff] %v5455_v6 }
 0x1aa   : > { %v5457_v15 = vpop.f32.mrf.mxu0  ;;  %v5459_v18 = vpop.f32.mrf.mxu1 }
 0x1ab   : > { %8204 = vst [vmem:[#allocation31_spill] sm:$0xff] %v5457_v15 }
 0x1ac   : > { %8205 = vst [vmem:[#allocation32_spill] sm:$0xff] %v5459_v18 }
 0x1b2   : > { %v519_v19 = vpop.f32.mrf.mxu0  ;;  %v680_v20 = vpop.f32.mrf.mxu1 }
 0x1b3   : > { %v5461_v21 = vpack.c.bf16 %v680_v20, %v519_v19 }
 0x1b5   : > { %8206 = vst [vmem:[#allocation33_spill] sm:$0xff] %v5461_v21 }
 0x1ba   : > { %v5463_v25 = vpop.f32.mrf.mxu0  ;;  %v5465_v26 = vpop.f32.mrf.mxu1 }
 0x1bb   : > { %8207 = vst [vmem:[#allocation34_spill] sm:$0xff] %v5463_v25 }
 0x1bc   : > { %8208 = vst [vmem:[#allocation35_spill] sm:$0xff] %v5465_v26 }
 0x1c2   : > { %v525_v27 = vpop.f32.mrf.mxu0  ;;  %v686_v28 = vpop.f32.mrf.mxu1 }
 0x1c3   : > { %v5467_v33 = vpack.c.bf16 %v686_v28, %v525_v27 }
 0x1c5   : > { %8209 = vst [vmem:[#allocation36_spill] sm:$0xff] %v5467_v33 }
 0x1ca   : > { %v5471_v34 = vpop.f32.mrf.mxu0  ;;  %v5473_v35 = vpop.f32.mrf.mxu1 }
 0x1cb   : > { %8210 = vst [vmem:[#allocation37_spill] sm:$0xff] %v5471_v34 }
 0x1cc   : > { %8211 = vst [vmem:[#allocation38_spill] sm:$0xff] %v5473_v35 }
 0x1d2   : > { %v531_v42 = vpop.f32.mrf.mxu0  ;;  %v692_v47 = vpop.f32.mrf.mxu1 }
 0x1d3   : > { %v5477_v61 = vpack.c.bf16 %v692_v47, %v531_v42 }
 0x1d5   : > { %8212 = vst [vmem:[#allocation39_spill] sm:$0xff] %v5477_v61 }
 0x1da   : > { %v5481_v19 = vpop.f32.mrf.mxu0  ;;  %v5483_v20 = vpop.f32.mrf.mxu1 }
 0x1db   : > { %v798_v32 = vpop.trf.xlu0  ;;  %8213 = vst [vmem:[#allocation40_spill] sm:$0xff] %v5481_v19 }
 0x1dc   : > { %4191 = vmatmul.msk.bf16.vlgmr.msrb.gmra.mxu0 %vm834_vm2, %v798_v32  ;;  %4207 = vmatmul.msk.bf16.vlgmr.msrb.gmra.mxu1 %vm834_vm2, %v798_v32  ;;  %8214 = vst [vmem:[#allocation41_spill] sm:$0xff] %v5483_v20 }
 0x1e2   : > { %v537_v28 = vpop.f32.mrf.mxu0  ;;  %v698_v32 = vpop.f32.mrf.mxu1 }
 0x1e3   : > { %v5475_v39 = vpop.trf.xlu0  ;;  %v5487_v4 = vpack.c.bf16 %v698_v32, %v537_v28 }
 0x1e5   : > { %8215 = vst [vmem:[#allocation42_spill] sm:$0xff] %v5487_v4 }
 0x1ea   : > { %v5491_v42 = vpop.f32.mrf.mxu0  ;;  %v5493_v47 = vpop.f32.mrf.mxu1 }
 0x1eb   : > { %v800_v48 = vpop.trf.xlu0  ;;  %8216 = vst [vmem:[#allocation43_spill] sm:$0xff] %v5491_v42  ;;  %v1552_v42 = vunpack.c.h.b16 %v742_v14 }
 0x1ec   : > { %4192 = vmatmul.msk.bf16.gmra.mxu0 %vm834_vm2, %v800_v48  ;;  %4208 = vmatmul.msk.bf16.gmra.mxu1 %vm834_vm2, %v800_v48  ;;  %8217 = vst [vmem:[#allocation44_spill] sm:$0xff] %v5493_v47  ;;  %v1551_v47 = vunpack.c.l.b16 %v742_v14  ;;  %v744_v14 = vpack.c.bf16 %v5373_v12, %v5371_v9  ;;  %v747_v12 = vpack.c.bf16 %v5398_v24, %v5396_v23  ;;  %v2331_v23 = vunpack.c.l.b16 %v5408_v29 }
 0x1ed   : > { %v2332_v24 = vunpack.c.h.b16 %v5408_v29 }
 0x1f2   : > { %v543_v8 = vpop.f32.mrf.mxu0  ;;  %v704_v7 = vpop.f32.mrf.mxu1 }
 0x1f3   : > { %v5485_v27 = vpop.trf.xlu0  ;;  %v5497_v10 = vpack.c.bf16 %v704_v7, %v543_v8  ;;  %v1553_v7 = vunpack.c.l.b16 %v743_v13  ;;  %v1554_v8 = vunpack.c.h.b16 %v743_v13  ;;  %v745_v13 = vpack.c.bf16 %v5382_v17, %v5380_v16 }
 0x1f4   : > { %v2327_v16 = vunpack.c.l.b16 %v5392_v22  ;;  %v2328_v17 = vunpack.c.h.b16 %v5392_v22 }
 0x1f5   : > { %8218 = vst [vmem:[#allocation45_spill] sm:$0xff] %v5497_v10  ;;  %v1560_v56 = vpack.c.b16 %v1554_v8, %v1552_v42  ;;  %v1557_v3 = vunpack.c.l.b16 %v745_v13  ;;  %v1558_v42 = vunpack.c.h.b16 %v745_v13  ;;  %v2330_v13 = vunpack.c.h.b16 %v747_v12 }
 0x1fa   : > { %v5501_v28 = vpop.f32.mrf.mxu0  ;;  %v5503_v32 = vpop.f32.mrf.mxu1 }
 0x1fb   : > { %v802_v5 = vpop.trf.xlu0  ;;  %8219 = vst [vmem:[#allocation46_spill] sm:$0xff] %v5501_v28  ;;  %v1559_v28 = vpack.c.b16 %v1553_v7, %v1551_v47 }
 0x1fc   : > { %4193 = vmatmul.msk.bf16.gmra.mxu0 %vm834_vm2, %v802_v5  ;;  %4209 = vmatmul.msk.bf16.gmra.mxu1 %vm834_vm2, %v802_v5  ;;  %8220 = vst [vmem:[#allocation47_spill] sm:$0xff] %v5503_v32 }
 0x1fd   : > { %1567 = vxpose.binary.xlu1.c.b16.start [1/4] (short) %v1560_v56, %v1559_v28, 128 }
 0x202   : > { %v549_v10 = vpop.f32.mrf.mxu0  ;;  %v710_v4 = vpop.f32.mrf.mxu1 }
 0x203   : > { %v5495_v48 = vpop.trf.xlu0 }
 0x20a   : > { %v5515_v55 = vpop.f32.mrf.mxu0  ;;  %v5517_v58 = vpop.f32.mrf.mxu1 }
 0x20b   : > { %v804_v11 = vpop.trf.xlu0  ;;  %8222 = vst [vmem:[#allocation49_spill] sm:$0xff] %v5515_v55 }
 0x20c   : > { %4194 = vmatmul.msk.bf16.vlgmr.msra.gmra.mxu2 %vm834_vm2, %v804_v11  ;;  %4210 = vmatmul.msk.bf16.vlgmr.msra.gmra.mxu3 %vm834_vm2, %v804_v11  ;;  %v5511_v11 = vpack.c.bf16 %v710_v4, %v549_v10  ;;  %8223 = vst [vmem:[#allocation50_spill] sm:$0xff] %v5517_v58  ;;  %v1555_v4 = vunpack.c.l.b16 %v744_v14  ;;  %v1556_v10 = vunpack.c.h.b16 %v744_v14  ;;  %v2329_v14 = vunpack.c.l.b16 %v747_v12 }
 0x20e   : > { %8221 = vst [vmem:[#allocation48_spill] sm:$0xff] %v5511_v11  ;;  %v1561_v28 = vpack.c.b16 %v1557_v3, %v1555_v4  ;;  %v1562_v8 = vpack.c.b16 %v1558_v42, %v1556_v10  ;;  %v749_v4 = vpack.c.bf16 %v5414_v31, %v5412_v30  ;;  %v3103_v30 = vunpack.c.l.b16 %v5424_v36 }
 0x20f   : > { %v3104_v31 = vunpack.c.h.b16 %v5424_v36 }
 0x210   : > { %1568 = vxpose.binary.xlu1.c.b16.end [2/4] (short) %v1562_v8, %v1561_v28, 128  ;;  %v2333_v3 = vunpack.c.l.b16 %v749_v4  ;;  %v2334_v22 = vunpack.c.h.b16 %v749_v4 }
 0x212   : > { %v555_v47 = vpop.f32.mrf.mxu0  ;;  %v716_v7 = vpop.f32.mrf.mxu1  ;;  %v2338_v28 = vpack.c.b16 %v2334_v22, %v2332_v24 }
 0x213   : > { %v5505_v5 = vpop.trf.xlu0  ;;  %v5525_v56 = vpack.c.bf16 %v716_v7, %v555_v47  ;;  %v2335_v47 = vpack.c.b16 %v2329_v14, %v2327_v16  ;;  %v2336_v7 = vpack.c.b16 %v2330_v13, %v2328_v17  ;;  %v752_v17 = vpack.c.bf16 %v5439_v41, %v5437_v40 }
 0x215   : > { %8224 = vst [vmem:[#allocation51_spill] sm:$0xff] %v5525_v56  ;;  %2343 = vxpose.binary.xlu2.c.b16.start [1/4] (short) %v2336_v7, %v2335_v47, 128  ;;  %v3108_v14 = vunpack.c.h.b16 %v752_v17 }
 0x21a   : > { %v5647_v11 = vpop.f32.mrf.mxu1 }
 0x21b   : > { %v806_v57 = vpop.trf.xlu0  ;;  %8235 = vst [vmem:[#allocation62_spill] sm:$0xff] %v5647_v11 }
 0x21c   : > { %4195 = vmatmul.msk.bf16.gmra.mxu2 %vm834_vm2, %v806_v57  ;;  %4211 = vmatmul.msk.bf16.gmra.mxu3 %vm834_vm2, %v806_v57 }
 0x223   : > { %v5523_v0 = vpop.trf.xlu0 }
 0x22b   : > { %v808_v57 = vpop.trf.xlu0 }
 0x22c   : > { %4196 = vmatmul.msk.bf16.gmra.mxu2 %vm834_vm2, %v808_v57  ;;  %4212 = vmatmul.msk.bf16.gmra.mxu3 %vm834_vm2, %v808_v57  ;;  %v2337_v57 = vpack.c.b16 %v2333_v3, %v2331_v23 }
 0x22e   : > { %2344 = vxpose.binary.xlu2.c.b16.end [2/4] (short) %v2338_v28, %v2337_v57, 128 }
 0x233   : > { %v809_v9 = vpop.trf.xlu0 }
 0x23b   : > { %v810_v58 = vpop.trf.xlu0 }
 0x23c   : > { %4197 = vmatmul.msk.bf16.gmra.mxu2 %vm834_vm2, %v810_v58  ;;  %4213 = vmatmul.msk.bf16.gmra.mxu3 %vm834_vm2, %v810_v58  ;;  %v751_v58 = vpack.c.bf16 %v5430_v38, %v5428_v37  ;;  %v753_v37 = vpack.c.bf16 %v5448_v46, %v5446_v43  ;;  %v3107_v38 = vunpack.c.l.b16 %v752_v17 }
 0x23e   : > { %v3105_v8 = vunpack.c.l.b16 %v751_v58  ;;  %v3106_v12 = vunpack.c.h.b16 %v751_v58  ;;  %v3109_v36 = vunpack.c.l.b16 %v753_v37  ;;  %v3110_v13 = vunpack.c.h.b16 %v753_v37 }
 0x240   : > { %v3111_v29 = vpack.c.b16 %v3105_v8, %v3103_v30  ;;  %v3112_v16 = vpack.c.b16 %v3106_v12, %v3104_v31  ;;  %v3113_v47 = vpack.c.b16 %v3109_v36, %v3107_v38  ;;  %v3114_v7 = vpack.c.b16 %v3110_v13, %v3108_v14  ;;  %v5631_v14 = vpop.f32.mrf.mxu0 }
 0x241   : > { %8234 = vst [vmem:[#allocation61_spill] sm:$0xff] %v5631_v14 }
 0x242   : > { %3119 = vxpose.binary.xlu0.c.b16.start [1/4] (short) %v3112_v16, %v3111_v29, 128 }
 0x243   : > { %v811_v10 = vpop.trf.xlu0 }
 0x24b   : > { %v812_v42 = vpop.trf.xlu0 }
 0x24c   : > { %4198 = vmatmul.msk.bf16.gmra.mxu2 %vm834_vm2, %v812_v42  ;;  %4214 = vmatmul.msk.bf16.gmra.mxu3 %vm834_vm2, %v812_v42 }
 0x252   : > { %3120 = vxpose.binary.xlu0.c.b16.end [2/4] (short) %v3114_v7, %v3113_v47, 128 }
 0x259   : > { %v5655_v59 = vpop.f32.mrf.mxu1 }
 0x25c   : > { %4199 = vmatmul.msk.bf16.gmra.mxu2 %vm834_vm2, %v5475_v39  ;;  %4215 = vmatmul.msk.bf16.gmra.mxu3 %vm834_vm2, %v5475_v39 }
 0x261   : > { %v5663_v1 = vpop.f32.mrf.mxu1 }
 0x262   : > { %8238 = vst [vmem:[#allocation65_spill] sm:$0xff] %v5663_v1 }
 0x269   : > { %v5671_v19 = vpop.f32.mrf.mxu1 }
 0x26a   : > { %8241 = vst [vmem:[#allocation68_spill] sm:$0xff] %v5671_v19 }
 0x26c   : > { %4200 = vmatmul.msk.bf16.gmra.mxu2 %vm834_vm2, %v5485_v27  ;;  %4216 = vmatmul.msk.bf16.gmra.mxu3 %vm834_vm2, %v5485_v27 }
 0x271   : > { %v5681_v44 = vpop.f32.mrf.mxu1 }
 0x272   : > { %8243 = vst [vmem:[#allocation70_spill] sm:$0xff] %v5681_v44 }
 0x279   : > { %v5699_v6 = vpop.f32.mrf.mxu1 }
 0x27c   : > { %4201 = vmatmul.msk.bf16.gmra.mxu2 %vm834_vm2, %v5495_v48  ;;  %4217 = vmatmul.msk.bf16.gmra.mxu3 %vm834_vm2, %v5495_v48 }
 0x28c   : > { %4202 = vmatmul.msk.bf16.gmra.mxu2 %vm834_vm2, %v5505_v5  ;;  %4218 = vmatmul.msk.bf16.gmra.mxu3 %vm834_vm2, %v5505_v5 }
 0x28f   : > { %v5565_v40 = vpop.f32.mrf.mxu2  ;;  %v5567_v41 = vpop.f32.mrf.mxu3 }
 0x297   : > { %v5569_v43 = vpop.f32.mrf.mxu2  ;;  %v5571_v46 = vpop.f32.mrf.mxu3 }
 0x298   : > { %8225 = vst [vmem:[#allocation52_spill] sm:$0xff] %v5569_v43 }
 0x299   : > { %8226 = vst [vmem:[#allocation53_spill] sm:$0xff] %v5571_v46 }
 0x29c   : > { %4203 = vmatmul.msk.bf16.gmra.mxu2 %vm834_vm2, %v5523_v0  ;;  %4219 = vmatmul.msk.bf16.gmra.mxu3 %vm834_vm2, %v5523_v0 }
 0x29f   : > { %v5577_v39 = vpop.f32.mrf.mxu2  ;;  %v5579_v27 = vpop.f32.mrf.mxu3 }
 0x2a7   : > { %v5581_v48 = vpop.f32.mrf.mxu2  ;;  %v5583_v5 = vpop.f32.mrf.mxu3 }
 0x2a8   : > { %8227 = vst [vmem:[#allocation54_spill] sm:$0xff] %v5583_v5 }
 0x2ac   : > { %4204 = vmatmul.msk.bf16.gmra.mxu2 %vm834_vm2, %v809_v9  ;;  %4220 = vmatmul.msk.bf16.gmra.mxu3 %vm834_vm2, %v809_v9  ;;  %v813_v9 = vpop.trf.xlu0 }
 0x2af   : > { %v5587_v4 = vpop.f32.mrf.mxu2  ;;  %v5589_v23 = vpop.f32.mrf.mxu3 }
 0x2b7   : > { %v5591_v24 = vpop.f32.mrf.mxu2  ;;  %v5593_v3 = vpop.f32.mrf.mxu3 }
 0x2b8   : > { %8228 = vst [vmem:[#allocation55_spill] sm:$0xff] %v5591_v24 }
 0x2b9   : > { %8229 = vst [vmem:[#allocation56_spill] sm:$0xff] %v5593_v3 }
 0x2bc   : > { %4205 = vmatmul.msk.bf16.gmra.mxu2 %vm834_vm2, %v811_v10  ;;  %4221 = vmatmul.msk.bf16.gmra.mxu3 %vm834_vm2, %v811_v10 }
 0x2bf   : > { %v5597_v0 = vpop.f32.mrf.mxu2  ;;  %v5599_v22 = vpop.f32.mrf.mxu3 }
 0x2c7   : > { %v5601_v42 = vpop.f32.mrf.mxu2  ;;  %v5603_v57 = vpop.f32.mrf.mxu3 }
 0x2c8   : > { %8230 = vst [vmem:[#allocation57_spill] sm:$0xff] %v5603_v57 }
 0x2cc   : > { %4206 = vmatmul.msk.bf16.gmra.mxu2 %vm834_vm2, %v813_v9  ;;  %4222 = vmatmul.msk.bf16.gmra.mxu3 %vm834_vm2, %v813_v9  ;;  %v5641_v9 = vpop.f32.mrf.mxu0 }
 0x2cf   : > { %v5607_v28 = vpop.f32.mrf.mxu2  ;;  %v5609_v58 = vpop.f32.mrf.mxu3 }
 0x2d4   : > { %v5649_v32 = vpop.f32.mrf.mxu0 }
 0x2d7   : > { %v5611_v30 = vpop.f32.mrf.mxu2  ;;  %v5613_v10 = vpop.f32.mrf.mxu3 }
 0x2dc   : > { %v5657_v63 = vpop.f32.mrf.mxu0 }
 0x2dd   : > { %v1061_v49 = vmax.f32 %v5641_v9, %v5657_v63 }
 0x2df   : > { %v5615_v31 = vpop.f32.mrf.mxu2  ;;  %v5617_v8 = vpop.f32.mrf.mxu3 }
 0x2e4   : > { %v5665_v61 = vpop.f32.mrf.mxu0 }
 0x2e5   : > { %8239 = vst [vmem:[#allocation66_spill] sm:$0xff] %v5665_v61  ;;  %v1062_v52 = vmax.f32 %v5649_v32, %v5665_v61 }
 0x2e7   : > { %v5619_v12 = vpop.f32.mrf.mxu2  ;;  %v5621_v29 = vpop.f32.mrf.mxu3 }
 0x2e8   : > { %8231 = vst [vmem:[#allocation58_spill] sm:$0xff] %v5621_v29 }
 0x2ec   : > { %v5675_v34 = vpop.f32.mrf.mxu0 }
 0x2ed   : > { %8242 = vst [vmem:[#allocation69_spill] sm:$0xff] %v5675_v34  ;;  %v1063_v51 = vmax.f32 %v1061_v49, %v5675_v34 }
 0x2ef   : > { %v5623_v16 = vpop.f32.mrf.mxu2  ;;  %v5625_v17 = vpop.f32.mrf.mxu3  ;;  %v1065_v26 = vmax.f32 %v1063_v51, %v5565_v40 }
 0x2f0   : > { %8232 = vst [vmem:[#allocation59_spill] sm:$0xff] %v5623_v16 }
 0x2f1   : > { %v1067_v18 = vmax.f32 %v1065_v26, %v5577_v39 }
 0x2f3   : > { %v1069_v61 = vmax.f32 %v1067_v18, %v5587_v4 }
 0x2f4   : > { %v5683_v50 = vpop.f32.mrf.mxu0 }
 0x2f5   : > { %8244 = vst [vmem:[#allocation71_spill] sm:$0xff] %v5683_v50  ;;  %v1064_v54 = vmax.f32 %v1062_v52, %v5683_v50  ;;  %v1071_v52 = vmax.f32 %v1069_v61, %v5597_v0  ;;  %v1099_v61 = vmax.f32 %v5663_v1, %v5681_v44 }
 0x2f7   : > { %v5627_v37 = vpop.f32.mrf.mxu2  ;;  %v5629_v38 = vpop.f32.mrf.mxu3  ;;  %v1066_v25 = vmax.f32 %v1064_v54, %v5569_v43  ;;  %v1073_v51 = vmax.f32 %v1071_v52, %v5607_v28 }
 0x2f8   : > { %8233 = vst [vmem:[#allocation60_spill] sm:$0xff] %v5627_v37 }
 0x2f9   : > { %v1068_v15 = vmax.f32 %v1066_v25, %v5581_v48  ;;  %v1075_v25 = vmax.f32 %v1073_v51, %v5615_v31  ;;  %v1098_v51 = vmax.f32 %v5655_v59, %v5671_v19 }
 0x2fb   : > { %v1070_v49 = vmax.f32 %v1068_v15, %v5591_v24  ;;  %v1077_v18 = vmax.f32 %v1075_v25, %v5623_v16  ;;  %v5715_v24 = vpop.f32.mrf.mxu1 }
 0x2fd   : > { %v1072_v50 = vmax.f32 %v1070_v49, %v5601_v42 }
 0x2ff   : > { %v5633_v36 = vpop.f32.mrf.mxu2  ;;  %v5635_v13 = vpop.f32.mrf.mxu3  ;;  %v1074_v54 = vmax.f32 %v1072_v50, %v5611_v30 }
 0x300   : > { %v1079_v49 = vmax.f32 %v1077_v18, %v5633_v36 }
 0x301   : > { %v1076_v26 = vmax.f32 %v1074_v54, %v5619_v12  ;;  %v1101_v54 = vmax.f32 %v1099_v61, %v5715_v24 }
 0x303   : > { %v1078_v15 = vmax.f32 %v1076_v26, %v5627_v37  ;;  %v1100_v37 = vmax.f32 %v1098_v51, %v5699_v6  ;;  %v1103_v16 = vmax.f32 %v1101_v54, %v5571_v46 }
 0x305   : > { %v1102_v1 = vmax.f32 %v1100_v37, %v5567_v41  ;;  %v1105_v19 = vmax.f32 %v1103_v16, %v5583_v5 }
 0x307   : > { %v5637_v47 = vpop.f32.mrf.mxu2  ;;  %v5639_v7 = vpop.f32.mrf.mxu3  ;;  %v1107_v51 = vmax.f32 %v1105_v19, %v5593_v3 }
 0x308   : > { %v1080_v52 = vmax.f32 %v1078_v15, %v5637_v47 }
 0x309   : > { %v1109_v37 = vmax.f32 %v1107_v51, %v5603_v57 }
 0x30f   : > { %v5643_v56 = vpop.f32.mrf.mxu2  ;;  %v5645_v55 = vpop.f32.mrf.mxu3 }
 0x310   : > { %v1081_v25 = vmax.f32 %v1079_v49, %v5643_v56 }
 0x317   : > { %v5651_v60 = vpop.f32.mrf.mxu2  ;;  %v5653_v14 = vpop.f32.mrf.mxu3 }
 0x318   : > { %8236 = vst [vmem:[#allocation63_spill] sm:$0xff] %v5653_v14  ;;  %v1082_v26 = vmax.f32 %v1080_v52, %v5651_v60  ;;  %v1104_v52 = vmax.f32 %v1102_v1, %v5579_v27  ;;  %v1111_v1 = vmax.f32 %v1109_v37, %v5613_v10 }
 0x31f   : > { %v5659_v62 = vpop.f32.mrf.mxu2  ;;  %v5661_v2 = vpop.f32.mrf.mxu3 }
 0x320   : > { %8237 = vst [vmem:[#allocation64_spill] sm:$0xff] %v5661_v2  ;;  %v1083_v44 = vmax.f32 %v1081_v25, %v5659_v62 }
 0x327   : > { %v5667_v20 = vpop.f32.mrf.mxu2  ;;  %v5669_v11 = vpop.f32.mrf.mxu3 }
 0x328   : > { %8240 = vst [vmem:[#allocation67_spill] sm:$0xff] %v5669_v11  ;;  %v1084_v18 = vmax.f32 %v1082_v26, %v5667_v20  ;;  %v1106_v26 = vmax.f32 %v1104_v52, %v5589_v23 }
 0x32f   : > { %v5673_v35 = vpop.f32.mrf.mxu2  ;;  %v5677_v33 = vpop.f32.mrf.mxu3 }
 0x330   : > { %v1085_v61 = vmax.f32 %v1083_v44, %v5673_v35 }
 0x337   : > { %v5679_v45 = vpop.f32.mrf.mxu2  ;;  %v5691_v53 = vpop.f32.mrf.mxu3 }
 0x338   : > { %v1086_v49 = vmax.f32 %v1084_v18, %v5679_v45  ;;  %v1108_v18 = vmax.f32 %v1106_v26, %v5599_v22 }
 0x33a   : > { %v1110_v19 = vmax.f32 %v1108_v18, %v5609_v58 }
 0x33c   : > { %v1112_v52 = vmax.f32 %v1110_v19, %v5617_v8 }
 0x33f   : > { %v5693_v21 = vpop.f32.mrf.mxu2  ;;  %v5709_v43 = vpop.f32.mrf.mxu3 }
 0x340   : > { %v1087_v54 = vmax.f32 %v1085_v61, %v5693_v21  ;;  %v1113_v61 = vmax.f32 %v1111_v1, %v5621_v29 }
 0x342   : > { %v1115_v51 = vmax.f32 %v1113_v61, %v5629_v38 }
 0x347   : > { %v5705_v34 = vpop.f32.mrf.mxu2  ;;  %v5732_v15 = vpop.f32.mrf.mxu3 }
 0x348   : > { %v1088_v25 = vmax.f32 %v1086_v49, %v5705_v34 }
 0x34f   : > { %v5721_v50 = vpop.f32.mrf.mxu2  ;;  %v5752_v3 = vpop.f32.mrf.mxu3 }
 0x350   : > { %v1089_v16 = vmax.f32 %v1087_v54, %v5721_v50  ;;  %v1114_v54 = vmax.f32 %v1112_v52, %v5625_v17 }
 0x352   : > { %v1116_v37 = vmax.f32 %v1114_v54, %v5635_v13 }
 0x354   : > { %v1118_v18 = vmax.f32 %v1116_v37, %v5645_v55 }
 0x356   : > { %v1120_v19 = vmax.f32 %v1118_v18, %v5661_v2 }
 0x357   : > { %v5742_v46 = vpop.f32.mrf.mxu2 }
 0x358   : > { %v1090_v44 = vmax.f32 %v1088_v25, %v5742_v46  ;;  %v1117_v25 = vmax.f32 %v1115_v51, %v5639_v7 }
 0x35a   : > { %v1091_v5 = vmax.f32 %v1089_v16, %v1090_v44  ;;  %v1119_v16 = vmax.f32 %v1117_v25, %v5653_v14 }
 0x35c   : > { %v1092_v49 = vrot.slane %v1091_v5, 4  ;;  %v1121_v1 = vmax.f32 %v1119_v16, %v5669_v11 }
 0x35e   : > { %v1093_v57 = vmax.f32 %v1091_v5, %v1092_v49  ;;  %v1123_v61 = vmax.f32 %v1121_v1, %v5691_v53  ;;  %v5764_v5 = vpop.f32.mrf.mxu3  ;;  %v1122_v49 = vmax.f32 %v1120_v19, %v5677_v33  ;;  %v8245_v1 = vld [vmem:[#allocation66_spill] sm:$0xff] }
 0x360   : > { %v1094_v26 = vrot.slane %v1093_v57, 2  ;;  %v1125_v52 = vmax.f32 %v1123_v61, %v5732_v15  ;;  %v1124_v54 = vmax.f32 %v1122_v49, %v5709_v43  ;;  %v8246_v61 = vld [vmem:[#allocation69_spill] sm:$0xff] }
 0x362   : > { %v1095_v44 = vmax.f32 %v1093_v57, %v1094_v26  ;;  %v1127_v57 = vmax.f32 %v1125_v52, %v5764_v5  ;;  %v1126_v25 = vmax.f32 %v1124_v54, %v5752_v3 }
 0x364   : > { %v1096_v29 = vrot.slane %v1095_v44, 1  ;;  %v1128_v18 = vmax.f32 %v1126_v25, %v1127_v57 }
 0x366   : > { %v5768_v51 = vmax.f32 %v1095_v44, %v1096_v29  ;;  %v1129_v54 = vrot.slane %v1128_v18, 4 }
 0x368   : > { %v1135_v26 = vsub.f32 %v5641_v9, %v5768_v51  ;;  %v1137_v37 = vsub.f32 %v5649_v32, %v5768_v51  ;;  %v1139_v16 = vsub.f32 %v5657_v63, %v5768_v51  ;;  %v1141_v29 = vsub.f32 %v8245_v1, %v5768_v51  ;;  %v8247_v9 = vld [vmem:[#allocation71_spill] sm:$0xff] }
 0x369   : > { %v1143_v49 = vsub.f32 %v8246_v61, %v5768_v51  ;;  %v1145_v14 = vsub.f32 %v8247_v9, %v5768_v51  ;;  %v1147_v63 = vsub.f32 %v5565_v40, %v5768_v51  ;;  %v1130_v25 = vmax.f32 %v1128_v18, %v1129_v54 }
 0x36a   : > { %v1199_v44 = vmul.f32 1.442695, %v1135_v26  ;;  %v1203_v19 = vmul.f32 1.442695, %v1137_v37  ;;  %v1207_v52 = vmul.f32 1.442695, %v1139_v16  ;;  %v1151_v16 = vsub.f32 %v5577_v39, %v5768_v51 }
 0x36b   : > { %v1211_v32 = vmul.f32 1.442695, %v1141_v29  ;;  %v1215_v57 = vmul.f32 1.442695, %v1143_v49  ;;  %v8248_v26 = vld [vmem:[#allocation52_spill] sm:$0xff]  ;;  %v1153_v29 = vsub.f32 %v5581_v48, %v5768_v51  ;;  %v1155_v18 = vsub.f32 %v5587_v4, %v5768_v51 }
 0x36c   : > { %4452 = vpow2.f32 %v1199_v44  ;;  %v1149_v37 = vsub.f32 %v8248_v26, %v5768_v51  ;;  %v1219_v1 = vmul.f32 1.442695, %v1145_v14  ;;  %v1223_v40 = vmul.f32 1.442695, %v1147_v63 }
 0x36d   : > { %4454 = vpow2.f32 %v1203_v19  ;;  %v1131_v49 = vrot.slane %v1130_v25, 2  ;;  %v1159_v9 = vsub.f32 %v5597_v0, %v5768_v51  ;;  %v1231_v48 = vmul.f32 1.442695, %v1151_v16 }
 0x36e   : > { %4456 = vpow2.f32 %v1207_v52  ;;  %v8251_v52 = vld [vmem:[#allocation55_spill] sm:$0xff]  ;;  %v1227_v39 = vmul.f32 1.442695, %v1149_v37  ;;  %v1161_v4 = vsub.f32 %v5601_v42, %v5768_v51  ;;  %v1163_v26 = vsub.f32 %v5607_v28, %v5768_v51 }
 0x36f   : > { %4458 = vpow2.f32 %v1211_v32  ;;  %v1157_v54 = vsub.f32 %v8251_v52, %v5768_v51  ;;  %v1132_v37 = vmax.f32 %v1130_v25, %v1131_v49  ;;  %v1165_v0 = vsub.f32 %v5611_v30, %v5768_v51  ;;  %v8253_v25 = vld [vmem:[#allocation59_spill] sm:$0xff] }
 0x370   : > { %4460 = vpow2.f32 %v1215_v57  ;;  %v1235_v57 = vmul.f32 1.442695, %v1153_v29  ;;  %v1247_v42 = vmul.f32 1.442695, %v1159_v9  ;;  %v1169_v28 = vsub.f32 %v5619_v12, %v5768_v51  ;;  %v8254_v9 = vld [vmem:[#allocation60_spill] sm:$0xff] }
 0x371   : > { %4462 = vpow2.f32 %v1219_v1  ;;  %v1243_v16 = vmul.f32 1.442695, %v1157_v54  ;;  %v1251_v49 = vmul.f32 1.442695, %v1161_v4  ;;  %v1255_v30 = vmul.f32 1.442695, %v1163_v26 }
 0x372   : > { %v5789_v61 = vpop.eup %4452  ;;  %4464 = vpow2.f32 %v1223_v40  ;;  %v1175_v12 = vsub.f32 %v5633_v36, %v5768_v51  ;;  %v1179_v26 = vsub.f32 %v5643_v56, %v5768_v51  ;;  %v1195_v56 = vsub.f32 %v5721_v50, %v5768_v51 }
 0x373   : > { %8249 = vst [vmem:[#allocation66_spill] sm:$0xff] %v5789_v61  ;;  %v5793_v44 = vpop.eup %4454  ;;  %4466 = vpow2.f32 %v1227_v39  ;;  %v1133_v39 = vrot.slane %v1132_v37, 1 }
 0x374   : > { %8250 = vst [vmem:[#allocation69_spill] sm:$0xff] %v5793_v44  ;;  %v1327_v19 = vadd.f32 %v5793_v44, %v5789_v61  ;;  %v5801_v14 = vpop.eup %4456  ;;  %v1239_v44 = vmul.f32 1.442695, %v1155_v18  ;;  %4468 = vpow2.f32 %v1231_v48  ;;  %v1171_v18 = vsub.f32 %v8253_v25, %v5768_v51 }
 0x375   : > { %v5808_v63 = vpop.eup %4458  ;;  %4470 = vpow2.f32 %v1235_v57  ;;  %v1173_v48 = vsub.f32 %v8254_v9, %v5768_v51 }
 0x376   : > { %v1328_v32 = vadd.f32 %v5801_v14, %v1327_v19  ;;  %8252 = vst [vmem:[#allocation71_spill] sm:$0xff] %v5808_v63  ;;  %v5815_v52 = vpop.eup %4460  ;;  %v1167_v19 = vsub.f32 %v5615_v31, %v5768_v51  ;;  %4472 = vpow2.f32 %v1239_v44  ;;  %v1177_v44 = vsub.f32 %v5637_v47, %v5768_v51 }
 0x377   : > { %v5822_v40 = vpop.eup %4462  ;;  %4474 = vpow2.f32 %v1243_v16  ;;  %v5845_v16 = vmax.f32 %v1132_v37, %v1133_v39  ;;  %v1275_v47 = vmul.f32 1.442695, %v1173_v48  ;;  %v1197_v37 = vsub.f32 %v5742_v46, %v5768_v51 }
 0x378   : > { %v1329_v1 = vadd.f32 %v5808_v63, %v1328_v32  ;;  %v5829_v31 = vpop.eup %4464  ;;  %v1259_v32 = vmul.f32 1.442695, %v1165_v0  ;;  %4476 = vpow2.f32 %v1247_v42  ;;  %v1271_v0 = vmul.f32 1.442695, %v1171_v18 }
 0x379   : > { %v5836_v4 = vpop.eup %4466  ;;  %4478 = vpow2.f32 %v1251_v49  ;;  %v1191_v42 = vsub.f32 %v5693_v21, %v5768_v51  ;;  %v1287_v21 = vmul.f32 1.442695, %v1179_v26  ;;  %v1136_v50 = vsub.f32 %v5655_v59, %v5845_v16 }
 0x37a   : > { %v1330_v29 = vadd.f32 %v5815_v52, %v1329_v1  ;;  %v1263_v1 = vmul.f32 1.442695, %v1167_v19  ;;  %v5842_v25 = vpop.eup %4468  ;;  %4480 = vpow2.f32 %v1255_v30  ;;  %v1283_v30 = vmul.f32 1.442695, %v1177_v44 }
 0x37b   : > { %v5847_v19 = vpop.eup %4470  ;;  %4482 = vpow2.f32 %v1259_v32  ;;  %v1311_v32 = vmul.f32 1.442695, %v1191_v42  ;;  %v1193_v46 = vsub.f32 %v5705_v34, %v5768_v51  ;;  %v1319_v44 = vmul.f32 1.442695, %v1195_v56  ;;  %v8257_v56 = vld [vmem:[#allocation70_spill] sm:$0xff] }
 0x37c   : > { %v1331_v54 = vadd.f32 %v5822_v40, %v1330_v29  ;;  %v1267_v29 = vmul.f32 1.442695, %v1169_v28  ;;  %4484 = vpow2.f32 %v1263_v1  ;;  %v1279_v28 = vmul.f32 1.442695, %v1175_v12  ;;  %v8255_v12 = vld [vmem:[#allocation65_spill] sm:$0xff] }
 0x37d   : > { %v1138_v1 = vsub.f32 %v8255_v12, %v5845_v16  ;;  %v1323_v59 = vmul.f32 1.442695, %v1197_v37  ;;  %v1201_v34 = vmul.f32 1.442695, %v1136_v50  ;;  %v1189_v12 = vsub.f32 %v5679_v45, %v5768_v51 }
 0x37e   : > { %v1332_v57 = vadd.f32 %v5829_v31, %v1331_v54  ;;  %v5851_v54 = vpop.eup %4472  ;;  %4486 = vpow2.f32 %v1267_v29  ;;  %v1144_v50 = vsub.f32 %v5699_v6, %v5845_v16  ;;  %v1185_v6 = vsub.f32 %v5667_v20, %v5768_v51 }
 0x37f   : > { %v5856_v49 = vpop.eup %4474  ;;  %4488 = vpow2.f32 %v1271_v0  ;;  %v8256_v0 = vld [vmem:[#allocation68_spill] sm:$0xff] }
 0x380   : > { %v1333_v36 = vadd.f32 %v5836_v4, %v1332_v57  ;;  %v5860_v39 = vpop.eup %4476  ;;  %4490 = vpow2.f32 %v1275_v47  ;;  %v1187_v47 = vsub.f32 %v5673_v35, %v5768_v51  ;;  %v1299_v63 = vmul.f32 1.442695, %v1185_v6 }
 0x381   : > { %v5865_v48 = vpop.eup %4478  ;;  %4492 = vpow2.f32 %v1279_v28 }
 0x382   : > { %v1334_v18 = vadd.f32 %v5842_v25, %v1333_v36  ;;  %v5869_v57 = vpop.eup %4480  ;;  %4494 = vpow2.f32 %v1283_v30  ;;  %v1140_v36 = vsub.f32 %v8256_v0, %v5845_v16  ;;  %v1205_v30 = vmul.f32 1.442695, %v1138_v1 }
 0x383   : > { %v5874_v29 = vpop.eup %4482  ;;  %4496 = vpow2.f32 %v1287_v21  ;;  %v1315_v0 = vmul.f32 1.442695, %v1193_v46  ;;  %v1183_v1 = vsub.f32 %v5659_v62, %v5768_v51  ;;  %v1146_v46 = vsub.f32 %v5715_v24, %v5845_v16 }
 0x384   : > { %v1335_v9 = vadd.f32 %v5847_v19, %v1334_v18  ;;  %v5878_v42 = vpop.eup %4484  ;;  %4498 = vpow2.f32 %v1311_v32  ;;  %v1209_v32 = vmul.f32 1.442695, %v1140_v36  ;;  %v1307_v36 = vmul.f32 1.442695, %v1189_v12 }
 0x385   : > { %v5883_v28 = vpop.eup %4486  ;;  %4500 = vpow2.f32 %v1319_v44  ;;  %v1217_v24 = vmul.f32 1.442695, %v1144_v50  ;;  %v1295_v11 = vmul.f32 1.442695, %v1183_v1  ;;  %v1221_v50 = vmul.f32 1.442695, %v1146_v46 }
 0x386   : > { %v1336_v26 = vadd.f32 %v5851_v54, %v1335_v9  ;;  %v1142_v9 = vsub.f32 %v8257_v56, %v5845_v16  ;;  %v5887_v37 = vpop.eup %4488  ;;  %4502 = vpow2.f32 %v1323_v59  ;;  %v1303_v56 = vmul.f32 1.442695, %v1187_v47 }
 0x387   : > { %v5892_v21 = vpop.eup %4490  ;;  %4504 = vpow2.f32 %v1201_v34  ;;  %v8261_v34 = vld [vmem:[#allocation53_spill] sm:$0xff] }
 0x388   : > { %v1337_v18 = vadd.f32 %v5856_v49, %v1336_v26  ;;  %v5896_v26 = vpop.eup %4492  ;;  %4506 = vpow2.f32 %v1205_v30  ;;  %v1213_v44 = vmul.f32 1.442695, %v1142_v9  ;;  %v1181_v9 = vsub.f32 %v5651_v60, %v5768_v51 }
 0x389   : > { %v5901_v45 = vpop.eup %4494  ;;  %4508 = vpow2.f32 %v1315_v0  ;;  %v8260_v0 = vld [vmem:[#allocation32_spill] sm:$0xff]  ;;  %v1415_v51 = vpack.c.bf16 %v5874_v29, %v5869_v57 }
 0x38a   : > { %v1338_v35 = vadd.f32 %v5860_v39, %v1337_v18  ;;  %v5905_v59 = vpop.eup %4496  ;;  %v8258_v18 = vld [vmem:[#allocation30_spill] sm:$0xff]  ;;  %4510 = vpow2.f32 %v1209_v32 }
 0x38b   : > { %v5910_v47 = vpop.eup %4498  ;;  %4512 = vpow2.f32 %v1303_v56  ;;  %v1152_v56 = vsub.f32 %v5579_v27, %v5845_v16  ;;  %1453 = vmatpush.bf16.msrb.mxu2 %v1415_v51  ;;  %v8262_v27 = vld [vmem:[#allocation54_spill] sm:$0xff] }
 0x38c   : > { %v1339_v61 = vadd.f32 %v5865_v48, %v1338_v35  ;;  %v1148_v35 = vsub.f32 %v5567_v41, %v5845_v16  ;;  %v5915_v30 = vpop.eup %4500  ;;  %v1150_v41 = vsub.f32 %v8261_v34, %v5845_v16  ;;  %4514 = vpow2.f32 %v1213_v44 }
 0x38d   : > { %v5920_v12 = vpop.eup %4502  ;;  %4516 = vpow2.f32 %v1307_v36  ;;  %v1291_v34 = vmul.f32 1.442695, %v1181_v9  ;;  %v1233_v51 = vmul.f32 1.442695, %v1152_v56 }
 0x38e   : > { %v1340_v62 = vadd.f32 %v5869_v57, %v1339_v61  ;;  %v8259_v61 = vld [vmem:[#allocation31_spill] sm:$0xff]  ;;  %v5928_v32 = vpop.eup %4504  ;;  %4518 = vpow2.f32 %v1217_v24  ;;  %v1431_v44 = vpack.c.bf16 %v5920_v12, %v5915_v30  ;;  %v1229_v24 = vmul.f32 1.442695, %v1150_v41 }
 0x38f   : > { %v5924_v2 = vpack.c.bf16 %v8260_v0, %v8259_v61  ;;  %v5933_v1 = vpop.eup %4506  ;;  %4520 = vpow2.f32 %v1295_v11  ;;  %v1413_v61 = vpack.c.bf16 %v5865_v48, %v5860_v39  ;;  %v8264_v48 = vld [vmem:[#allocation57_spill] sm:$0xff] }
 0x390   : > { %v1341_v20 = vadd.f32 %v5874_v29, %v1340_v62  ;;  %v1225_v62 = vmul.f32 1.442695, %v1148_v35  ;;  %v5939_v46 = vpop.eup %4508  ;;  %v1364_v36 = vadd.f32 %v5933_v1, %v5928_v32  ;;  %v1154_v35 = vsub.f32 %v8262_v27, %v5845_v16  ;;  %1472 = vmatpush.bf16.msrb.mxu3 %v1431_v44 }
 0x391   : > { %v5944_v57 = vpop.eup %4510  ;;  %4522 = vpow2.f32 %v1221_v50  ;;  %v1429_v41 = vpack.c.bf16 %v5939_v46, %v5910_v47  ;;  %1454 = vmatpush.bf16.msrb.mxu2 %v1413_v61  ;;  %v1162_v29 = vsub.f32 %v8264_v48, %v5845_v16 }
 0x392   : > { %v1342_v60 = vadd.f32 %v5878_v42, %v1341_v20  ;;  %v5949_v20 = vpop.eup %4512  ;;  %4524 = vpow2.f32 %v1299_v63  ;;  %v1365_v9 = vadd.f32 %v5944_v57, %v1364_v36 }
 0x393   : > { %v5955_v0 = vpop.eup %4514  ;;  %4526 = vpow2.f32 %v1225_v62  ;;  %v1237_v62 = vmul.f32 1.442695, %v1154_v35 }
 0x394   : > { %v1343_v6 = vadd.f32 %v5883_v28, %v1342_v60  ;;  %v1156_v60 = vsub.f32 %v5589_v23, %v5845_v16  ;;  %v5961_v50 = vpop.eup %4516  ;;  %4528 = vpow2.f32 %v1291_v34  ;;  %v8263_v23 = vld [vmem:[#allocation56_spill] sm:$0xff]  ;;  %1473 = vmatpush.bf16.msrb.mxu3 %v1429_v41  ;;  %v1160_v34 = vsub.f32 %v5599_v22, %v5845_v16 }
 0x395   : > { %v5966_v39 = vpop.eup %4518  ;;  %v1158_v56 = vsub.f32 %v8263_v23, %v5845_v16  ;;  %4530 = vpow2.f32 %v1229_v24  ;;  %v1427_v35 = vpack.c.bf16 %v5961_v50, %v5949_v20  ;;  %v1164_v22 = vsub.f32 %v5609_v58, %v5845_v16 }
 0x396   : > { %v1344_v11 = vadd.f32 %v5887_v37, %v1343_v6  ;;  %v1366_v6 = vadd.f32 %v5955_v0, %v1365_v9  ;;  %v4521_v36 = vpop.eup %4520  ;;  %v1411_v9 = vpack.c.bf16 %v5856_v49, %v5851_v54  ;;  %4532 = vpow2.f32 %v1233_v51  ;;  %v8265_v51 = vld [vmem:[#allocation58_spill] sm:$0xff] }
 0x397   : > { %v5977_v61 = vpop.eup %4522  ;;  %v1241_v24 = vmul.f32 1.442695, %v1156_v60  ;;  %v1168_v60 = vsub.f32 %v5617_v8, %v5845_v16  ;;  %v1170_v48 = vsub.f32 %v8265_v51, %v5845_v16  ;;  %4534 = vpow2.f32 %v1237_v62 }
 0x398   : > { %v1345_v44 = vadd.f32 %v5892_v21, %v1344_v11  ;;  %v1367_v11 = vadd.f32 %v5966_v39, %v1366_v6  ;;  %v4525_v41 = vpop.eup %4524  ;;  %v1166_v6 = vsub.f32 %v5613_v10, %v5845_v16  ;;  %1455 = vmatpush.bf16.msrb.mxu2 %v1411_v9  ;;  %v1245_v23 = vmul.f32 1.442695, %v1158_v56  ;;  %1474 = vmatpush.bf16.msrb.mxu3 %v1427_v35 }
 0x399   : > { %v5989_v49 = vpop.eup %4526  ;;  %v1172_v10 = vsub.f32 %v5625_v17, %v5845_v16  ;;  %v1409_v9 = vpack.c.bf16 %v5847_v19, %v5842_v25  ;;  %v1174_v8 = vsub.f32 %v5629_v38, %v5845_v16  ;;  %4536 = vpow2.f32 %v1241_v24 }
 0x39a   : > { %v1346_v27 = vadd.f32 %v5896_v26, %v1345_v44  ;;  %v1368_v54 = vadd.f32 %v5977_v61, %v1367_v11  ;;  %v1249_v62 = vmul.f32 1.442695, %v1160_v34  ;;  %v1425_v56 = vpack.c.bf16 %v4525_v41, %v4521_v36 }
 0x39b   : > { %v1253_v51 = vmul.f32 1.442695, %v1162_v29  ;;  %v1196_v19 = vsub.f32 %v5752_v3, %v5845_v16  ;;  %4538 = vpow2.f32 %v1245_v23  ;;  %v1257_v38 = vmul.f32 1.442695, %v1164_v22 }
 0x39c   : > { %v1347_v44 = vadd.f32 %v5901_v45, %v1346_v27  ;;  %v4529_v27 = vpop.eup %4528  ;;  %v1369_v11 = vadd.f32 %v5989_v49, %v1368_v54  ;;  %1456 = vmatpush.bf16.msrb.mxu2 %v1409_v9  ;;  %1475 = vmatpush.bf16.msrb.mxu3 %v1425_v56  ;;  %v1261_v24 = vmul.f32 1.442695, %v1166_v6  ;;  %v1407_v29 = vpack.c.bf16 %v5836_v4, %v5829_v31 }
 0x39d   : > { %v6001_v63 = vpop.eup %4530  ;;  %v1192_v9 = vsub.f32 %v5709_v43, %v5845_v16  ;;  %v1198_v25 = vsub.f32 %v5764_v5, %v5845_v16  ;;  %4540 = vpow2.f32 %v1249_v62  ;;  %v1423_v3 = vpack.c.bf16 %v4529_v27, %v5905_v59 }
 0x39e   : > { %v1348_v58 = vadd.f32 %v5905_v59, %v1347_v44  ;;  %v1176_v44 = vsub.f32 %v5635_v13, %v5845_v16  ;;  %v1370_v17 = vadd.f32 %v6001_v63, %v1369_v11  ;;  %v6008_v54 = vpop.eup %4532  ;;  %4542 = vpow2.f32 %v1253_v51 }
 0x39f   : > { %v6017_v11 = vpop.eup %4534  ;;  %v1194_v31 = vsub.f32 %v5732_v15, %v5845_v16  ;;  %4544 = vpow2.f32 %v1257_v38  ;;  %v1269_v4 = vmul.f32 1.442695, %v1170_v48  ;;  %v1321_v43 = vmul.f32 1.442695, %v1196_v19  ;;  %v8267_v38 = vld [vmem:[#allocation64_spill] sm:$0xff] }
 0x3a0   : > { %v1349_v35 = vadd.f32 %v4529_v27, %v1348_v58  ;;  %v1371_v58 = vadd.f32 %v6008_v54, %v1370_v17  ;;  %1457 = vmatpush.bf16.msrb.mxu2 %v1407_v29  ;;  %v6025_v23 = vpop.eup %4536  ;;  %1476 = vmatpush.bf16.msrb.mxu3 %v1423_v3  ;;  %4546 = vpow2.f32 %v1261_v24  ;;  %v1180_v27 = vsub.f32 %v5645_v55, %v5845_v16 }
 0x3a1   : > { %v1188_v15 = vsub.f32 %v5677_v33, %v5845_v16  ;;  %v1325_v62 = vmul.f32 1.442695, %v1198_v25  ;;  %v1421_v48 = vpack.c.bf16 %v5901_v45, %v5896_v26  ;;  %v1313_v56 = vmul.f32 1.442695, %v1192_v9  ;;  %v8266_v45 = vld [vmem:[#allocation71_spill] sm:$0xff] }
 0x3a2   : > { %v1350_v34 = vadd.f32 %v4521_v36, %v1349_v35  ;;  %v1265_v36 = vmul.f32 1.442695, %v1168_v60  ;;  %v1372_v6 = vadd.f32 %v6017_v11, %v1371_v58  ;;  %v6033_v60 = vpop.eup %4538  ;;  %v1273_v51 = vmul.f32 1.442695, %v1172_v10  ;;  %v8268_v9 = vld [vmem:[#allocation67_spill] sm:$0xff] }
 0x3a3   : > { %v1317_v17 = vmul.f32 1.442695, %v1194_v31  ;;  %v1277_v24 = vmul.f32 1.442695, %v1174_v8  ;;  %v1305_v29 = vmul.f32 1.442695, %v1188_v15  ;;  %v1186_v3 = vsub.f32 %v8268_v9, %v5845_v16 }
 0x3a4   : > { %v1351_v22 = vadd.f32 %v4525_v41, %v1350_v34  ;;  %v1373_v59 = vadd.f32 %v6025_v23, %v1372_v6  ;;  %v1405_v41 = vpack.c.bf16 %v5822_v40, %v5815_v52  ;;  %4548 = vpow2.f32 %v1265_v36  ;;  %v6043_v52 = vpop.eup %4540  ;;  %1477 = vmatpush.bf16.msrb.mxu3 %v1421_v48  ;;  %v8270_v36 = vld [vmem:[#allocation69_spill] sm:$0xff] }
 0x3a5   : > { %v1190_v40 = vsub.f32 %v5691_v53, %v5845_v16  ;;  %4550 = vpow2.f32 %v1269_v4  ;;  %v4543_v33 = vpop.eup %4542  ;;  %v1184_v34 = vsub.f32 %v8267_v38, %v5845_v16  ;;  %v1419_v53 = vpack.c.bf16 %v5892_v21, %v5887_v37 }
 0x3a6   : > { %v1352_v5 = vadd.f32 %v5949_v20, %v1351_v22  ;;  %v1374_v35 = vadd.f32 %v6033_v60, %v1373_v59  ;;  %1458 = vmatpush.bf16.msrb.mxu2 %v1405_v41  ;;  %4552 = vpow2.f32 %v1321_v43  ;;  %v4545_v19 = vpop.eup %4544  ;;  %v8271_v4 = vsub.f32 %v5639_v7, %v5845_v16 }
 0x3a7   : > { %4554 = vpow2.f32 %v1325_v62  ;;  %v4547_v10 = vpop.eup %4546  ;;  %v1309_v22 = vmul.f32 1.442695, %v1190_v40  ;;  %v1297_v59 = vmul.f32 1.442695, %v1184_v34  ;;  %v8272_v62 = vunpack.c.l.b16 %v8258_v18 }
 0x3a8   : > { %v1353_v20 = vadd.f32 %v5961_v50, %v1352_v5  ;;  %v1375_v26 = vadd.f32 %v6043_v52, %v1374_v35  ;;  %v1403_v50 = vpack.c.bf16 %v8266_v45, %v5801_v14  ;;  %4556 = vpow2.f32 %v1313_v56  ;;  %1478 = vmatpush.bf16.msrb.mxu3 %v1419_v53  ;;  %v8277_v53 = vld [vmem:[#allocation34_spill] sm:$0xff] }
 0x3a9   : > { %v1281_v14 = vmul.f32 1.442695, %v1176_v44  ;;  %4558 = vpow2.f32 %v1317_v17  ;;  %v1285_v13 = vmul.f32 1.442695, %v8271_v4  ;;  %v1417_v44 = vpack.c.bf16 %v5883_v28, %v5878_v42  ;;  %v8274_v42 = vld [vmem:[#allocation63_spill] sm:$0xff] }
 0x3aa   : > { %v1354_v25 = vadd.f32 %v5910_v47, %v1353_v20  ;;  %v1376_v47 = vadd.f32 %v4543_v33, %v1375_v26  ;;  %1459 = vmatpush.bf16.msrb.mxu2 %v1403_v50  ;;  %v6061_v8 = vpop.eup %4548  ;;  %4560 = vpow2.f32 %v1273_v51  ;;  %v1416_v43 = vpack.c.bf16 %v4547_v10, %v4545_v19 }
 0x3ab   : > { %v6066_v31 = vpop.eup %4550  ;;  %4562 = vpow2.f32 %v1277_v24  ;;  %v8273_v7 = vunpack.c.l.b16 %v5924_v2  ;;  %v1182_v28 = vsub.f32 %v8274_v42, %v5845_v16  ;;  %v1301_v20 = vmul.f32 1.442695, %v1186_v3  ;;  %v8281_v42 = vld [vmem:[#allocation13_spill] sm:$0xff] }
 0x3ac   : > { %v1355_v58 = vadd.f32 %v5939_v46, %v1354_v25  ;;  %v1377_v21 = vadd.f32 %v4545_v19, %v1376_v47  ;;  %v8269_v46 = vld [vmem:[#allocation66_spill] sm:$0xff]  ;;  %v6073_v5 = vpop.eup %4552  ;;  %4564 = vpow2.f32 %v1305_v29  ;;  %1479 = vmatpush.bf16.msrb.mxu3 %v1417_v44  ;;  %v8275_v51 = vunpack.c.h.b16 %v8258_v18 }
 0x3ad   : > { %v1401_v6 = vpack.c.bf16 %v8270_v36, %v8269_v46  ;;  %v6078_v15 = vpop.eup %4554  ;;  %v6084_v48 = vpack.c.b16 %v8273_v7, %v8272_v62  ;;  %4566 = vpow2.f32 %v1309_v22  ;;  %v8276_v17 = vunpack.c.h.b16 %v5924_v2  ;;  %v8280_v7 = vld [vmem:[#allocation12_spill] sm:$0xff] }
 0x3ae   : > { %v1356_v37 = vadd.f32 %v5915_v30, %v1355_v58  ;;  %v1378_v41 = vadd.f32 %v4547_v10, %v1377_v21  ;;  %4568 = vpow2.f32 %v1281_v14  ;;  %v1432_v35 = vpack.c.bf16 %v6078_v15, %v6073_v5  ;;  %v8278_v10 = vld [vmem:[#allocation35_spill] sm:$0xff] }
 0x3af   : > { %1460 = vmatpush.bf16.msrb.mxu2 %v1401_v6  ;;  %v6099_v25 = vpack.c.b16 %v8276_v17, %v8275_v51  ;;  %4570 = vpow2.f32 %v1285_v13  ;;  %v1289_v26 = vmul.f32 1.442695, %v1180_v27  ;;  %v1414_v45 = vpack.c.bf16 %v4543_v33, %v6043_v52 }
 0x3b0   : > { %v6076_v30 = vadd.f32 %v5920_v12, %v1356_v37  ;;  %v6088_v12 = vpop.eup %4556  ;;  %v1379_v56 = vadd.f32 %v6061_v8, %v1378_v41  ;;  %4572 = vpow2.f32 %v1297_v59  ;;  %1510 = vmatpush.bf16.msra.mxu3 %v1432_v35  ;;  %v1293_v2 = vmul.f32 1.442695, %v1182_v28 }
 0x3b1   : > { %v6093_v40 = vpop.eup %4558  ;;  %4574 = vpow2.f32 %v1301_v20  ;;  %1480 = vmatmul.bf16.vlgmr.msrb.gmra.mxu3 %v6099_v25  ;;  %v1412_v52 = vpack.c.bf16 %v6033_v60, %v6025_v23  ;;  %v757_v58 = vpack.c.bf16 %v8278_v10, %v8277_v53  ;;  %v1410_v14 = vpack.c.bf16 %v6017_v11, %v6008_v54  ;;  %v8279_v60 = vld [vmem:[#allocation33_spill] sm:$0xff] }
 0x3b2   : > { %1461 = vmatmul.bf16.vlgmr.msrb.gmra.mxu2 %v6084_v48  ;;  %v6106_v50 = vpop.eup %4560  ;;  %v1380_v19 = vadd.f32 %v6066_v31, %v1379_v56  ;;  %v1430_v16 = vpack.c.bf16 %v6093_v40, %v6088_v12  ;;  %4576 = vpow2.f32 %v1289_v26  ;;  %v1441_v37 = vunpack.c.l.b16 %v8279_v60  ;;  %v8282_v56 = vld [vmem:[#allocation10_spill] sm:$0xff]  ;;  %v8284_v26 = vld [vmem:[#allocation8_spill] sm:$0xff] }
 0x3b3   : > { %1491 = vmatpush.bf16.msra.mxu2 %v1416_v43  ;;  %v6109_v18 = vpop.eup %4562  ;;  %4578 = vpow2.f32 %v1293_v2  ;;  %v1443_v21 = vunpack.c.l.b16 %v757_v58  ;;  %v1442_v4 = vunpack.c.h.b16 %v8279_v60  ;;  %v1444_v13 = vunpack.c.h.b16 %v757_v58 }
 0x3b4   : > { %v4565_v38 = vpop.eup %4564  ;;  %v1381_v55 = vadd.f32 %v6106_v50, %v1380_v19  ;;  %1511 = vmatpush.bf16.msra.mxu3 %v1430_v16  ;;  %v1408_v44 = vpack.c.bf16 %v6001_v63, %v5989_v49  ;;  %v1406_v62 = vpack.c.bf16 %v5977_v61, %v5966_v39  ;;  %v729_v28 = vpack.c.bf16 %v8281_v42, %v8280_v7  ;;  %v8283_v63 = vld [vmem:[#allocation11_spill] sm:$0xff]  ;;  %v8286_v61 = vld [vmem:[#allocation6_spill] sm:$0xff] }
 0x3b5   : > { %v4567_v27 = vpop.eup %4566  ;;  %v1447_v54 = vpack.c.b16 %v1443_v21, %v1441_v37  ;;  %v1448_v41 = vpack.c.b16 %v1444_v13, %v1442_v4  ;;  %v728_v49 = vpack.c.bf16 %v8283_v63, %v8282_v56  ;;  %v1404_v17 = vpack.c.bf16 %v5955_v0, %v5944_v57 }
 0x3b6   : > { %v4569_v33 = vpop.eup %4568  ;;  %v1382_v34 = vadd.f32 %v6109_v18, %v1381_v55  ;;  %v1428_v9 = vpack.c.bf16 %v4567_v27, %v4565_v38  ;;  %v1601_v2 = vunpack.c.l.b16 %v729_v28  ;;  %v8287_v55 = vld [vmem:[#allocation7_spill] sm:$0xff]  ;;  %v1402_v57 = vpack.c.bf16 %v5933_v1, %v5928_v32 }
 0x3b7   : > { %1492 = vmatpush.bf16.msra.mxu2 %v1414_v45  ;;  %v4571_v24 = vpop.eup %4570  ;;  %v8285_v45 = vld [vmem:[#allocation9_spill] sm:$0xff]  ;;  %v726_v16 = vpack.c.bf16 %v8287_v55, %v8286_v61  ;;  %v1358_v37 = vrot.slane %v6076_v30, 4 }
 0x3b8   : > { %v4573_v29 = vpop.eup %4572  ;;  %v1383_v47 = vadd.f32 %v4569_v33, %v1382_v34  ;;  %1512 = vmatpush.bf16.msra.mxu3 %v1428_v9  ;;  %v1422_v51 = vpack.c.bf16 %v4571_v24, %v4569_v33  ;;  %v727_v19 = vpack.c.bf16 %v8285_v45, %v8284_v26  ;;  %v1602_v33 = vunpack.c.h.b16 %v729_v28 }
 0x3b9   : > { %v4575_v3 = vpop.eup %4574  ;;  %v1595_v10 = vunpack.c.l.b16 %v726_v16  ;;  %v1596_v1 = vunpack.c.h.b16 %v726_v16 }
 0x3ba   : > { %v1384_v22 = vadd.f32 %v4571_v24, %v1383_v47  ;;  %v4577_v23 = vpop.eup %4576  ;;  %v1426_v36 = vpack.c.bf16 %v4575_v3, %v4573_v29  ;;  %v1597_v0 = vunpack.c.l.b16 %v727_v19  ;;  %v1575_v47 = vpop.trf.xlu1 }
 0x3bb   : > { %1493 = vmatpush.bf16.msra.mxu2 %v1412_v52  ;;  %v4579_v6 = vpop.eup %4578  ;;  %v1599_v52 = vunpack.c.l.b16 %v728_v49 }
 0x3bc   : > { %v1385_v46 = vadd.f32 %v4577_v23, %v1384_v22  ;;  %1513 = vmatpush.bf16.msra.mxu3 %v1426_v36  ;;  %v1424_v59 = vpack.c.bf16 %v4579_v6, %v4577_v23  ;;  %v1603_v32 = vpack.c.b16 %v1597_v0, %v1595_v10  ;;  %v1359_v36 = vadd.f32 %v1358_v37, %v6076_v30 }
 0x3bd   : > { %v1605_v24 = vpack.c.b16 %v1601_v2, %v1599_v52 }
 0x3be   : > { %v1386_v43 = vadd.f32 %v4579_v6, %v1385_v46 }
 0x3bf   : > { %1494 = vmatpush.bf16.msra.mxu2 %v1410_v14 }
 0x3c0   : > { %v1387_v11 = vadd.f32 %v4573_v29, %v1386_v43  ;;  %1514 = vmatpush.bf16.msra.mxu3 %v1424_v59  ;;  %v1598_v29 = vunpack.c.h.b16 %v727_v19 }
 0x3c1   : > { %1485 = vmatmul.bf16.gmra.mxu3 %v1448_v41 }
 0x3c2   : > { %1466 = vmatmul.bf16.gmra.mxu2 %v1447_v54  ;;  %v1388_v20 = vadd.f32 %v4575_v3, %v1387_v11 }
 0x3c3   : > { %1495 = vmatpush.bf16.msra.mxu2 %v1408_v44  ;;  %v1360_v44 = vrot.slane %v1359_v36, 2 }
 0x3c4   : > { %v1389_v35 = vadd.f32 %v4565_v38, %v1388_v20  ;;  %1515 = vmatpush.bf16.msra.mxu3 %v1422_v51  ;;  %v1420_v38 = vpack.c.bf16 %v6109_v18, %v6106_v50 }
 0x3c5   : > { %v1361_v11 = vadd.f32 %v1360_v44, %v1359_v36 }
 0x3c6   : > { %v1390_v39 = vadd.f32 %v4567_v27, %v1389_v35  ;;  %v1600_v27 = vunpack.c.h.b16 %v728_v49 }
 0x3c7   : > { %1496 = vmatpush.bf16.msra.mxu2 %v1406_v62  ;;  %v1362_v62 = vrot.slane %v1361_v11, 1 }
 0x3c8   : > { %v1391_v34 = vadd.f32 %v6088_v12, %v1390_v39  ;;  %1516 = vmatpush.bf16.msra.mxu3 %v1420_v38  ;;  %v1418_v12 = vpack.c.bf16 %v6066_v31, %v6061_v8  ;;  %v1606_v50 = vpack.c.b16 %v1602_v33, %v1600_v27 }
 0x3c9   : > { %v1363_v20 = vadd.f32 %v1362_v62, %v1361_v11 }
 0x3ca   : > { %v1392_v53 = vadd.f32 %v6093_v40, %v1391_v34  ;;  %v1604_v40 = vpack.c.b16 %v1598_v29, %v1596_v1 }
 0x3cb   : > { %1497 = vmatpush.bf16.msra.mxu2 %v1404_v17  ;;  %4580 = vrcp.f32 %v1363_v20 }
 0x3cc   : > { %v1393_v58 = vadd.f32 %v6073_v5, %v1392_v53  ;;  %1517 = vmatpush.bf16.msra.mxu3 %v1418_v12  ;;  %v6150_v5 = vpop.trf.xlu1 }
 0x3ce   : > { %v1394_v18 = vadd.f32 %v6078_v15, %v1393_v58 }
 0x3cf   : > { %1498 = vmatpush.bf16.msra.mxu2 %v1402_v57 }
 0x3d0   : > { %1754 = vmatpush.bf16.msrb.mxu3 %v1606_v50  ;;  %v1395_v21 = vrot.slane %v1394_v18, 4 }
 0x3d1   : > { %1518 = vmatmul.bf16.vlgmr.msra.gmra.mxu3 %v6099_v25  ;;  %v4581_v17 = vpop.eup %4580 }
 0x3d2   : > { %1499 = vmatmul.bf16.vlgmr.msra.gmra.mxu2 %v6084_v48  ;;  %v1396_v4 = vadd.f32 %v1395_v21, %v1394_v18 }
 0x3d3   : > { %1665 = vmatpush.bf16.msrb.mxu2 %v1605_v24 }
 0x3d4   : > { %1755 = vmatpush.bf16.msrb.mxu3 %v1604_v40  ;;  %v1577_v8 = vpop.trf.xlu1  ;;  %v1397_v43 = vrot.slane %v1396_v4, 2 }
 0x3d7   : > { %1666 = vmatpush.bf16.msrb.mxu2 %v1603_v32 }
 0x3dc   : > { %v6152_v31 = vpop.trf.xlu1 }
 0x3e1   : > { %1523 = vmatmul.bf16.gmra.mxu3 %v1448_v41  ;;  %v1398_v41 = vadd.f32 %v1397_v43, %v1396_v4 }
 0x3e2   : > { %1504 = vmatmul.bf16.gmra.mxu2 %v1447_v54 }
 0x3e3   : > { %v1399_v42 = vrot.slane %v1398_v41, 1 }
 0x3e4   : > { %v1579_v15 = vpop.trf.xlu1 }
 0x3e5   : > { %v1400_v56 = vadd.f32 %v1399_v42, %v1398_v41 }
 0x3e7   : > { %4582 = vrcp.f32 %v1400_v56 }
 0x3ec   : > { %v6158_v48 = vpop.trf.xlu1 }
 0x3ed   : > { %v4583_v45 = vpop.eup %4582 }
 0x3f1   : > { %4239 = vmatmul.msk.bf16.vlgmr.msrb.gmra.mxu3 %vm834_vm2, %v1575_v47 }
 0x3f2   : > { %4223 = vmatmul.msk.bf16.vlgmr.msrb.gmra.mxu2 %vm834_vm2, %v1575_v47 }
 0x3f4   : > { %v1581_v9 = vpop.trf.xlu1 }
 0x3fc   : > { %v6162_v25 = vpop.trf.xlu1 }
 0x401   : > { %4240 = vmatmul.msk.bf16.gmra.mxu3 %vm834_vm2, %v1577_v8 }
 0x402   : > { %4224 = vmatmul.msk.bf16.gmra.mxu2 %vm834_vm2, %v1577_v8 }
 0x404   : > { %v1583_v3 = vpop.trf.xlu1 }
 0x40c   : > { %v6166_v14 = vpop.trf.xlu1 }
 0x411   : > { %4241 = vmatmul.msk.bf16.gmra.mxu3 %vm834_vm2, %v1579_v15 }
 0x412   : > { %4225 = vmatmul.msk.bf16.gmra.mxu2 %vm834_vm2, %v1579_v15 }
 0x414   : > { %v1585_v60 = vpop.trf.xlu1 }
 0x41c   : > { %v6172_v13 = vpop.trf.xlu1 }
 0x421   : > { %4242 = vmatmul.msk.bf16.gmra.mxu3 %vm834_vm2, %v1581_v9 }
 0x422   : > { %4226 = vmatmul.msk.bf16.gmra.mxu2 %vm834_vm2, %v1581_v9 }
 0x424   : > { %v1587_v7 = vpop.trf.xlu1 }
 0x42c   : > { %v6178_v49 = vpop.trf.xlu1 }
 0x431   : > { %4243 = vmatmul.msk.bf16.gmra.mxu3 %vm834_vm2, %v1583_v3 }
 0x432   : > { %4227 = vmatmul.msk.bf16.gmra.mxu2 %vm834_vm2, %v1583_v3 }
 0x434   : > { %v1481_v23 = vpop.f32.mrf.mxu3  ;;  %v1589_v16 = vpop.trf.xlu1 }
 0x435   : > { %v1462_v22 = vpop.f32.mrf.mxu2 }
 0x436   : > { %v1482_v35 = vadd.f32 %v1481_v23, %v1462_v22 }
 0x438   : > { %v1531_v19 = vmul.f32 %v4581_v17, %v1482_v35 }
 0x43c   : > { %v1483_v6 = vpop.f32.mrf.mxu3 }
 0x43d   : > { %v1464_v46 = vpop.f32.mrf.mxu2 }
 0x43e   : > { %v1484_v55 = vadd.f32 %v1483_v6, %v1464_v46 }
 0x440   : > { %v1533_v38 = vmul.f32 %v4581_v17, %v1484_v55 }
 0x441   : > { %4244 = vmatmul.msk.bf16.gmra.mxu3 %vm834_vm2, %v1585_v60 }
 0x442   : > { %4228 = vmatmul.msk.bf16.gmra.mxu2 %vm834_vm2, %v1585_v60 }
 0x444   : > { %v1486_v59 = vpop.f32.mrf.mxu3 }
 0x445   : > { %v1467_v54 = vpop.f32.mrf.mxu2 }
 0x446   : > { %v1487_v24 = vadd.f32 %v1486_v59, %v1467_v54 }
 0x448   : > { %v1535_v10 = vmul.f32 %v4581_v17, %v1487_v24 }
 0x44c   : > { %v1488_v30 = vpop.f32.mrf.mxu3 }
 0x44d   : > { %v1469_v28 = vpop.f32.mrf.mxu2 }
 0x44e   : > { %v1489_v50 = vadd.f32 %v1488_v30, %v1469_v28 }
 0x450   : > { %v1537_v1 = vmul.f32 %v4581_v17, %v1489_v50 }
 0x451   : > { %4245 = vmatmul.msk.bf16.gmra.mxu3 %vm834_vm2, %v1587_v7 }
 0x452   : > { %4229 = vmatmul.msk.bf16.gmra.mxu2 %vm834_vm2, %v1587_v7 }
 0x454   : > { %v1519_v51 = vpop.f32.mrf.mxu3 }
 0x455   : > { %v1500_v63 = vpop.f32.mrf.mxu2 }
 0x456   : > { %v1520_v26 = vadd.f32 %v1519_v51, %v1500_v63 }
 0x458   : > { %v1532_v2 = vmul.f32 %v4583_v45, %v1520_v26 }
 0x45a   : > { %v1539_v39 = vpack.c.bf16 %v1532_v2, %v1531_v19 }
 0x45c   : > { %1543 = vst [vmem:[#allocation2] sm:$0xff] %v1539_v39  ;;  %v1521_v52 = vpop.f32.mrf.mxu3 }
 0x45d   : > { %v1502_v61 = vpop.f32.mrf.mxu2 }
 0x45e   : > { %v1522_v34 = vadd.f32 %v1521_v52, %v1502_v61 }
 0x460   : > { %v1534_v33 = vmul.f32 %v4583_v45, %v1522_v34 }
 0x461   : > { %4246 = vmatmul.msk.bf16.gmra.mxu3 %vm834_vm2, %v1589_v16 }
 0x462   : > { %4230 = vmatmul.msk.bf16.gmra.mxu2 %vm834_vm2, %v1589_v16  ;;  %v1540_v57 = vpack.c.bf16 %v1534_v33, %v1533_v38 }
 0x464   : > { %1544 = vst [vmem:[#allocation2 + $0x8] sm:$0xff] %v1540_v57  ;;  %v1524_v53 = vpop.f32.mrf.mxu3 }
 0x465   : > { %v1505_v0 = vpop.f32.mrf.mxu2 }
 0x466   : > { %v1525_v27 = vadd.f32 %v1524_v53, %v1505_v0 }
 0x468   : > { %v1536_v58 = vmul.f32 %v4583_v45, %v1525_v27 }
 0x46a   : > { %v1541_v12 = vpack.c.bf16 %v1536_v58, %v1535_v10 }
 0x46c   : > { %1545 = vst [vmem:[#allocation2 + $0x10] sm:$0xff] %v1541_v12  ;;  %v1526_v18 = vpop.f32.mrf.mxu3 }
 0x46d   : > { %v1507_v29 = vpop.f32.mrf.mxu2 }
 0x46e   : > { %v1527_v32 = vadd.f32 %v1526_v18, %v1507_v29 }
 0x470   : > { %v1538_v40 = vmul.f32 %v4583_v45, %v1527_v32 }
 0x471   : > { %4247 = vmatmul.msk.bf16.gmra.mxu3 %vm834_vm2, %v6150_v5 }
 0x472   : > { %4231 = vmatmul.msk.bf16.gmra.mxu2 %vm834_vm2, %v6150_v5  ;;  %v1542_v47 = vpack.c.bf16 %v1538_v40, %v1537_v1 }
 0x474   : > { %1546 = vst [vmem:[#allocation2 + $0x18] sm:$0xff] %v1542_v47  ;;  %v6188_v15 = vpop.f32.mrf.mxu3 }
 0x475   : > { %v6186_v8 = vpop.f32.mrf.mxu2 }
 0x47c   : > { %v6192_v3 = vpop.f32.mrf.mxu3 }
 0x47d   : > { %v6190_v9 = vpop.f32.mrf.mxu2  ;;  %8288 = vst [vmem:[#allocation52_spill] sm:$0xff] %v6192_v3 }
 0x481   : > { %4248 = vmatmul.msk.bf16.gmra.mxu3 %vm834_vm2, %v6152_v31 }
 0x482   : > { %4232 = vmatmul.msk.bf16.gmra.mxu2 %vm834_vm2, %v6152_v31 }
 0x484   : > { %v6200_v23 = vpop.f32.mrf.mxu3 }
 0x485   : > { %v6198_v22 = vpop.f32.mrf.mxu2  ;;  %8290 = vst [vmem:[#allocation59_spill] sm:$0xff] %v6200_v23 }
 0x486   : > { %8289 = vst [vmem:[#allocation55_spill] sm:$0xff] %v6198_v22  ;;  %v1837_v12 = vmax.f32 %v6186_v8, %v6198_v22 }
 0x48c   : > { %v6204_v60 = vpop.f32.mrf.mxu3 }
 0x48d   : > { %v6202_v5 = vpop.f32.mrf.mxu2  ;;  %8292 = vst [vmem:[#allocation65_spill] sm:$0xff] %v6204_v60 }
 0x48e   : > { %8291 = vst [vmem:[#allocation60_spill] sm:$0xff] %v6202_v5  ;;  %v1838_v29 = vmax.f32 %v6190_v9, %v6202_v5 }
 0x491   : > { %4249 = vmatmul.msk.bf16.gmra.mxu3 %vm834_vm2, %v6158_v48 }
 0x492   : > { %4233 = vmatmul.msk.bf16.gmra.mxu2 %vm834_vm2, %v6158_v48 }
 0x494   : > { %v6212_v21 = vpop.f32.mrf.mxu3 }
 0x495   : > { %v6210_v37 = vpop.f32.mrf.mxu2 }
 0x496   : > { %8293 = vst [vmem:[#allocation68_spill] sm:$0xff] %v6210_v37  ;;  %v1839_v50 = vmax.f32 %v1837_v12, %v6210_v37 }
 0x49c   : > { %v6216_v31 = vpop.f32.mrf.mxu3 }
 0x49d   : > { %v6214_v46 = vpop.f32.mrf.mxu2 }
 0x49e   : > { %8294 = vst [vmem:[#allocation70_spill] sm:$0xff] %v6214_v46  ;;  %v1840_v18 = vmax.f32 %v1838_v29, %v6214_v46 }
 0x4a1   : > { %4250 = vmatmul.msk.bf16.gmra.mxu3 %vm834_vm2, %v6162_v25 }
 0x4a2   : > { %4234 = vmatmul.msk.bf16.gmra.mxu2 %vm834_vm2, %v6162_v25 }
 0x4a4   : > { %v6224_v6 = vpop.f32.mrf.mxu3 }
 0x4a5   : > { %v6222_v36 = vpop.f32.mrf.mxu2 }
 0x4a6   : > { %8295 = vst [vmem:[#allocation30_spill] sm:$0xff] %v6222_v36  ;;  %v1841_v40 = vmax.f32 %v1839_v50, %v6222_v36 }
 0x4ac   : > { %v6228_v48 = vpop.f32.mrf.mxu3 }
 0x4ad   : > { %v6226_v4 = vpop.f32.mrf.mxu2  ;;  %8296 = vst [vmem:[#allocation31_spill] sm:$0xff] %v6228_v48 }
 0x4ae   : > { %v1842_v47 = vmax.f32 %v1840_v18, %v6226_v4 }
 0x4b1   : > { %4251 = vmatmul.msk.bf16.gmra.mxu3 %vm834_vm2, %v6166_v14 }
 0x4b2   : > { %4235 = vmatmul.msk.bf16.gmra.mxu2 %vm834_vm2, %v6166_v14 }
 0x4b4   : > { %v6236_v43 = vpop.f32.mrf.mxu3 }
 0x4b5   : > { %v6234_v44 = vpop.f32.mrf.mxu2 }
 0x4bc   : > { %v6240_v25 = vpop.f32.mrf.mxu3 }
 0x4bd   : > { %v6238_v54 = vpop.f32.mrf.mxu2  ;;  %8297 = vst [vmem:[#allocation32_spill] sm:$0xff] %v6240_v25 }
 0x4c1   : > { %4252 = vmatmul.msk.bf16.gmra.mxu3 %vm834_vm2, %v6172_v13 }
 0x4c2   : > { %4236 = vmatmul.msk.bf16.gmra.mxu2 %vm834_vm2, %v6172_v13  ;;  %v1590_v13 = vpop.trf.xlu1 }
 0x4c4   : > { %v6248_v59 = vpop.f32.mrf.mxu3 }
 0x4c5   : > { %v6246_v11 = vpop.f32.mrf.mxu2 }
 0x4cc   : > { %v6252_v14 = vpop.f32.mrf.mxu3 }
 0x4cd   : > { %v6250_v41 = vpop.f32.mrf.mxu2  ;;  %8298 = vst [vmem:[#allocation53_spill] sm:$0xff] %v6252_v14 }
 0x4d1   : > { %4253 = vmatmul.msk.bf16.gmra.mxu3 %vm834_vm2, %v6178_v49 }
 0x4d2   : > { %4237 = vmatmul.msk.bf16.gmra.mxu2 %vm834_vm2, %v6178_v49 }
 0x4d4   : > { %v6260_v7 = vpop.f32.mrf.mxu3 }
 0x4d5   : > { %v6258_v62 = vpop.f32.mrf.mxu2 }
 0x4dc   : > { %v6264_v28 = vpop.f32.mrf.mxu3 }
 0x4dd   : > { %v6262_v42 = vpop.f32.mrf.mxu2  ;;  %8299 = vst [vmem:[#allocation54_spill] sm:$0xff] %v6264_v28 }
 0x4e1   : > { %4254 = vmatmul.msk.bf16.gmra.mxu3 %vm834_vm2, %v1590_v13 }
 0x4e2   : > { %4238 = vmatmul.msk.bf16.gmra.mxu2 %vm834_vm2, %v1590_v13  ;;  %v1843_v13 = vmax.f32 %v1841_v40, %v6234_v44 }
 0x4e4   : > { %v6270_v30 = vpop.f32.mrf.mxu3  ;;  %v1845_v22 = vmax.f32 %v1843_v13, %v6246_v11 }
 0x4e5   : > { %v6268_v20 = vpop.f32.mrf.mxu2 }
 0x4e6   : > { %v1847_v12 = vmax.f32 %v1845_v22, %v6258_v62  ;;  %v1875_v22 = vmax.f32 %v6192_v3, %v6204_v60 }
 0x4e8   : > { %v1849_v37 = vmax.f32 %v1847_v12, %v6268_v20 }
 0x4ec   : > { %v6274_v63 = vpop.f32.mrf.mxu3 }
 0x4ed   : > { %v6272_v56 = vpop.f32.mrf.mxu2 }
 0x4f4   : > { %v6278_v35 = vpop.f32.mrf.mxu3 }
 0x4f5   : > { %v6276_v49 = vpop.f32.mrf.mxu2 }
 0x4f6   : > { %v1851_v18 = vmax.f32 %v1849_v37, %v6276_v49  ;;  %v1877_v37 = vmax.f32 %v1875_v22, %v6216_v31 }
 0x4fc   : > { %v6282_v17 = vpop.f32.mrf.mxu3 }
 0x4fd   : > { %v6280_v51 = vpop.f32.mrf.mxu2  ;;  %8300 = vst [vmem:[#allocation56_spill] sm:$0xff] %v6282_v17 }
 0x504   : > { %v6286_v45 = vpop.f32.mrf.mxu3 }
 0x505   : > { %v6284_v26 = vpop.f32.mrf.mxu2 }
 0x50c   : > { %v6290_v2 = vpop.f32.mrf.mxu3 }
 0x50d   : > { %v6288_v19 = vpop.f32.mrf.mxu2 }
 0x50e   : > { %8301 = vst [vmem:[#allocation57_spill] sm:$0xff] %v6288_v19 }
 0x514   : > { %v6294_v61 = vpop.f32.mrf.mxu3 }
 0x515   : > { %v6292_v39 = vpop.f32.mrf.mxu2 }
 0x51c   : > { %v6298_v16 = vpop.f32.mrf.mxu3 }
 0x51d   : > { %v6296_v55 = vpop.f32.mrf.mxu2  ;;  %8302 = vst [vmem:[#allocation58_spill] sm:$0xff] %v6298_v16 }
 0x524   : > { %v6302_v34 = vpop.f32.mrf.mxu3 }
 0x525   : > { %v6300_v52 = vpop.f32.mrf.mxu2 }
 0x52c   : > { %v6306_v33 = vpop.f32.mrf.mxu3 }
 0x52d   : > { %v6304_v38 = vpop.f32.mrf.mxu2  ;;  %8303 = vst [vmem:[#allocation71_spill] sm:$0xff] %v6306_v33 }
 0x534   : > { %v6310_v0 = vpop.f32.mrf.mxu3 }
 0x535   : > { %v6308_v57 = vpop.f32.mrf.mxu2  ;;  %8304 = vst [vmem:[#allocation64_spill] sm:$0xff] %v6310_v0 }
 0x53c   : > { %v6314_v53 = vpop.f32.mrf.mxu3 }
 0x53d   : > { %v6312_v24 = vpop.f32.mrf.mxu2  ;;  %8305 = vst [vmem:[#allocation67_spill] sm:$0xff] %v6314_v53 }
 0x544   : > { %v6318_v10 = vpop.f32.mrf.mxu3 }
 0x545   : > { %v6316_v27 = vpop.f32.mrf.mxu2  ;;  %8306 = vst [vmem:[#allocation66_spill] sm:$0xff] %v6318_v10  ;;  %v1844_v10 = vmax.f32 %v1842_v47, %v6238_v54  ;;  %v1853_v47 = vmax.f32 %v1851_v18, %v6284_v26 }
 0x547   : > { %v1846_v5 = vmax.f32 %v1844_v10, %v6250_v41 }
 0x549   : > { %v1848_v29 = vmax.f32 %v1846_v5, %v6262_v42  ;;  %v1855_v5 = vmax.f32 %v1853_v47, %v6292_v39 }
 0x54b   : > { %v1850_v50 = vmax.f32 %v1848_v29, %v6272_v56  ;;  %v1874_v29 = vmax.f32 %v6188_v15, %v6200_v23 }
 0x54c   : > { %v6328_v32 = vpop.f32.mrf.mxu3 }
 0x54d   : > { %v6320_v58 = vpop.f32.mrf.mxu2  ;;  %v1852_v40 = vmax.f32 %v1850_v50, %v6280_v51  ;;  %v1857_v50 = vmax.f32 %v1855_v5, %v6300_v52 }
 0x54f   : > { %v1854_v10 = vmax.f32 %v1852_v40, %v6288_v19  ;;  %v1876_v40 = vmax.f32 %v1874_v29, %v6212_v21  ;;  %v1879_v19 = vmax.f32 %v1877_v37, %v6228_v48  ;;  %v1859_v60 = vmax.f32 %v1857_v50, %v6308_v57 }
 0x551   : > { %v1856_v13 = vmax.f32 %v1854_v10, %v6296_v55  ;;  %v1878_v3 = vmax.f32 %v1876_v40, %v6224_v6  ;;  %v1881_v23 = vmax.f32 %v1879_v19, %v6240_v25  ;;  %v1861_v22 = vmax.f32 %v1859_v60, %v6316_v27 }
 0x553   : > { %v1858_v18 = vmax.f32 %v1856_v13, %v6304_v38  ;;  %v1880_v13 = vmax.f32 %v1878_v3, %v6236_v43  ;;  %v1883_v29 = vmax.f32 %v1881_v23, %v6252_v14 }
 0x554   : > { %v6344_v36 = vpop.f32.mrf.mxu3 }
 0x555   : > { %v6330_v1 = vpop.f32.mrf.mxu2  ;;  %v1860_v47 = vmax.f32 %v1858_v18, %v6312_v24  ;;  %v1882_v18 = vmax.f32 %v1880_v13, %v6248_v59  ;;  %v1885_v40 = vmax.f32 %v1883_v29, %v6264_v28 }
 0x556   : > { %v1863_v37 = vmax.f32 %v1861_v22, %v6330_v1 }
 0x557   : > { %v1862_v5 = vmax.f32 %v1860_v47, %v6320_v58  ;;  %v1884_v47 = vmax.f32 %v1882_v18, %v6260_v7  ;;  %v1887_v3 = vmax.f32 %v1885_v40, %v6274_v63 }
 0x559   : > { %v1886_v23 = vmax.f32 %v1884_v47, %v6270_v30  ;;  %v1889_v22 = vmax.f32 %v1887_v3, %v6282_v17 }
 0x55b   : > { %v1888_v13 = vmax.f32 %v1886_v23, %v6278_v35  ;;  %v1891_v29 = vmax.f32 %v1889_v22, %v6290_v2 }
 0x55c   : > { %v6365_v10 = vpop.f32.mrf.mxu3 }
 0x55d   : > { %v6340_v46 = vpop.f32.mrf.mxu2 }
 0x55e   : > { %v1864_v50 = vmax.f32 %v1862_v5, %v6340_v46 }
 0x564   : > { %v6385_v14 = vpop.f32.mrf.mxu3 }
 0x565   : > { %v6354_v12 = vpop.f32.mrf.mxu2 }
 0x566   : > { %v1865_v19 = vmax.f32 %v1863_v37, %v6354_v12  ;;  %v1890_v37 = vmax.f32 %v1888_v13, %v6286_v45 }
 0x568   : > { %v1892_v40 = vmax.f32 %v1890_v37, %v6294_v61 }
 0x56a   : > { %v1894_v47 = vmax.f32 %v1892_v40, %v6302_v34 }
 0x56c   : > { %v1896_v23 = vmax.f32 %v1894_v47, %v6310_v0  ;;  %v8312_v0 = vld [vmem:[#allocation30_spill] sm:$0xff] }
 0x56d   : > { %v6375_v48 = vpop.f32.mrf.mxu2 }
 0x56e   : > { %v1866_v60 = vmax.f32 %v1864_v50, %v6375_v48  ;;  %v1893_v50 = vmax.f32 %v1891_v29, %v6298_v16 }
 0x570   : > { %v1867_v25 = vmax.f32 %v1865_v19, %v1866_v60  ;;  %v1895_v19 = vmax.f32 %v1893_v50, %v6306_v33 }
 0x572   : > { %v1868_v5 = vrot.slane %v1867_v25, 4  ;;  %v1897_v3 = vmax.f32 %v1895_v19, %v6314_v53  ;;  %v8308_v19 = vld [vmem:[#allocation55_spill] sm:$0xff] }
 0x574   : > { %v1869_v28 = vmax.f32 %v1867_v25, %v1868_v5  ;;  %v1899_v22 = vmax.f32 %v1897_v3, %v6328_v32  ;;  %v6397_v25 = vpop.f32.mrf.mxu3  ;;  %v8307_v5 = vld [vmem:[#allocation66_spill] sm:$0xff] }
 0x575   : > { %v1898_v13 = vmax.f32 %v1896_v23, %v8307_v5  ;;  %v8309_v23 = vld [vmem:[#allocation60_spill] sm:$0xff] }
 0x576   : > { %v1870_v18 = vrot.slane %v1869_v28, 2  ;;  %v1901_v29 = vmax.f32 %v1899_v22, %v6365_v10 }
 0x577   : > { %v1900_v37 = vmax.f32 %v1898_v13, %v6344_v36  ;;  %v8310_v13 = vld [vmem:[#allocation68_spill] sm:$0xff] }
 0x578   : > { %v1871_v60 = vmax.f32 %v1869_v28, %v1870_v18  ;;  %v1903_v28 = vmax.f32 %v1901_v29, %v6397_v25 }
 0x579   : > { %v1902_v50 = vmax.f32 %v1900_v37, %v6385_v14 }
 0x57a   : > { %v1872_v17 = vrot.slane %v1871_v60, 1 }
 0x57b   : > { %v1904_v3 = vmax.f32 %v1902_v50, %v1903_v28 }
 0x57c   : > { %v6401_v16 = vmax.f32 %v1871_v60, %v1872_v17 }
 0x57d   : > { %v1905_v37 = vrot.slane %v1904_v3, 4 }
 0x57e   : > { %v1911_v18 = vsub.f32 %v6186_v8, %v6401_v16  ;;  %v1913_v40 = vsub.f32 %v6190_v9, %v6401_v16  ;;  %v1915_v47 = vsub.f32 %v8308_v19, %v6401_v16  ;;  %v1917_v17 = vsub.f32 %v8309_v23, %v6401_v16  ;;  %v8311_v8 = vld [vmem:[#allocation70_spill] sm:$0xff] }
 0x57f   : > { %v1919_v29 = vsub.f32 %v8310_v13, %v6401_v16  ;;  %v1921_v53 = vsub.f32 %v8311_v8, %v6401_v16  ;;  %v1923_v19 = vsub.f32 %v8312_v0, %v6401_v16  ;;  %v1906_v50 = vmax.f32 %v1904_v3, %v1905_v37 }
 0x580   : > { %v1975_v60 = vmul.f32 1.442695, %v1911_v18  ;;  %v1979_v22 = vmul.f32 1.442695, %v1913_v40  ;;  %v1983_v33 = vmul.f32 1.442695, %v1915_v47  ;;  %v1925_v18 = vsub.f32 %v6226_v4, %v6401_v16 }
 0x581   : > { %v1987_v9 = vmul.f32 1.442695, %v1917_v17  ;;  %v1991_v28 = vmul.f32 1.442695, %v1919_v29  ;;  %v1995_v40 = vmul.f32 1.442695, %v1921_v53  ;;  %v1927_v47 = vsub.f32 %v6234_v44, %v6401_v16 }
 0x582   : > { %4584 = vpow2.f32 %v1975_v60  ;;  %v1929_v17 = vsub.f32 %v6238_v54, %v6401_v16  ;;  %v1999_v0 = vmul.f32 1.442695, %v1923_v19  ;;  %v1907_v3 = vrot.slane %v1906_v50, 2 }
 0x583   : > { %4586 = vpow2.f32 %v1979_v22  ;;  %v1933_v22 = vsub.f32 %v6250_v41, %v6401_v16  ;;  %v2003_v44 = vmul.f32 1.442695, %v1925_v18  ;;  %v1935_v13 = vsub.f32 %v6258_v62, %v6401_v16 }
 0x584   : > { %4588 = vpow2.f32 %v1983_v33  ;;  %v1931_v33 = vsub.f32 %v6246_v11, %v6401_v16  ;;  %v2007_v54 = vmul.f32 1.442695, %v1927_v47  ;;  %v1937_v11 = vsub.f32 %v6262_v42, %v6401_v16 }
 0x585   : > { %4590 = vpow2.f32 %v1987_v9  ;;  %v2011_v8 = vmul.f32 1.442695, %v1929_v17  ;;  %v1939_v9 = vsub.f32 %v6268_v20, %v6401_v16  ;;  %v1941_v62 = vsub.f32 %v6272_v56, %v6401_v16 }
 0x586   : > { %4592 = vpow2.f32 %v1991_v28  ;;  %v2015_v19 = vmul.f32 1.442695, %v1931_v33  ;;  %v1908_v28 = vmax.f32 %v1906_v50, %v1907_v3  ;;  %v1943_v47 = vsub.f32 %v6276_v49, %v6401_v16 }
 0x587   : > { %4594 = vpow2.f32 %v1995_v40  ;;  %v2019_v40 = vmul.f32 1.442695, %v1933_v22  ;;  %v2023_v42 = vmul.f32 1.442695, %v1935_v13  ;;  %v1945_v20 = vsub.f32 %v6280_v51, %v6401_v16  ;;  %v8315_v22 = vld [vmem:[#allocation57_spill] sm:$0xff] }
 0x588   : > { %v6422_v23 = vpop.eup %4584  ;;  %4596 = vpow2.f32 %v1999_v0  ;;  %v1947_v50 = vsub.f32 %v6284_v26, %v6401_v16  ;;  %v2027_v33 = vmul.f32 1.442695, %v1937_v11  ;;  %v2031_v56 = vmul.f32 1.442695, %v1939_v9 }
 0x589   : > { %8313 = vst [vmem:[#allocation69_spill] sm:$0xff] %v6422_v23  ;;  %v6426_v60 = vpop.eup %4586  ;;  %4598 = vpow2.f32 %v2003_v44  ;;  %v1909_v3 = vrot.slane %v1908_v28, 1  ;;  %v1949_v44 = vsub.f32 %v8315_v22, %v6401_v16  ;;  %v2035_v13 = vmul.f32 1.442695, %v1941_v62 }
 0x58a   : > { %8314 = vst [vmem:[#allocation63_spill] sm:$0xff] %v6426_v60  ;;  %v2103_v4 = vadd.f32 %v6426_v60, %v6422_v23  ;;  %v6434_v53 = vpop.eup %4588  ;;  %4600 = vpow2.f32 %v2007_v54  ;;  %v1951_v51 = vsub.f32 %v6292_v39, %v6401_v16  ;;  %v2039_v54 = vmul.f32 1.442695, %v1943_v47 }
 0x58b   : > { %v6441_v37 = vpop.eup %4590  ;;  %4602 = vpow2.f32 %v2011_v8  ;;  %v1953_v11 = vsub.f32 %v6296_v55, %v6401_v16  ;;  %v1955_v8 = vsub.f32 %v6300_v52, %v6401_v16  ;;  %v2043_v9 = vmul.f32 1.442695, %v1945_v20 }
 0x58c   : > { %v2104_v29 = vadd.f32 %v6434_v53, %v2103_v4  ;;  %v6448_v18 = vpop.eup %4592  ;;  %4604 = vpow2.f32 %v2015_v19  ;;  %v6478_v62 = vmax.f32 %v1908_v28, %v1909_v3  ;;  %v1967_v47 = vsub.f32 %v6330_v1, %v6401_v16 }
 0x58d   : > { %v6455_v0 = vpop.eup %4594  ;;  %4606 = vpow2.f32 %v2019_v40  ;;  %v2051_v55 = vmul.f32 1.442695, %v1949_v44  ;;  %v1971_v52 = vsub.f32 %v6354_v12, %v6401_v16  ;;  %v1973_v28 = vsub.f32 %v6375_v48, %v6401_v16  ;;  %v8316_v44 = vld [vmem:[#allocation52_spill] sm:$0xff] }
 0x58e   : > { %v2105_v41 = vadd.f32 %v6441_v37, %v2104_v29  ;;  %v6462_v49 = vpop.eup %4596  ;;  %4608 = vpow2.f32 %v2023_v42  ;;  %v2063_v1 = vmul.f32 1.442695, %v1955_v8  ;;  %v1912_v12 = vsub.f32 %v6188_v15, %v6478_v62  ;;  %v8317_v8 = vld [vmem:[#allocation59_spill] sm:$0xff] }
 0x58f   : > { %v6469_v29 = vpop.eup %4598  ;;  %4610 = vpow2.f32 %v2027_v33  ;;  %v2059_v33 = vmul.f32 1.442695, %v1953_v11  ;;  %v2087_v22 = vmul.f32 1.442695, %v1967_v47  ;;  %v1969_v48 = vsub.f32 %v6340_v46, %v6401_v16 }
 0x590   : > { %v2106_v17 = vadd.f32 %v6448_v18, %v2105_v41  ;;  %v6475_v19 = vpop.eup %4600  ;;  %4612 = vpow2.f32 %v2031_v56  ;;  %v2047_v41 = vmul.f32 1.442695, %v1947_v50  ;;  %v2099_v15 = vmul.f32 1.442695, %v1973_v28 }
 0x591   : > { %v6480_v40 = vpop.eup %4602  ;;  %4614 = vpow2.f32 %v2035_v13  ;;  %v1914_v13 = vsub.f32 %v8316_v44, %v6478_v62  ;;  %v1977_v46 = vmul.f32 1.442695, %v1912_v12  ;;  %v1920_v12 = vsub.f32 %v6212_v21, %v6478_v62 }
 0x592   : > { %v2107_v4 = vadd.f32 %v6455_v0, %v2106_v17  ;;  %v6484_v42 = vpop.eup %4604  ;;  %4616 = vpow2.f32 %v2039_v54  ;;  %v2055_v17 = vmul.f32 1.442695, %v1951_v51  ;;  %v2095_v54 = vmul.f32 1.442695, %v1971_v52  ;;  %v8318_v52 = vld [vmem:[#allocation65_spill] sm:$0xff] }
 0x593   : > { %v6489_v50 = vpop.eup %4606  ;;  %4618 = vpow2.f32 %v2043_v9  ;;  %v1916_v9 = vsub.f32 %v8317_v8, %v6478_v62  ;;  %v1961_v21 = vsub.f32 %v6312_v24, %v6401_v16 }
 0x594   : > { %v2108_v26 = vadd.f32 %v6462_v49, %v2107_v4  ;;  %v6493_v56 = vpop.eup %4608  ;;  %4620 = vpow2.f32 %v2047_v41 }
 0x595   : > { %v6498_v3 = vpop.eup %4610  ;;  %4622 = vpow2.f32 %v2051_v55  ;;  %v2075_v23 = vmul.f32 1.442695, %v1961_v21 }
 0x596   : > { %v2109_v39 = vadd.f32 %v6469_v29, %v2108_v26  ;;  %v6502_v51 = vpop.eup %4612  ;;  %4624 = vpow2.f32 %v2055_v17  ;;  %v1918_v17 = vsub.f32 %v8318_v52, %v6478_v62  ;;  %v1924_v52 = vsub.f32 %v6224_v6, %v6478_v62 }
 0x597   : > { %v6507_v11 = vpop.eup %4614  ;;  %4626 = vpow2.f32 %v2059_v33  ;;  %v1965_v33 = vsub.f32 %v6320_v58, %v6401_v16 }
 0x598   : > { %v2110_v20 = vadd.f32 %v6475_v19, %v2109_v39  ;;  %v6511_v41 = vpop.eup %4616  ;;  %v1963_v39 = vsub.f32 %v6316_v27, %v6401_v16  ;;  %4628 = vpow2.f32 %v2063_v1 }
 0x599   : > { %v6516_v55 = vpop.eup %4618  ;;  %4630 = vpow2.f32 %v2087_v22  ;;  %v1985_v22 = vmul.f32 1.442695, %v1916_v9  ;;  %v2083_v9 = vmul.f32 1.442695, %v1965_v33 }
 0x59a   : > { %v2111_v4 = vadd.f32 %v6480_v40, %v2110_v20  ;;  %v1981_v20 = vmul.f32 1.442695, %v1914_v13  ;;  %v6520_v28 = vpop.eup %4620  ;;  %4632 = vpow2.f32 %v2095_v54  ;;  %v1959_v13 = vsub.f32 %v6308_v57, %v6401_v16 }
 0x59b   : > { %v6525_v1 = vpop.eup %4622  ;;  %4634 = vpow2.f32 %v2099_v15  ;;  %v1989_v54 = vmul.f32 1.442695, %v1918_v17  ;;  %v1957_v17 = vsub.f32 %v6304_v38, %v6401_v16  ;;  %v2191_v38 = vpack.c.bf16 %v6507_v11, %v6502_v51 }
 0x59c   : > { %v2112_v26 = vadd.f32 %v6484_v42, %v2111_v4  ;;  %v2091_v4 = vmul.f32 1.442695, %v1969_v48  ;;  %v6529_v44 = vpop.eup %4624  ;;  %4636 = vpow2.f32 %v1977_v46  ;;  %v1922_v48 = vsub.f32 %v6216_v31, %v6478_v62  ;;  %v8322_v46 = vld [vmem:[#allocation31_spill] sm:$0xff] }
 0x59d   : > { %v6534_v58 = vpop.eup %4626  ;;  %4638 = vpow2.f32 %v1981_v20  ;;  %v1993_v31 = vmul.f32 1.442695, %v1920_v12  ;;  %v1926_v6 = vsub.f32 %v8322_v46, %v6478_v62  ;;  %v2067_v46 = vmul.f32 1.442695, %v1957_v17  ;;  %2229 = vmatpush.bf16.msra.mxu0 %v2191_v38 }
 0x59e   : > { %v2113_v47 = vadd.f32 %v6489_v50, %v2112_v26  ;;  %v2079_v26 = vmul.f32 1.442695, %v1963_v39  ;;  %v6538_v15 = vpop.eup %4628  ;;  %4640 = vpow2.f32 %v2091_v4  ;;  %v8320_v4 = vld [vmem:[#allocation37_spill] sm:$0xff]  ;;  %v1997_v12 = vmul.f32 1.442695, %v1922_v48 }
 0x59f   : > { %v6543_v39 = vpop.eup %4630  ;;  %4642 = vpow2.f32 %v1985_v22 }
 0x5a0   : > { %v2114_v27 = vadd.f32 %v6493_v56, %v2113_v47  ;;  %v8319_v47 = vld [vmem:[#allocation36_spill] sm:$0xff]  ;;  %v6548_v20 = vpop.eup %4632  ;;  %4644 = vpow2.f32 %v2079_v26  ;;  %v1928_v26 = vsub.f32 %v6236_v43, %v6478_v62 }
 0x5a1   : > { %v6553_v33 = vpop.eup %4634  ;;  %4646 = vpow2.f32 %v1989_v54  ;;  %v8324_v43 = vld [vmem:[#allocation32_spill] sm:$0xff] }
 0x5a2   : > { %v2115_v8 = vadd.f32 %v6498_v3, %v2114_v27  ;;  %v2071_v27 = vmul.f32 1.442695, %v1959_v13  ;;  %v6561_v22 = vpop.eup %4636  ;;  %4648 = vpow2.f32 %v2083_v9  ;;  %v2207_v54 = vpack.c.bf16 %v6553_v33, %v6548_v20 }
 0x5a3   : > { %v6566_v13 = vpop.eup %4638  ;;  %4650 = vpow2.f32 %v1993_v31  ;;  %v2005_v31 = vmul.f32 1.442695, %v1926_v6  ;;  %v2009_v38 = vmul.f32 1.442695, %v1928_v26 }
 0x5a4   : > { %v2116_v57 = vadd.f32 %v6502_v51, %v2115_v8  ;;  %v8321_v8 = vld [vmem:[#allocation38_spill] sm:$0xff]  ;;  %8323 = vst [vmem:[#allocation34_spill] sm:$0xff] %v6566_v13  ;;  %v6572_v48 = vpop.eup %4640  ;;  %4652 = vpow2.f32 %v2071_v27  ;;  %v2140_v9 = vadd.f32 %v6566_v13, %v6561_v22  ;;  %2248 = vmatpush.bf16.msra.mxu1 %v2207_v54  ;;  %v1972_v13 = vsub.f32 %v6385_v14, %v6478_v62 }
 0x5a5   : > { %v6557_v60 = vpack.c.bf16 %v8321_v8, %v8320_v4  ;;  %v6577_v51 = vpop.eup %4642  ;;  %4654 = vpow2.f32 %v1997_v12  ;;  %v2189_v4 = vpack.c.bf16 %v6498_v3, %v6493_v56  ;;  %v2205_v6 = vpack.c.bf16 %v6572_v48, %v6543_v39  ;;  %v8326_v3 = vld [vmem:[#allocation54_spill] sm:$0xff] }
 0x5a6   : > { %v2117_v24 = vadd.f32 %v6507_v11, %v2116_v57  ;;  %v2001_v57 = vmul.f32 1.442695, %v1924_v52  ;;  %v1930_v52 = vsub.f32 %v8324_v43, %v6478_v62  ;;  %4656 = vpow2.f32 %v2075_v23 }
 0x5a7   : > { %v2141_v27 = vadd.f32 %v6577_v51, %v2140_v9  ;;  %2230 = vmatpush.bf16.msra.mxu0 %v2189_v4  ;;  %v1938_v11 = vsub.f32 %v8326_v3, %v6478_v62 }
 0x5a8   : > { %v2118_v16 = vadd.f32 %v6511_v41, %v2117_v24  ;;  %v6582_v24 = vpop.eup %4644  ;;  %4658 = vpow2.f32 %v2001_v57  ;;  %v2013_v57 = vmul.f32 1.442695, %v1930_v52  ;;  %2249 = vmatpush.bf16.msra.mxu1 %v2205_v6 }
 0x5a9   : > { %v6588_v8 = vpop.eup %4646  ;;  %4660 = vpow2.f32 %v2067_v46  ;;  %v1936_v46 = vsub.f32 %v6260_v7, %v6478_v62  ;;  %v1940_v7 = vsub.f32 %v6270_v30, %v6478_v62 }
 0x5aa   : > { %v2119_v21 = vadd.f32 %v6516_v55, %v2118_v16  ;;  %v1932_v16 = vsub.f32 %v6248_v59, %v6478_v62  ;;  %v6594_v12 = vpop.eup %4648  ;;  %v8325_v59 = vld [vmem:[#allocation53_spill] sm:$0xff]  ;;  %4662 = vpow2.f32 %v2005_v31 }
 0x5ab   : > { %v6599_v56 = vpop.eup %4650  ;;  %v1934_v26 = vsub.f32 %v8325_v59, %v6478_v62  ;;  %4664 = vpow2.f32 %v2009_v38  ;;  %v2203_v52 = vpack.c.bf16 %v6594_v12, %v6582_v24  ;;  %v8327_v38 = vld [vmem:[#allocation56_spill] sm:$0xff] }
 0x5ac   : > { %v2120_v17 = vadd.f32 %v6520_v28, %v2119_v21  ;;  %v2142_v21 = vadd.f32 %v6588_v8, %v2141_v27  ;;  %v4653_v9 = vpop.eup %4652  ;;  %v2187_v27 = vpack.c.bf16 %v6489_v50, %v6484_v42  ;;  %v2017_v31 = vmul.f32 1.442695, %v1932_v16 }
 0x5ad   : > { %v6610_v4 = vpop.eup %4654  ;;  %v1944_v16 = vsub.f32 %v6278_v35, %v6478_v62  ;;  %v1946_v3 = vsub.f32 %v8327_v38, %v6478_v62  ;;  %4666 = vpow2.f32 %v2013_v57  ;;  %v2021_v59 = vmul.f32 1.442695, %v1934_v26  ;;  %2250 = vmatpush.bf16.msra.mxu1 %v2203_v52 }
 0x5ae   : > { %v2121_v54 = vadd.f32 %v6525_v1, %v2120_v17  ;;  %v2143_v17 = vadd.f32 %v6599_v56, %v2142_v21  ;;  %v4657_v6 = vpop.eup %4656  ;;  %v1942_v21 = vsub.f32 %v6274_v63, %v6478_v62  ;;  %2231 = vmatpush.bf16.msra.mxu0 %v2187_v27  ;;  %v1948_v63 = vsub.f32 %v6286_v45, %v6478_v62 }
 0x5af   : > { %v6622_v50 = vpop.eup %4658  ;;  %v2185_v27 = vpack.c.bf16 %v6480_v40, %v6475_v19  ;;  %v1950_v35 = vsub.f32 %v6290_v2, %v6478_v62  ;;  %4668 = vpow2.f32 %v2017_v31  ;;  %v2025_v57 = vmul.f32 1.442695, %v1936_v46  ;;  %v8328_v19 = vld [vmem:[#allocation58_spill] sm:$0xff] }
 0x5b0   : > { %v2122_v43 = vadd.f32 %v6529_v44, %v2121_v54  ;;  %v2144_v42 = vadd.f32 %v6610_v4, %v2143_v17  ;;  %v2201_v26 = vpack.c.bf16 %v4657_v6, %v4653_v9  ;;  %v2029_v38 = vmul.f32 1.442695, %v1938_v11 }
 0x5b1   : > { %4670 = vpow2.f32 %v2021_v59  ;;  %v2033_v2 = vmul.f32 1.442695, %v1940_v7  ;;  %v2037_v31 = vmul.f32 1.442695, %v1942_v21  ;;  %v2183_v11 = vpack.c.bf16 %v6469_v29, %v6462_v49 }
 0x5b2   : > { %v2123_v54 = vadd.f32 %v6534_v58, %v2122_v43  ;;  %v4661_v43 = vpop.eup %4660  ;;  %v2145_v17 = vadd.f32 %v6622_v50, %v2144_v42  ;;  %2232 = vmatpush.bf16.msra.mxu0 %v2185_v27  ;;  %2251 = vmatpush.bf16.msra.mxu1 %v2201_v26  ;;  %v1968_v27 = vsub.f32 %v6344_v36, %v6478_v62  ;;  %4672 = vpow2.f32 %v2025_v57 }
 0x5b3   : > { %v6634_v23 = vpop.eup %4662  ;;  %v1974_v40 = vsub.f32 %v6397_v25, %v6478_v62  ;;  %v2199_v14 = vpack.c.bf16 %v4661_v43, %v6538_v15  ;;  %4674 = vpow2.f32 %v2029_v38  ;;  %v1970_v49 = vsub.f32 %v6365_v10, %v6478_v62 }
 0x5b4   : > { %v2124_v30 = vadd.f32 %v6538_v15, %v2123_v54  ;;  %v1952_v54 = vsub.f32 %v6294_v61, %v6478_v62  ;;  %v2146_v45 = vadd.f32 %v6634_v23, %v2145_v17  ;;  %v6641_v42 = vpop.eup %4664  ;;  %4676 = vpow2.f32 %v2033_v2 }
 0x5b5   : > { %v6650_v17 = vpop.eup %4666  ;;  %v2045_v29 = vmul.f32 1.442695, %v1946_v3  ;;  %v2097_v36 = vmul.f32 1.442695, %v1972_v13  ;;  %4678 = vpow2.f32 %v2037_v31  ;;  %v1964_v10 = vsub.f32 %v8307_v5, %v6478_v62 }
 0x5b6   : > { %v2125_v52 = vadd.f32 %v4661_v43, %v2124_v30  ;;  %v2147_v30 = vadd.f32 %v6641_v42, %v2146_v45  ;;  %2233 = vmatpush.bf16.msra.mxu0 %v2183_v11  ;;  %v6658_v59 = vpop.eup %4668  ;;  %2252 = vmatpush.bf16.msra.mxu1 %v2199_v14  ;;  %v1956_v43 = vsub.f32 %v6302_v34, %v6478_v62  ;;  %v2101_v57 = vmul.f32 1.442695, %v1974_v40  ;;  %v8329_v40 = vld [vmem:[#allocation64_spill] sm:$0xff]  ;;  %v8330_v11 = vld [vmem:[#allocation67_spill] sm:$0xff] }
 0x5b7   : > { %v2197_v13 = vpack.c.bf16 %v6534_v58, %v6529_v44  ;;  %v2089_v3 = vmul.f32 1.442695, %v1968_v27  ;;  %v2093_v38 = vmul.f32 1.442695, %v1970_v49  ;;  %v2179_v58 = vpack.c.bf16 %v6441_v37, %v6434_v53  ;;  %v8332_v14 = vld [vmem:[#allocation63_spill] sm:$0xff] }
 0x5b8   : > { %v2126_v46 = vadd.f32 %v4653_v9, %v2125_v52  ;;  %v2041_v9 = vmul.f32 1.442695, %v1944_v16  ;;  %v2148_v21 = vadd.f32 %v6650_v17, %v2147_v30  ;;  %v6666_v16 = vpop.eup %4670  ;;  %v2049_v52 = vmul.f32 1.442695, %v1948_v63 }
 0x5b9   : > { %v1960_v2 = vsub.f32 %v8329_v40, %v6478_v62  ;;  %v2081_v30 = vmul.f32 1.442695, %v1964_v10  ;;  %v1962_v27 = vsub.f32 %v8330_v11, %v6478_v62  ;;  %v2057_v53 = vmul.f32 1.442695, %v1952_v54 }
 0x5ba   : > { %v2127_v7 = vadd.f32 %v4657_v6, %v2126_v46  ;;  %v2149_v15 = vadd.f32 %v6658_v59, %v2148_v21  ;;  %v2181_v6 = vpack.c.bf16 %v6455_v0, %v6448_v18  ;;  %4680 = vpow2.f32 %v2041_v9  ;;  %v6676_v18 = vpop.eup %4672  ;;  %2253 = vmatpush.bf16.msra.mxu1 %v2197_v13 }
 0x5bb   : > { %v1966_v0 = vsub.f32 %v6328_v32, %v6478_v62  ;;  %4682 = vpow2.f32 %v2045_v29  ;;  %v4675_v5 = vpop.eup %4674  ;;  %v2053_v46 = vmul.f32 1.442695, %v1950_v35  ;;  %v2195_v32 = vpack.c.bf16 %v6525_v1, %v6520_v28 }
 0x5bc   : > { %v2128_v25 = vadd.f32 %v6582_v24, %v2127_v7  ;;  %v2150_v26 = vadd.f32 %v6666_v16, %v2149_v15  ;;  %2234 = vmatpush.bf16.msra.mxu0 %v2181_v6  ;;  %4684 = vpow2.f32 %v2097_v36  ;;  %v8333_v21 = vsub.f32 %v8328_v19, %v6478_v62 }
 0x5bd   : > { %4686 = vpow2.f32 %v2101_v57  ;;  %v2085_v37 = vmul.f32 1.442695, %v1966_v0  ;;  %v2193_v54 = vpack.c.bf16 %v6516_v55, %v6511_v41  ;;  %v2073_v36 = vmul.f32 1.442695, %v1960_v2  ;;  %v8336_v41 = vld [vmem:[#allocation71_spill] sm:$0xff] }
 0x5be   : > { %v2129_v24 = vadd.f32 %v6594_v12, %v2128_v25  ;;  %v2151_v44 = vadd.f32 %v6676_v18, %v2150_v26  ;;  %v4677_v12 = vpop.eup %4676  ;;  %4688 = vpow2.f32 %v2089_v3  ;;  %2254 = vmatpush.bf16.msra.mxu1 %v2195_v32  ;;  %v2061_v61 = vmul.f32 1.442695, %v8333_v21  ;;  %v8340_v32 = vld [vmem:[#allocation41_spill] sm:$0xff] }
 0x5bf   : > { %v4679_v63 = vpop.eup %4678  ;;  %4690 = vpow2.f32 %v2093_v38  ;;  %v8334_v6 = vunpack.c.l.b16 %v8319_v47  ;;  %v8335_v19 = vunpack.c.l.b16 %v6557_v60  ;;  %v1958_v55 = vsub.f32 %v8336_v41, %v6478_v62 }
 0x5c0   : > { %v2130_v45 = vadd.f32 %v6543_v39, %v2129_v24  ;;  %v2152_v39 = vadd.f32 %v4675_v5, %v2151_v44  ;;  %2235 = vmatpush.bf16.msra.mxu0 %v2179_v58  ;;  %v6694_v35 = vpop.eup %4680  ;;  %4692 = vpow2.f32 %v2049_v52  ;;  %v2192_v49 = vpack.c.bf16 %v4679_v63, %v4677_v12 }
 0x5c1   : > { %v6699_v9 = vpop.eup %4682  ;;  %4694 = vpow2.f32 %v2053_v46  ;;  %v6717_v10 = vpack.c.b16 %v8335_v19, %v8334_v6  ;;  %v2077_v57 = vmul.f32 1.442695, %v1962_v27  ;;  %v8337_v26 = vunpack.c.h.b16 %v8319_v47  ;;  %v8339_v46 = vld [vmem:[#allocation40_spill] sm:$0xff]  ;;  %v8343_v19 = vld [vmem:[#allocation21_spill] sm:$0xff] }
 0x5c2   : > { %v2131_v31 = vadd.f32 %v6572_v48, %v2130_v45  ;;  %v2153_v1 = vadd.f32 %v4677_v12, %v2152_v39  ;;  %v8331_v48 = vld [vmem:[#allocation69_spill] sm:$0xff]  ;;  %v6706_v29 = vpop.eup %4684  ;;  %4696 = vpow2.f32 %v2081_v30  ;;  %2255 = vmatpush.bf16.msra.mxu1 %v2193_v54  ;;  %v8338_v0 = vunpack.c.h.b16 %v6557_v60  ;;  %v8342_v6 = vld [vmem:[#allocation20_spill] sm:$0xff] }
 0x5c3   : > { %v2177_v7 = vpack.c.bf16 %v8332_v14, %v8331_v48  ;;  %v6711_v15 = vpop.eup %4686  ;;  %4698 = vpow2.f32 %v2085_v37  ;;  %v2065_v38 = vmul.f32 1.442695, %v1956_v43  ;;  %v2190_v45 = vpack.c.bf16 %v4675_v5, %v6676_v18 }
 0x5c4   : > { %v2132_v28 = vadd.f32 %v6548_v20, %v2131_v31  ;;  %v2154_v25 = vadd.f32 %v4679_v63, %v2153_v1  ;;  %4700 = vpow2.f32 %v2057_v53  ;;  %v2208_v24 = vpack.c.bf16 %v6711_v15, %v6706_v29 }
 0x5c5   : > { %2236 = vmatpush.bf16.msra.mxu0 %v2177_v7  ;;  %v6732_v52 = vpack.c.b16 %v8338_v0, %v8337_v26  ;;  %4702 = vpow2.f32 %v2061_v61  ;;  %v2069_v60 = vmul.f32 1.442695, %v1958_v55  ;;  %v2188_v18 = vpack.c.bf16 %v6666_v16, %v6658_v59  ;;  %v8341_v16 = vld [vmem:[#allocation39_spill] sm:$0xff]  ;;  %v8346_v0 = vld [vmem:[#allocation16_spill] sm:$0xff] }
 0x5c6   : > { %v6709_v20 = vadd.f32 %v6553_v33, %v2132_v28  ;;  %v6721_v33 = vpop.eup %4688  ;;  %v2155_v13 = vadd.f32 %v6694_v35, %v2154_v25  ;;  %4704 = vpow2.f32 %v2073_v36  ;;  %2286 = vmatpush.bf16.msrb.mxu1 %v2208_v24  ;;  %v761_v63 = vpack.c.bf16 %v8340_v32, %v8339_v46 }
 0x5c7   : > { %v6726_v3 = vpop.eup %4690  ;;  %4706 = vpow2.f32 %v2077_v57  ;;  %2256 = vmatmul.bf16.vlgmr.msra.gmra.mxu1 %v6732_v52  ;;  %v2186_v27 = vpack.c.bf16 %v6650_v17, %v6641_v42  ;;  %v2217_v37 = vunpack.c.l.b16 %v8341_v16  ;;  %v2218_v7 = vunpack.c.h.b16 %v8341_v16  ;;  %v8344_v57 = vld [vmem:[#allocation18_spill] sm:$0xff] }
 0x5c8   : > { %2237 = vmatmul.bf16.vlgmr.msra.gmra.mxu0 %v6717_v10  ;;  %v6739_v44 = vpop.eup %4692  ;;  %v2156_v58 = vadd.f32 %v6699_v9, %v2155_v13  ;;  %v2206_v62 = vpack.c.bf16 %v6726_v3, %v6721_v33  ;;  %4708 = vpow2.f32 %v2065_v38  ;;  %v2219_v28 = vunpack.c.l.b16 %v761_v63  ;;  %v8347_v38 = vld [vmem:[#allocation17_spill] sm:$0xff] }
 0x5c9   : > { %2267 = vmatpush.bf16.msrb.mxu0 %v2192_v49  ;;  %v6742_v47 = vpop.eup %4694  ;;  %4710 = vpow2.f32 %v2069_v60  ;;  %v2220_v21 = vunpack.c.h.b16 %v761_v63  ;;  %v2184_v61 = vpack.c.bf16 %v6634_v23, %v6622_v50  ;;  %v2182_v25 = vpack.c.bf16 %v6610_v4, %v6599_v56  ;;  %v8345_v23 = vld [vmem:[#allocation19_spill] sm:$0xff]  ;;  %v8348_v4 = vld [vmem:[#allocation14_spill] sm:$0xff] }
 0x5ca   : > { %v4697_v12 = vpop.eup %4696  ;;  %v2157_v34 = vadd.f32 %v6739_v44, %v2156_v58  ;;  %2287 = vmatpush.bf16.msrb.mxu1 %v2206_v62  ;;  %v2223_v42 = vpack.c.b16 %v2219_v28, %v2217_v37  ;;  %v733_v41 = vpack.c.bf16 %v8343_v19, %v8342_v6  ;;  %v732_v50 = vpack.c.bf16 %v8345_v23, %v8344_v57  ;;  %v8349_v60 = vld [vmem:[#allocation15_spill] sm:$0xff] }
 0x5cb   : > { %v4699_v43 = vpop.eup %4698  ;;  %v2224_v36 = vpack.c.b16 %v2220_v21, %v2218_v7  ;;  %v2180_v26 = vpack.c.bf16 %v6588_v8, %v6577_v51  ;;  %v2134_v37 = vrot.slane %v6709_v20, 4 }
 0x5cc   : > { %v4701_v5 = vpop.eup %4700  ;;  %v2158_v40 = vadd.f32 %v6742_v47, %v2157_v34  ;;  %v2204_v39 = vpack.c.bf16 %v4699_v43, %v4697_v12  ;;  %v2377_v58 = vunpack.c.l.b16 %v733_v41  ;;  %v730_v34 = vpack.c.bf16 %v8349_v60, %v8348_v4 }
 0x5cd   : > { %2268 = vmatpush.bf16.msrb.mxu0 %v2190_v45  ;;  %v4703_v2 = vpop.eup %4702  ;;  %v731_v45 = vpack.c.bf16 %v8347_v38, %v8346_v0  ;;  %v2375_v62 = vunpack.c.l.b16 %v732_v50 }
 0x5ce   : > { %v4705_v31 = vpop.eup %4704  ;;  %v2159_v30 = vadd.f32 %v4701_v5, %v2158_v40  ;;  %2288 = vmatpush.bf16.msrb.mxu1 %v2204_v39  ;;  %v2198_v24 = vpack.c.bf16 %v4703_v2, %v4701_v5  ;;  %v2378_v5 = vunpack.c.h.b16 %v733_v41  ;;  %v8350_v40 = vld [vmem:[#allocation34_spill] sm:$0xff]  ;;  %v2371_v32 = vunpack.c.l.b16 %v730_v34  ;;  %v2351_v39 = vpop.trf.xlu2 }
 0x5cf   : > { %v4707_v11 = vpop.eup %4706  ;;  %v2178_v51 = vpack.c.bf16 %v8350_v40, %v6561_v22  ;;  %v2373_v8 = vunpack.c.l.b16 %v731_v45 }
 0x5d0   : > { %v2160_v53 = vadd.f32 %v4703_v2, %v2159_v30  ;;  %v4709_v59 = vpop.eup %4708  ;;  %v2202_v48 = vpack.c.bf16 %v4707_v11, %v4705_v31  ;;  %v2381_v2 = vpack.c.b16 %v2377_v58, %v2375_v62  ;;  %v2372_v30 = vunpack.c.h.b16 %v730_v34 }
 0x5d1   : > { %2269 = vmatpush.bf16.msrb.mxu0 %v2188_v18  ;;  %v4711_v14 = vpop.eup %4710  ;;  %v2379_v22 = vpack.c.b16 %v2373_v8, %v2371_v32 }
 0x5d2   : > { %v2161_v1 = vadd.f32 %v4709_v59, %v2160_v53  ;;  %2289 = vmatpush.bf16.msrb.mxu1 %v2202_v48  ;;  %v2200_v49 = vpack.c.bf16 %v4711_v14, %v4709_v59 }
 0x5d4   : > { %v2162_v54 = vadd.f32 %v4711_v14, %v2161_v1  ;;  %v2135_v14 = vadd.f32 %v2134_v37, %v6709_v20 }
 0x5d5   : > { %2270 = vmatpush.bf16.msrb.mxu0 %v2186_v27 }
 0x5d6   : > { %v2163_v17 = vadd.f32 %v4705_v31, %v2162_v54  ;;  %2290 = vmatpush.bf16.msrb.mxu1 %v2200_v49  ;;  %v2374_v31 = vunpack.c.h.b16 %v731_v45 }
 0x5d7   : > { %2261 = vmatmul.bf16.gmra.mxu1 %v2224_v36 }
 0x5d8   : > { %2242 = vmatmul.bf16.gmra.mxu0 %v2223_v42  ;;  %v2164_v55 = vadd.f32 %v4707_v11, %v2163_v17 }
 0x5d9   : > { %2271 = vmatpush.bf16.msrb.mxu0 %v2184_v61  ;;  %v2136_v61 = vrot.slane %v2135_v14, 2 }
 0x5da   : > { %v2165_v13 = vadd.f32 %v4697_v12, %v2164_v55  ;;  %2291 = vmatpush.bf16.msrb.mxu1 %v2198_v24  ;;  %v2196_v12 = vpack.c.bf16 %v6742_v47, %v6739_v44 }
 0x5db   : > { %v2137_v17 = vadd.f32 %v2136_v61, %v2135_v14 }
 0x5dc   : > { %v2166_v56 = vadd.f32 %v4699_v43, %v2165_v13  ;;  %v2376_v43 = vunpack.c.h.b16 %v732_v50 }
 0x5dd   : > { %2272 = vmatpush.bf16.msrb.mxu0 %v2182_v25  ;;  %v2138_v6 = vrot.slane %v2137_v17, 1 }
 0x5de   : > { %v2167_v18 = vadd.f32 %v6721_v33, %v2166_v56  ;;  %2292 = vmatpush.bf16.msrb.mxu1 %v2196_v12  ;;  %v2194_v33 = vpack.c.bf16 %v6699_v9, %v6694_v35  ;;  %v2382_v44 = vpack.c.b16 %v2378_v5, %v2376_v43 }
 0x5df   : > { %v2139_v55 = vadd.f32 %v2138_v6, %v2137_v17 }
 0x5e0   : > { %v2168_v46 = vadd.f32 %v6726_v3, %v2167_v18  ;;  %v2380_v3 = vpack.c.b16 %v2374_v31, %v2372_v30 }
 0x5e1   : > { %2273 = vmatpush.bf16.msrb.mxu0 %v2180_v26  ;;  %4712 = vrcp.f32 %v2139_v55 }
 0x5e2   : > { %v2169_v63 = vadd.f32 %v6706_v29, %v2168_v46  ;;  %2293 = vmatpush.bf16.msrb.mxu1 %v2194_v33  ;;  %v6783_v29 = vpop.trf.xlu2 }
 0x5e4   : > { %v2170_v47 = vadd.f32 %v6711_v15, %v2169_v63 }
 0x5e5   : > { %2274 = vmatpush.bf16.msrb.mxu0 %v2178_v51 }
 0x5e6   : > { %2530 = vmatpush.bf16.msra.mxu1 %v2382_v44  ;;  %v2171_v28 = vrot.slane %v2170_v47, 4 }
 0x5e7   : > { %2294 = vmatmul.bf16.vlgmr.msrb.gmra.mxu1 %v6732_v52  ;;  %v4713_v26 = vpop.eup %4712 }
 0x5e8   : > { %2275 = vmatmul.bf16.vlgmr.msrb.gmra.mxu0 %v6717_v10  ;;  %v2172_v21 = vadd.f32 %v2171_v28, %v2170_v47 }
 0x5e9   : > { %2441 = vmatpush.bf16.msra.mxu0 %v2381_v2 }
 0x5ea   : > { %2531 = vmatpush.bf16.msra.mxu1 %v2380_v3  ;;  %v2353_v35 = vpop.trf.xlu2  ;;  %v2173_v54 = vrot.slane %v2172_v21, 2 }
 0x5ec   : > { %v2174_v25 = vadd.f32 %v2173_v54, %v2172_v21 }
 0x5ed   : > { %2442 = vmatpush.bf16.msra.mxu0 %v2379_v22 }
 0x5ee   : > { %v2175_v19 = vrot.slane %v2174_v25, 1 }
 0x5f0   : > { %v2176_v20 = vadd.f32 %v2175_v19, %v2174_v25 }
 0x5f2   : > { %v6785_v9 = vpop.trf.xlu2  ;;  %4714 = vrcp.f32 %v2176_v20 }
 0x5f7   : > { %2299 = vmatmul.bf16.gmra.mxu1 %v2224_v36 }
 0x5f8   : > { %2280 = vmatmul.bf16.gmra.mxu0 %v2223_v42  ;;  %v4715_v38 = vpop.eup %4714 }
 0x5fa   : > { %v2355_v15 = vpop.trf.xlu2 }
 0x602   : > { %v6791_v10 = vpop.trf.xlu2 }
 0x607   : > { %4271 = vmatmul.msk.bf16.vlgmr.msra.gmra.mxu1 %vm834_vm2, %v2351_v39 }
 0x608   : > { %4255 = vmatmul.msk.bf16.vlgmr.msra.gmra.mxu0 %vm834_vm2, %v2351_v39 }
 0x60a   : > { %v2357_v11 = vpop.trf.xlu2 }
 0x612   : > { %v6795_v52 = vpop.trf.xlu2 }
 0x617   : > { %4272 = vmatmul.msk.bf16.gmra.mxu1 %vm834_vm2, %v2353_v35 }
 0x618   : > { %4256 = vmatmul.msk.bf16.gmra.mxu0 %vm834_vm2, %v2353_v35 }
 0x61a   : > { %v2359_v27 = vpop.trf.xlu2 }
 0x622   : > { %v6799_v53 = vpop.trf.xlu2 }
 0x627   : > { %4273 = vmatmul.msk.bf16.gmra.mxu1 %vm834_vm2, %v2355_v15 }
 0x628   : > { %4257 = vmatmul.msk.bf16.gmra.mxu0 %vm834_vm2, %v2355_v15 }
 0x62a   : > { %v2361_v48 = vpop.trf.xlu2 }
 0x632   : > { %v6805_v36 = vpop.trf.xlu2 }
 0x637   : > { %4274 = vmatmul.msk.bf16.gmra.mxu1 %vm834_vm2, %v2357_v11 }
 0x638   : > { %4258 = vmatmul.msk.bf16.gmra.mxu0 %vm834_vm2, %v2357_v11 }
 0x63a   : > { %v2363_v23 = vpop.trf.xlu2 }
 0x642   : > { %v6811_v56 = vpop.trf.xlu2 }
 0x644   : > { %v2257_v16 = vpop.f32.mrf.mxu1 }
 0x645   : > { %v2238_v59 = vpop.f32.mrf.mxu0 }
 0x646   : > { %v2258_v13 = vadd.f32 %v2257_v16, %v2238_v59 }
 0x647   : > { %4275 = vmatmul.msk.bf16.gmra.mxu1 %vm834_vm2, %v2359_v27 }
 0x648   : > { %4259 = vmatmul.msk.bf16.gmra.mxu0 %vm834_vm2, %v2359_v27  ;;  %v2307_v45 = vmul.f32 %v4713_v26, %v2258_v13 }
 0x64a   : > { %v2365_v8 = vpop.trf.xlu2 }
 0x64c   : > { %v2259_v7 = vpop.f32.mrf.mxu1 }
 0x64d   : > { %v2240_v1 = vpop.f32.mrf.mxu0 }
 0x64e   : > { %v2260_v34 = vadd.f32 %v2259_v7, %v2240_v1 }
 0x650   : > { %v2309_v12 = vmul.f32 %v4713_v26, %v2260_v34 }
 0x654   : > { %v2262_v49 = vpop.f32.mrf.mxu1 }
 0x655   : > { %v2243_v42 = vpop.f32.mrf.mxu0 }
 0x656   : > { %v2263_v2 = vadd.f32 %v2262_v49, %v2243_v42 }
 0x657   : > { %4276 = vmatmul.msk.bf16.gmra.mxu1 %vm834_vm2, %v2361_v48 }
 0x658   : > { %4260 = vmatmul.msk.bf16.gmra.mxu0 %vm834_vm2, %v2361_v48  ;;  %v2311_v32 = vmul.f32 %v4713_v26, %v2263_v2 }
 0x65c   : > { %v2264_v57 = vpop.f32.mrf.mxu1 }
 0x65d   : > { %v2245_v41 = vpop.f32.mrf.mxu0 }
 0x65e   : > { %v2265_v44 = vadd.f32 %v2264_v57, %v2245_v41 }
 0x660   : > { %v2313_v30 = vmul.f32 %v4713_v26, %v2265_v44 }
 0x664   : > { %v2295_v24 = vpop.f32.mrf.mxu1 }
 0x665   : > { %v2276_v50 = vpop.f32.mrf.mxu0 }
 0x666   : > { %v2296_v0 = vadd.f32 %v2295_v24, %v2276_v50 }
 0x667   : > { %4277 = vmatmul.msk.bf16.gmra.mxu1 %vm834_vm2, %v2363_v23 }
 0x668   : > { %4261 = vmatmul.msk.bf16.gmra.mxu0 %vm834_vm2, %v2363_v23  ;;  %v2308_v58 = vmul.f32 %v4715_v38, %v2296_v0 }
 0x66a   : > { %v2315_v4 = vpack.c.bf16 %v2308_v58, %v2307_v45 }
 0x66c   : > { %2319 = vst [vmem:[#allocation2 + $0x20] sm:$0xff] %v2315_v4  ;;  %v2297_v62 = vpop.f32.mrf.mxu1 }
 0x66d   : > { %v2278_v60 = vpop.f32.mrf.mxu0 }
 0x66e   : > { %v2298_v18 = vadd.f32 %v2297_v62, %v2278_v60 }
 0x670   : > { %v2310_v5 = vmul.f32 %v4715_v38, %v2298_v18 }
 0x672   : > { %v2316_v40 = vpack.c.bf16 %v2310_v5, %v2309_v12 }
 0x674   : > { %2320 = vst [vmem:[#allocation2 + $0x28] sm:$0xff] %v2316_v40  ;;  %v2300_v46 = vpop.f32.mrf.mxu1 }
 0x675   : > { %v2281_v51 = vpop.f32.mrf.mxu0 }
 0x676   : > { %v2301_v43 = vadd.f32 %v2300_v46, %v2281_v51 }
 0x677   : > { %4278 = vmatmul.msk.bf16.gmra.mxu1 %vm834_vm2, %v2365_v8 }
 0x678   : > { %4262 = vmatmul.msk.bf16.gmra.mxu0 %vm834_vm2, %v2365_v8  ;;  %v2312_v63 = vmul.f32 %v4715_v38, %v2301_v43 }
 0x67a   : > { %v2317_v33 = vpack.c.bf16 %v2312_v63, %v2311_v32 }
 0x67c   : > { %2321 = vst [vmem:[#allocation2 + $0x30] sm:$0xff] %v2317_v33  ;;  %v2302_v47 = vpop.f32.mrf.mxu1 }
 0x67d   : > { %v2283_v31 = vpop.f32.mrf.mxu0 }
 0x67e   : > { %v2303_v22 = vadd.f32 %v2302_v47, %v2283_v31 }
 0x680   : > { %v2314_v3 = vmul.f32 %v4715_v38, %v2303_v22 }
 0x682   : > { %v2318_v39 = vpack.c.bf16 %v2314_v3, %v2313_v30 }
 0x684   : > { %2322 = vst [vmem:[#allocation2 + $0x38] sm:$0xff] %v2318_v39  ;;  %v6817_v15 = vpop.f32.mrf.mxu1 }
 0x685   : > { %v6815_v35 = vpop.f32.mrf.mxu0 }
 0x687   : > { %4279 = vmatmul.msk.bf16.gmra.mxu1 %vm834_vm2, %v6783_v29 }
 0x688   : > { %4263 = vmatmul.msk.bf16.gmra.mxu0 %vm834_vm2, %v6783_v29 }
 0x68c   : > { %v6825_v27 = vpop.f32.mrf.mxu1 }
 0x68d   : > { %v6823_v11 = vpop.f32.mrf.mxu0  ;;  %8351 = vst [vmem:[#allocation35_spill] sm:$0xff] %v6825_v27 }
 0x694   : > { %v6829_v16 = vpop.f32.mrf.mxu1 }
 0x695   : > { %v6827_v59 = vpop.f32.mrf.mxu0  ;;  %8353 = vst [vmem:[#allocation12_spill] sm:$0xff] %v6829_v16 }
 0x696   : > { %8352 = vst [vmem:[#allocation33_spill] sm:$0xff] %v6827_v59  ;;  %v2613_v33 = vmax.f32 %v6815_v35, %v6827_v59 }
 0x697   : > { %4280 = vmatmul.msk.bf16.gmra.mxu1 %vm834_vm2, %v6785_v9 }
 0x698   : > { %4264 = vmatmul.msk.bf16.gmra.mxu0 %vm834_vm2, %v6785_v9 }
 0x69c   : > { %v6837_v28 = vpop.f32.mrf.mxu1 }
 0x69d   : > { %v6835_v37 = vpop.f32.mrf.mxu0  ;;  %8355 = vst [vmem:[#allocation10_spill] sm:$0xff] %v6837_v28 }
 0x69e   : > { %8354 = vst [vmem:[#allocation13_spill] sm:$0xff] %v6835_v37  ;;  %v2614_v31 = vmax.f32 %v6823_v11, %v6835_v37 }
 0x6a4   : > { %v6841_v29 = vpop.f32.mrf.mxu1 }
 0x6a5   : > { %v6839_v1 = vpop.f32.mrf.mxu0 }
 0x6a6   : > { %8356 = vst [vmem:[#allocation11_spill] sm:$0xff] %v6839_v1  ;;  %v2615_v44 = vmax.f32 %v2613_v33, %v6839_v1 }
 0x6a7   : > { %4281 = vmatmul.msk.bf16.gmra.mxu1 %vm834_vm2, %v6791_v10 }
 0x6a8   : > { %4265 = vmatmul.msk.bf16.gmra.mxu0 %vm834_vm2, %v6791_v10 }
 0x6ac   : > { %v6849_v14 = vpop.f32.mrf.mxu1 }
 0x6ad   : > { %v6847_v48 = vpop.f32.mrf.mxu0 }
 0x6ae   : > { %8357 = vst [vmem:[#allocation8_spill] sm:$0xff] %v6847_v48  ;;  %v2616_v47 = vmax.f32 %v2614_v31, %v6847_v48 }
 0x6b4   : > { %v6853_v9 = vpop.f32.mrf.mxu1 }
 0x6b5   : > { %v6851_v7 = vpop.f32.mrf.mxu0 }
 0x6b6   : > { %8358 = vst [vmem:[#allocation9_spill] sm:$0xff] %v6851_v7  ;;  %v2617_v3 = vmax.f32 %v2615_v44, %v6851_v7 }
 0x6b7   : > { %4282 = vmatmul.msk.bf16.gmra.mxu1 %vm834_vm2, %v6795_v52 }
 0x6b8   : > { %4266 = vmatmul.msk.bf16.gmra.mxu0 %vm834_vm2, %v6795_v52 }
 0x6bc   : > { %v6861_v61 = vpop.f32.mrf.mxu1 }
 0x6bd   : > { %v6859_v21 = vpop.f32.mrf.mxu0  ;;  %8359 = vst [vmem:[#allocation6_spill] sm:$0xff] %v6861_v61 }
 0x6be   : > { %v2618_v39 = vmax.f32 %v2616_v47, %v6859_v21 }
 0x6c4   : > { %v6865_v10 = vpop.f32.mrf.mxu1 }
 0x6c5   : > { %v6863_v54 = vpop.f32.mrf.mxu0 }
 0x6c7   : > { %4283 = vmatmul.msk.bf16.gmra.mxu1 %vm834_vm2, %v6799_v53 }
 0x6c8   : > { %4267 = vmatmul.msk.bf16.gmra.mxu0 %vm834_vm2, %v6799_v53 }
 0x6cc   : > { %v6873_v17 = vpop.f32.mrf.mxu1 }
 0x6cd   : > { %v6871_v42 = vpop.f32.mrf.mxu0  ;;  %8360 = vst [vmem:[#allocation7_spill] sm:$0xff] %v6873_v17 }
 0x6d4   : > { %v6877_v52 = vpop.f32.mrf.mxu1 }
 0x6d5   : > { %v6875_v49 = vpop.f32.mrf.mxu0 }
 0x6d7   : > { %4284 = vmatmul.msk.bf16.gmra.mxu1 %vm834_vm2, %v6805_v36 }
 0x6d8   : > { %4268 = vmatmul.msk.bf16.gmra.mxu0 %vm834_vm2, %v6805_v36  ;;  %v2366_v36 = vpop.trf.xlu2 }
 0x6dc   : > { %v6885_v6 = vpop.f32.mrf.mxu1 }
 0x6dd   : > { %v6883_v25 = vpop.f32.mrf.mxu0  ;;  %8361 = vst [vmem:[#allocation66_spill] sm:$0xff] %v6885_v6 }
 0x6e4   : > { %v6889_v53 = vpop.f32.mrf.mxu1 }
 0x6e5   : > { %v6887_v19 = vpop.f32.mrf.mxu0 }
 0x6e7   : > { %4285 = vmatmul.msk.bf16.gmra.mxu1 %vm834_vm2, %v6811_v56 }
 0x6e8   : > { %4269 = vmatmul.msk.bf16.gmra.mxu0 %vm834_vm2, %v6811_v56 }
 0x6ec   : > { %v6897_v55 = vpop.f32.mrf.mxu1 }
 0x6ed   : > { %v6895_v41 = vpop.f32.mrf.mxu0  ;;  %8362 = vst [vmem:[#allocation55_spill] sm:$0xff] %v6897_v55 }
 0x6f4   : > { %v6901_v20 = vpop.f32.mrf.mxu1 }
 0x6f5   : > { %v6899_v57 = vpop.f32.mrf.mxu0 }
 0x6f7   : > { %4286 = vmatmul.msk.bf16.gmra.mxu1 %vm834_vm2, %v2366_v36 }
 0x6f8   : > { %4270 = vmatmul.msk.bf16.gmra.mxu0 %vm834_vm2, %v2366_v36  ;;  %v2619_v36 = vmax.f32 %v2617_v3, %v6863_v54 }
 0x6fa   : > { %v2621_v59 = vmax.f32 %v2619_v36, %v6875_v49 }
 0x6fc   : > { %v6907_v50 = vpop.f32.mrf.mxu1  ;;  %v2623_v33 = vmax.f32 %v2621_v59, %v6887_v19  ;;  %v2651_v59 = vmax.f32 %v6825_v27, %v6837_v28 }
 0x6fd   : > { %v6905_v23 = vpop.f32.mrf.mxu0 }
 0x6fe   : > { %v2625_v1 = vmax.f32 %v2623_v33, %v6899_v57 }
 0x704   : > { %v6911_v24 = vpop.f32.mrf.mxu1 }
 0x705   : > { %v6909_v13 = vpop.f32.mrf.mxu0 }
 0x706   : > { %v2627_v47 = vmax.f32 %v2625_v1, %v6909_v13  ;;  %v2653_v1 = vmax.f32 %v2651_v59, %v6849_v14 }
 0x70c   : > { %v6915_v0 = vpop.f32.mrf.mxu1 }
 0x70d   : > { %v6913_v26 = vpop.f32.mrf.mxu0  ;;  %8363 = vst [vmem:[#allocation60_spill] sm:$0xff] %v6915_v0 }
 0x714   : > { %v6919_v45 = vpop.f32.mrf.mxu1 }
 0x715   : > { %v6917_v38 = vpop.f32.mrf.mxu0 }
 0x71c   : > { %v6923_v56 = vpop.f32.mrf.mxu1 }
 0x71d   : > { %v6921_v58 = vpop.f32.mrf.mxu0 }
 0x71e   : > { %8364 = vst [vmem:[#allocation68_spill] sm:$0xff] %v6921_v58 }
 0x724   : > { %v6927_v60 = vpop.f32.mrf.mxu1 }
 0x725   : > { %v6925_v4 = vpop.f32.mrf.mxu0 }
 0x72c   : > { %v6931_v62 = vpop.f32.mrf.mxu1 }
 0x72d   : > { %v6929_v34 = vpop.f32.mrf.mxu0  ;;  %8365 = vst [vmem:[#allocation70_spill] sm:$0xff] %v6931_v62 }
 0x734   : > { %v6935_v12 = vpop.f32.mrf.mxu1 }
 0x735   : > { %v6933_v18 = vpop.f32.mrf.mxu0 }
 0x73c   : > { %v6939_v40 = vpop.f32.mrf.mxu1 }
 0x73d   : > { %v6937_v5 = vpop.f32.mrf.mxu0  ;;  %8366 = vst [vmem:[#allocation30_spill] sm:$0xff] %v6939_v40 }
 0x744   : > { %v6943_v8 = vpop.f32.mrf.mxu1 }
 0x745   : > { %v6941_v51 = vpop.f32.mrf.mxu0  ;;  %8367 = vst [vmem:[#allocation57_spill] sm:$0xff] %v6943_v8 }
 0x74c   : > { %v6947_v46 = vpop.f32.mrf.mxu1 }
 0x74d   : > { %v6945_v2 = vpop.f32.mrf.mxu0  ;;  %8368 = vst [vmem:[#allocation52_spill] sm:$0xff] %v6947_v46 }
 0x754   : > { %v6951_v32 = vpop.f32.mrf.mxu1 }
 0x755   : > { %v6949_v43 = vpop.f32.mrf.mxu0  ;;  %8369 = vst [vmem:[#allocation59_spill] sm:$0xff] %v6951_v32  ;;  %v2620_v32 = vmax.f32 %v2618_v39, %v6871_v42  ;;  %v2629_v39 = vmax.f32 %v2627_v47, %v6917_v38 }
 0x757   : > { %v2622_v37 = vmax.f32 %v2620_v32, %v6883_v25 }
 0x759   : > { %v2624_v31 = vmax.f32 %v2622_v37, %v6895_v41  ;;  %v2631_v37 = vmax.f32 %v2629_v39, %v6925_v4 }
 0x75b   : > { %v2626_v44 = vmax.f32 %v2624_v31, %v6905_v23  ;;  %v2650_v31 = vmax.f32 %v6817_v15, %v6829_v16 }
 0x75c   : > { %v6961_v22 = vpop.f32.mrf.mxu1 }
 0x75d   : > { %v6953_v63 = vpop.f32.mrf.mxu0  ;;  %v2628_v3 = vmax.f32 %v2626_v44, %v6913_v26  ;;  %v2633_v44 = vmax.f32 %v2631_v37, %v6933_v18 }
 0x75f   : > { %v2630_v32 = vmax.f32 %v2628_v3, %v6921_v58  ;;  %v2652_v3 = vmax.f32 %v2650_v31, %v6841_v29  ;;  %v2655_v58 = vmax.f32 %v2653_v1, %v6861_v61  ;;  %v2635_v28 = vmax.f32 %v2633_v44, %v6941_v51 }
 0x761   : > { %v2632_v36 = vmax.f32 %v2630_v32, %v6929_v34  ;;  %v2654_v27 = vmax.f32 %v2652_v3, %v6853_v9  ;;  %v2657_v16 = vmax.f32 %v2655_v58, %v6873_v17  ;;  %v2637_v59 = vmax.f32 %v2635_v28, %v6949_v43 }
 0x763   : > { %v2634_v47 = vmax.f32 %v2632_v36, %v6937_v5  ;;  %v2656_v36 = vmax.f32 %v2654_v27, %v6865_v10  ;;  %v2659_v31 = vmax.f32 %v2657_v16, %v6885_v6 }
 0x764   : > { %v6977_v7 = vpop.f32.mrf.mxu1 }
 0x765   : > { %v6963_v30 = vpop.f32.mrf.mxu0  ;;  %v2636_v39 = vmax.f32 %v2634_v47, %v6945_v2  ;;  %v2658_v47 = vmax.f32 %v2656_v36, %v6877_v52  ;;  %v2661_v3 = vmax.f32 %v2659_v31, %v6897_v55 }
 0x766   : > { %v2639_v1 = vmax.f32 %v2637_v59, %v6963_v30 }
 0x767   : > { %v2638_v37 = vmax.f32 %v2636_v39, %v6953_v63  ;;  %v2660_v39 = vmax.f32 %v2658_v47, %v6889_v53  ;;  %v2663_v27 = vmax.f32 %v2661_v3, %v6907_v50 }
 0x769   : > { %v2662_v16 = vmax.f32 %v2660_v39, %v6901_v20  ;;  %v2665_v59 = vmax.f32 %v2663_v27, %v6915_v0 }
 0x76b   : > { %v2664_v36 = vmax.f32 %v2662_v16, %v6911_v24  ;;  %v2667_v31 = vmax.f32 %v2665_v59, %v6923_v56 }
 0x76c   : > { %v6998_v32 = vpop.f32.mrf.mxu1 }
 0x76d   : > { %v6973_v48 = vpop.f32.mrf.mxu0 }
 0x76e   : > { %v2640_v44 = vmax.f32 %v2638_v37, %v6973_v48 }
 0x774   : > { %v7018_v6 = vpop.f32.mrf.mxu1 }
 0x775   : > { %v6987_v33 = vpop.f32.mrf.mxu0 }
 0x776   : > { %v2641_v58 = vmax.f32 %v2639_v1, %v6987_v33  ;;  %v2666_v1 = vmax.f32 %v2664_v36, %v6919_v45 }
 0x778   : > { %v2668_v3 = vmax.f32 %v2666_v1, %v6927_v60 }
 0x77a   : > { %v2670_v39 = vmax.f32 %v2668_v3, %v6935_v12 }
 0x77c   : > { %v2672_v16 = vmax.f32 %v2670_v39, %v6943_v8  ;;  %v8375_v8 = vld [vmem:[#allocation9_spill] sm:$0xff] }
 0x77d   : > { %v7008_v61 = vpop.f32.mrf.mxu0 }
 0x77e   : > { %v2642_v28 = vmax.f32 %v2640_v44, %v7008_v61  ;;  %v2669_v44 = vmax.f32 %v2667_v31, %v6931_v62 }
 0x780   : > { %v2643_v17 = vmax.f32 %v2641_v58, %v2642_v28  ;;  %v2671_v58 = vmax.f32 %v2669_v44, %v6939_v40 }
 0x782   : > { %v2644_v37 = vrot.slane %v2643_v17, 4  ;;  %v2673_v27 = vmax.f32 %v2671_v58, %v6947_v46  ;;  %v8371_v58 = vld [vmem:[#allocation33_spill] sm:$0xff] }
 0x784   : > { %v2645_v55 = vmax.f32 %v2643_v17, %v2644_v37  ;;  %v2675_v59 = vmax.f32 %v2673_v27, %v6961_v22  ;;  %v7030_v17 = vpop.f32.mrf.mxu1  ;;  %v8370_v37 = vld [vmem:[#allocation59_spill] sm:$0xff] }
 0x785   : > { %v2674_v36 = vmax.f32 %v2672_v16, %v8370_v37  ;;  %v8372_v16 = vld [vmem:[#allocation13_spill] sm:$0xff] }
 0x786   : > { %v2646_v47 = vrot.slane %v2645_v55, 2  ;;  %v2677_v31 = vmax.f32 %v2675_v59, %v6998_v32 }
 0x787   : > { %v2676_v1 = vmax.f32 %v2674_v36, %v6977_v7  ;;  %v8373_v36 = vld [vmem:[#allocation11_spill] sm:$0xff] }
 0x788   : > { %v2647_v28 = vmax.f32 %v2645_v55, %v2646_v47  ;;  %v2679_v55 = vmax.f32 %v2677_v31, %v7030_v17 }
 0x789   : > { %v2678_v44 = vmax.f32 %v2676_v1, %v7018_v6 }
 0x78a   : > { %v2648_v0 = vrot.slane %v2647_v28, 1 }
 0x78b   : > { %v2680_v27 = vmax.f32 %v2678_v44, %v2679_v55 }
 0x78c   : > { %v7034_v62 = vmax.f32 %v2647_v28, %v2648_v0 }
 0x78d   : > { %v2681_v1 = vrot.slane %v2680_v27, 4 }
 0x78e   : > { %v2687_v47 = vsub.f32 %v6815_v35, %v7034_v62  ;;  %v2689_v3 = vsub.f32 %v6823_v11, %v7034_v62  ;;  %v2691_v39 = vsub.f32 %v8371_v58, %v7034_v62  ;;  %v2693_v0 = vsub.f32 %v8372_v16, %v7034_v62  ;;  %v8374_v35 = vld [vmem:[#allocation8_spill] sm:$0xff] }
 0x78f   : > { %v2695_v31 = vsub.f32 %v8373_v36, %v7034_v62  ;;  %v2697_v46 = vsub.f32 %v8374_v35, %v7034_v62  ;;  %v2699_v58 = vsub.f32 %v8375_v8, %v7034_v62  ;;  %v2682_v44 = vmax.f32 %v2680_v27, %v2681_v1 }
 0x790   : > { %v2751_v28 = vmul.f32 1.442695, %v2687_v47  ;;  %v2755_v59 = vmul.f32 1.442695, %v2689_v3  ;;  %v2759_v40 = vmul.f32 1.442695, %v2691_v39  ;;  %v2701_v47 = vsub.f32 %v6859_v21, %v7034_v62 }
 0x791   : > { %v2763_v11 = vmul.f32 1.442695, %v2693_v0  ;;  %v2767_v55 = vmul.f32 1.442695, %v2695_v31  ;;  %v2771_v3 = vmul.f32 1.442695, %v2697_v46  ;;  %v2703_v39 = vsub.f32 %v6863_v54, %v7034_v62 }
 0x792   : > { %4716 = vpow2.f32 %v2751_v28  ;;  %v2705_v0 = vsub.f32 %v6871_v42, %v7034_v62  ;;  %v2775_v8 = vmul.f32 1.442695, %v2699_v58  ;;  %v2683_v27 = vrot.slane %v2682_v44, 2 }
 0x793   : > { %4718 = vpow2.f32 %v2755_v59  ;;  %v2709_v59 = vsub.f32 %v6883_v25, %v7034_v62  ;;  %v2779_v54 = vmul.f32 1.442695, %v2701_v47  ;;  %v2711_v36 = vsub.f32 %v6887_v19, %v7034_v62 }
 0x794   : > { %4720 = vpow2.f32 %v2759_v40  ;;  %v2707_v40 = vsub.f32 %v6875_v49, %v7034_v62  ;;  %v2783_v42 = vmul.f32 1.442695, %v2703_v39  ;;  %v2713_v49 = vsub.f32 %v6895_v41, %v7034_v62 }
 0x795   : > { %4722 = vpow2.f32 %v2763_v11  ;;  %v2787_v35 = vmul.f32 1.442695, %v2705_v0  ;;  %v2715_v11 = vsub.f32 %v6899_v57, %v7034_v62  ;;  %v2717_v19 = vsub.f32 %v6905_v23, %v7034_v62 }
 0x796   : > { %4724 = vpow2.f32 %v2767_v55  ;;  %v2791_v58 = vmul.f32 1.442695, %v2707_v40  ;;  %v2684_v55 = vmax.f32 %v2682_v44, %v2683_v27  ;;  %v2719_v39 = vsub.f32 %v6909_v13, %v7034_v62 }
 0x797   : > { %4726 = vpow2.f32 %v2771_v3  ;;  %v2795_v3 = vmul.f32 1.442695, %v2709_v59  ;;  %v2799_v41 = vmul.f32 1.442695, %v2711_v36  ;;  %v2721_v57 = vsub.f32 %v6913_v26, %v7034_v62  ;;  %v8378_v59 = vld [vmem:[#allocation68_spill] sm:$0xff] }
 0x798   : > { %v7055_v16 = vpop.eup %4716  ;;  %4728 = vpow2.f32 %v2775_v8  ;;  %v2723_v44 = vsub.f32 %v6917_v38, %v7034_v62  ;;  %v2803_v40 = vmul.f32 1.442695, %v2713_v49  ;;  %v2807_v23 = vmul.f32 1.442695, %v2715_v11 }
 0x799   : > { %8376 = vst [vmem:[#allocation65_spill] sm:$0xff] %v7055_v16  ;;  %v7059_v28 = vpop.eup %4718  ;;  %4730 = vpow2.f32 %v2779_v54  ;;  %v2685_v27 = vrot.slane %v2684_v55, 1  ;;  %v2725_v54 = vsub.f32 %v8378_v59, %v7034_v62  ;;  %v2811_v36 = vmul.f32 1.442695, %v2717_v19 }
 0x79a   : > { %8377 = vst [vmem:[#allocation36_spill] sm:$0xff] %v7059_v28  ;;  %v2879_v21 = vadd.f32 %v7059_v28, %v7055_v16  ;;  %v7067_v46 = vpop.eup %4720  ;;  %4732 = vpow2.f32 %v2783_v42  ;;  %v2727_v26 = vsub.f32 %v6925_v4, %v7034_v62  ;;  %v2815_v42 = vmul.f32 1.442695, %v2719_v39 }
 0x79b   : > { %v7074_v1 = vpop.eup %4722  ;;  %4734 = vpow2.f32 %v2787_v35  ;;  %v2729_v49 = vsub.f32 %v6929_v34, %v7034_v62  ;;  %v2731_v35 = vsub.f32 %v6933_v18, %v7034_v62  ;;  %v2819_v11 = vmul.f32 1.442695, %v2721_v57 }
 0x79c   : > { %v2880_v31 = vadd.f32 %v7067_v46, %v2879_v21  ;;  %v7081_v47 = vpop.eup %4724  ;;  %4736 = vpow2.f32 %v2791_v58  ;;  %v7111_v19 = vmax.f32 %v2684_v55, %v2685_v27  ;;  %v2743_v39 = vsub.f32 %v6963_v30, %v7034_v62 }
 0x79d   : > { %v7088_v8 = vpop.eup %4726  ;;  %4738 = vpow2.f32 %v2795_v3  ;;  %v2827_v34 = vmul.f32 1.442695, %v2725_v54  ;;  %v2747_v18 = vsub.f32 %v6987_v33, %v7034_v62  ;;  %v2749_v55 = vsub.f32 %v7008_v61, %v7034_v62  ;;  %v8379_v54 = vld [vmem:[#allocation35_spill] sm:$0xff] }
 0x79e   : > { %v2881_v25 = vadd.f32 %v7074_v1, %v2880_v31  ;;  %v7095_v13 = vpop.eup %4728  ;;  %4740 = vpow2.f32 %v2799_v41  ;;  %v2839_v30 = vmul.f32 1.442695, %v2731_v35  ;;  %v2688_v33 = vsub.f32 %v6817_v15, %v7111_v19  ;;  %v8380_v35 = vld [vmem:[#allocation12_spill] sm:$0xff] }
 0x79f   : > { %v7102_v31 = vpop.eup %4730  ;;  %4742 = vpow2.f32 %v2803_v40  ;;  %v2835_v40 = vmul.f32 1.442695, %v2729_v49  ;;  %v2863_v59 = vmul.f32 1.442695, %v2743_v39  ;;  %v2745_v61 = vsub.f32 %v6973_v48, %v7034_v62 }
 0x7a0   : > { %v2882_v0 = vadd.f32 %v7081_v47, %v2881_v25  ;;  %v7108_v58 = vpop.eup %4732  ;;  %4744 = vpow2.f32 %v2807_v23  ;;  %v2823_v25 = vmul.f32 1.442695, %v2723_v44  ;;  %v2875_v15 = vmul.f32 1.442695, %v2749_v55 }
 0x7a1   : > { %v7113_v3 = vpop.eup %4734  ;;  %4746 = vpow2.f32 %v2811_v36  ;;  %v2690_v36 = vsub.f32 %v8379_v54, %v7111_v19  ;;  %v2753_v48 = vmul.f32 1.442695, %v2688_v33  ;;  %v2696_v33 = vsub.f32 %v6841_v29, %v7111_v19 }
 0x7a2   : > { %v2883_v21 = vadd.f32 %v7088_v8, %v2882_v0  ;;  %v7117_v41 = vpop.eup %4736  ;;  %4748 = vpow2.f32 %v2815_v42  ;;  %v2831_v0 = vmul.f32 1.442695, %v2727_v26  ;;  %v2871_v42 = vmul.f32 1.442695, %v2747_v18  ;;  %v8381_v18 = vld [vmem:[#allocation10_spill] sm:$0xff] }
 0x7a3   : > { %v7122_v44 = vpop.eup %4738  ;;  %4750 = vpow2.f32 %v2819_v11  ;;  %v2692_v11 = vsub.f32 %v8380_v35, %v7111_v19  ;;  %v2737_v29 = vsub.f32 %v6945_v2, %v7034_v62 }
 0x7a4   : > { %v2884_v38 = vadd.f32 %v7095_v13, %v2883_v21  ;;  %v7126_v23 = vpop.eup %4740  ;;  %4752 = vpow2.f32 %v2823_v25 }
 0x7a5   : > { %v7131_v27 = vpop.eup %4742  ;;  %4754 = vpow2.f32 %v2827_v34  ;;  %v2851_v16 = vmul.f32 1.442695, %v2737_v29 }
 0x7a6   : > { %v2885_v4 = vadd.f32 %v7102_v31, %v2884_v38  ;;  %v7135_v26 = vpop.eup %4744  ;;  %4756 = vpow2.f32 %v2831_v0  ;;  %v2694_v0 = vsub.f32 %v8381_v18, %v7111_v19  ;;  %v2700_v18 = vsub.f32 %v6853_v9, %v7111_v19 }
 0x7a7   : > { %v7140_v49 = vpop.eup %4746  ;;  %4758 = vpow2.f32 %v2835_v40  ;;  %v2741_v40 = vsub.f32 %v6953_v63, %v7034_v62 }
 0x7a8   : > { %v2886_v57 = vadd.f32 %v7108_v58, %v2885_v4  ;;  %v7144_v25 = vpop.eup %4748  ;;  %v2739_v4 = vsub.f32 %v6949_v43, %v7034_v62  ;;  %4760 = vpow2.f32 %v2839_v30 }
 0x7a9   : > { %v7149_v34 = vpop.eup %4750  ;;  %4762 = vpow2.f32 %v2863_v59  ;;  %v2761_v59 = vmul.f32 1.442695, %v2692_v11  ;;  %v2859_v11 = vmul.f32 1.442695, %v2741_v40 }
 0x7aa   : > { %v2887_v21 = vadd.f32 %v7113_v3, %v2886_v57  ;;  %v2757_v57 = vmul.f32 1.442695, %v2690_v36  ;;  %v7153_v55 = vpop.eup %4752  ;;  %4764 = vpow2.f32 %v2871_v42  ;;  %v2735_v36 = vsub.f32 %v6941_v51, %v7034_v62 }
 0x7ab   : > { %v7158_v30 = vpop.eup %4754  ;;  %4766 = vpow2.f32 %v2875_v15  ;;  %v2765_v42 = vmul.f32 1.442695, %v2694_v0  ;;  %v2733_v0 = vsub.f32 %v6937_v5, %v7034_v62  ;;  %v2967_v5 = vpack.c.bf16 %v7140_v49, %v7135_v26 }
 0x7ac   : > { %v2888_v38 = vadd.f32 %v7117_v41, %v2887_v21  ;;  %v2867_v21 = vmul.f32 1.442695, %v2745_v61  ;;  %v7162_v54 = vpop.eup %4756  ;;  %4768 = vpow2.f32 %v2753_v48  ;;  %v2698_v61 = vsub.f32 %v6849_v14, %v7111_v19  ;;  %v8385_v48 = vld [vmem:[#allocation6_spill] sm:$0xff] }
 0x7ad   : > { %v7167_v63 = vpop.eup %4758  ;;  %4770 = vpow2.f32 %v2757_v57  ;;  %v2769_v14 = vmul.f32 1.442695, %v2696_v33  ;;  %v2702_v9 = vsub.f32 %v8385_v48, %v7111_v19  ;;  %v2843_v48 = vmul.f32 1.442695, %v2733_v0  ;;  %3005 = vmatpush.bf16.msra.mxu2 %v2967_v5 }
 0x7ae   : > { %v2889_v39 = vadd.f32 %v7122_v44, %v2888_v38  ;;  %v2855_v38 = vmul.f32 1.442695, %v2739_v4  ;;  %v7171_v15 = vpop.eup %4760  ;;  %4772 = vpow2.f32 %v2867_v21  ;;  %v8383_v21 = vld [vmem:[#allocation43_spill] sm:$0xff]  ;;  %v2773_v33 = vmul.f32 1.442695, %v2698_v61 }
 0x7af   : > { %v7176_v4 = vpop.eup %4762  ;;  %4774 = vpow2.f32 %v2761_v59 }
 0x7b0   : > { %v2890_v43 = vadd.f32 %v7126_v23, %v2889_v39  ;;  %v8382_v39 = vld [vmem:[#allocation42_spill] sm:$0xff]  ;;  %v7181_v57 = vpop.eup %4764  ;;  %4776 = vpow2.f32 %v2855_v38  ;;  %v2704_v38 = vsub.f32 %v6865_v10, %v7111_v19  ;;  %v8387_v10 = vld [vmem:[#allocation7_spill] sm:$0xff] }
 0x7b1   : > { %v7186_v40 = vpop.eup %4766  ;;  %4778 = vpow2.f32 %v2765_v42 }
 0x7b2   : > { %v2891_v35 = vadd.f32 %v7131_v27, %v2890_v43  ;;  %v2847_v43 = vmul.f32 1.442695, %v2735_v36  ;;  %v7194_v59 = vpop.eup %4768  ;;  %4780 = vpow2.f32 %v2859_v11  ;;  %v2983_v42 = vpack.c.bf16 %v7186_v40, %v7181_v57 }
 0x7b3   : > { %v7199_v36 = vpop.eup %4770  ;;  %4782 = vpow2.f32 %v2769_v14  ;;  %v2781_v14 = vmul.f32 1.442695, %v2702_v9  ;;  %v2785_v5 = vmul.f32 1.442695, %v2704_v38 }
 0x7b4   : > { %v2892_v51 = vadd.f32 %v7135_v26, %v2891_v35  ;;  %v8384_v35 = vld [vmem:[#allocation44_spill] sm:$0xff]  ;;  %8386 = vst [vmem:[#allocation37_spill] sm:$0xff] %v7199_v36  ;;  %v7205_v61 = vpop.eup %4772  ;;  %4784 = vpow2.f32 %v2847_v43  ;;  %v2916_v11 = vadd.f32 %v7199_v36, %v7194_v59  ;;  %3024 = vmatpush.bf16.msra.mxu3 %v2983_v42  ;;  %v2748_v36 = vsub.f32 %v7018_v6, %v7111_v19 }
 0x7b5   : > { %v7190_v28 = vpack.c.bf16 %v8384_v35, %v8383_v21  ;;  %v7210_v26 = vpop.eup %4774  ;;  %4786 = vpow2.f32 %v2773_v33  ;;  %v2965_v21 = vpack.c.bf16 %v7131_v27, %v7126_v23  ;;  %v2981_v9 = vpack.c.bf16 %v7205_v61, %v7176_v4  ;;  %v8389_v27 = vld [vmem:[#allocation55_spill] sm:$0xff] }
 0x7b6   : > { %v2893_v2 = vadd.f32 %v7140_v49, %v2892_v51  ;;  %v2777_v51 = vmul.f32 1.442695, %v2700_v18  ;;  %v2706_v18 = vsub.f32 %v8387_v10, %v7111_v19  ;;  %4788 = vpow2.f32 %v2851_v16 }
 0x7b7   : > { %v2917_v43 = vadd.f32 %v7210_v26, %v2916_v11  ;;  %3006 = vmatpush.bf16.msra.mxu2 %v2965_v21  ;;  %v2714_v49 = vsub.f32 %v8389_v27, %v7111_v19 }
 0x7b8   : > { %v2894_v62 = vadd.f32 %v7144_v25, %v2893_v2  ;;  %v7215_v2 = vpop.eup %4776  ;;  %4790 = vpow2.f32 %v2777_v51  ;;  %v2789_v51 = vmul.f32 1.442695, %v2706_v18  ;;  %3025 = vmatpush.bf16.msra.mxu3 %v2981_v9 }
 0x7b9   : > { %v7221_v35 = vpop.eup %4778  ;;  %4792 = vpow2.f32 %v2843_v48  ;;  %v2712_v48 = vsub.f32 %v6889_v53, %v7111_v19  ;;  %v2716_v53 = vsub.f32 %v6901_v20, %v7111_v19 }
 0x7ba   : > { %v2895_v29 = vadd.f32 %v7149_v34, %v2894_v62  ;;  %v2708_v62 = vsub.f32 %v6877_v52, %v7111_v19  ;;  %v7227_v33 = vpop.eup %4780  ;;  %v8388_v52 = vld [vmem:[#allocation66_spill] sm:$0xff]  ;;  %4794 = vpow2.f32 %v2781_v14 }
 0x7bb   : > { %v7232_v23 = vpop.eup %4782  ;;  %v2710_v38 = vsub.f32 %v8388_v52, %v7111_v19  ;;  %4796 = vpow2.f32 %v2785_v5  ;;  %v2979_v18 = vpack.c.bf16 %v7227_v33, %v7215_v2  ;;  %v8390_v5 = vld [vmem:[#allocation60_spill] sm:$0xff] }
 0x7bc   : > { %v2896_v0 = vadd.f32 %v7153_v55, %v2895_v29  ;;  %v2918_v29 = vadd.f32 %v7221_v35, %v2917_v43  ;;  %v4785_v11 = vpop.eup %4784  ;;  %v2963_v43 = vpack.c.bf16 %v7122_v44, %v7117_v41  ;;  %v2793_v14 = vmul.f32 1.442695, %v2708_v62 }
 0x7bd   : > { %v7243_v21 = vpop.eup %4786  ;;  %v2720_v62 = vsub.f32 %v6911_v24, %v7111_v19  ;;  %v2722_v27 = vsub.f32 %v8390_v5, %v7111_v19  ;;  %4798 = vpow2.f32 %v2789_v51  ;;  %v2797_v52 = vmul.f32 1.442695, %v2710_v38  ;;  %3026 = vmatpush.bf16.msra.mxu3 %v2979_v18 }
 0x7be   : > { %v2897_v42 = vadd.f32 %v7158_v30, %v2896_v0  ;;  %v2919_v0 = vadd.f32 %v7232_v23, %v2918_v29  ;;  %v4789_v9 = vpop.eup %4788  ;;  %v2718_v29 = vsub.f32 %v6907_v50, %v7111_v19  ;;  %3007 = vmatpush.bf16.msra.mxu2 %v2963_v43  ;;  %v2724_v50 = vsub.f32 %v6919_v45, %v7111_v19 }
 0x7bf   : > { %v7255_v44 = vpop.eup %4790  ;;  %v2961_v43 = vpack.c.bf16 %v7113_v3, %v7108_v58  ;;  %v2726_v24 = vsub.f32 %v6923_v56, %v7111_v19  ;;  %4800 = vpow2.f32 %v2793_v14  ;;  %v2801_v51 = vmul.f32 1.442695, %v2712_v48  ;;  %v8391_v58 = vld [vmem:[#allocation70_spill] sm:$0xff] }
 0x7c0   : > { %v2898_v10 = vadd.f32 %v7162_v54, %v2897_v42  ;;  %v2920_v41 = vadd.f32 %v7243_v21, %v2919_v0  ;;  %v2977_v38 = vpack.c.bf16 %v4789_v9, %v4785_v11  ;;  %v2805_v5 = vmul.f32 1.442695, %v2714_v49 }
 0x7c1   : > { %4802 = vpow2.f32 %v2797_v52  ;;  %v2809_v56 = vmul.f32 1.442695, %v2716_v53  ;;  %v2813_v14 = vmul.f32 1.442695, %v2718_v29  ;;  %v2959_v49 = vpack.c.bf16 %v7102_v31, %v7095_v13 }
 0x7c2   : > { %v2899_v42 = vadd.f32 %v7167_v63, %v2898_v10  ;;  %v4793_v10 = vpop.eup %4792  ;;  %v2921_v0 = vadd.f32 %v7255_v44, %v2920_v41  ;;  %3008 = vmatpush.bf16.msra.mxu2 %v2961_v43  ;;  %3027 = vmatpush.bf16.msra.mxu3 %v2977_v38  ;;  %v2744_v43 = vsub.f32 %v6977_v7, %v7111_v19  ;;  %4804 = vpow2.f32 %v2801_v51 }
 0x7c3   : > { %v7267_v16 = vpop.eup %4794  ;;  %v2750_v3 = vsub.f32 %v7030_v17, %v7111_v19  ;;  %v2975_v6 = vpack.c.bf16 %v4793_v10, %v7171_v15  ;;  %4806 = vpow2.f32 %v2805_v5  ;;  %v2746_v13 = vsub.f32 %v6998_v32, %v7111_v19 }
 0x7c4   : > { %v2900_v20 = vadd.f32 %v7171_v15, %v2899_v42  ;;  %v2728_v42 = vsub.f32 %v6927_v60, %v7111_v19  ;;  %v2922_v45 = vadd.f32 %v7267_v16, %v2921_v0  ;;  %v7274_v41 = vpop.eup %4796  ;;  %4808 = vpow2.f32 %v2809_v56 }
 0x7c5   : > { %v7283_v0 = vpop.eup %4798  ;;  %v2821_v31 = vmul.f32 1.442695, %v2722_v27  ;;  %v2873_v7 = vmul.f32 1.442695, %v2748_v36  ;;  %4810 = vpow2.f32 %v2813_v14  ;;  %v2740_v32 = vsub.f32 %v8370_v37, %v7111_v19 }
 0x7c6   : > { %v2901_v18 = vadd.f32 %v4793_v10, %v2900_v20  ;;  %v2923_v20 = vadd.f32 %v7274_v41, %v2922_v45  ;;  %3009 = vmatpush.bf16.msra.mxu2 %v2959_v49  ;;  %v7291_v52 = vpop.eup %4800  ;;  %3028 = vmatpush.bf16.msra.mxu3 %v2975_v6  ;;  %v2732_v10 = vsub.f32 %v6935_v12, %v7111_v19  ;;  %v2877_v51 = vmul.f32 1.442695, %v2750_v3  ;;  %v8392_v3 = vld [vmem:[#allocation57_spill] sm:$0xff]  ;;  %v8393_v49 = vld [vmem:[#allocation52_spill] sm:$0xff] }
 0x7c7   : > { %v2973_v36 = vpack.c.bf16 %v7167_v63, %v7162_v54  ;;  %v2865_v27 = vmul.f32 1.442695, %v2744_v43  ;;  %v2869_v5 = vmul.f32 1.442695, %v2746_v13  ;;  %v2955_v63 = vpack.c.bf16 %v7074_v1, %v7067_v46  ;;  %v8395_v6 = vld [vmem:[#allocation36_spill] sm:$0xff] }
 0x7c8   : > { %v2902_v48 = vadd.f32 %v4785_v11, %v2901_v18  ;;  %v2817_v11 = vmul.f32 1.442695, %v2720_v62  ;;  %v2924_v29 = vadd.f32 %v7283_v0, %v2923_v20  ;;  %v7299_v62 = vpop.eup %4802  ;;  %v2825_v18 = vmul.f32 1.442695, %v2724_v50 }
 0x7c9   : > { %v2736_v56 = vsub.f32 %v8392_v3, %v7111_v19  ;;  %v2857_v20 = vmul.f32 1.442695, %v2740_v32  ;;  %v2738_v43 = vsub.f32 %v8393_v49, %v7111_v19  ;;  %v2833_v46 = vmul.f32 1.442695, %v2728_v42 }
 0x7ca   : > { %v2903_v53 = vadd.f32 %v4789_v9, %v2902_v48  ;;  %v2925_v15 = vadd.f32 %v7291_v52, %v2924_v29  ;;  %v2957_v9 = vpack.c.bf16 %v7088_v8, %v7081_v47  ;;  %4812 = vpow2.f32 %v2817_v11  ;;  %v7309_v47 = vpop.eup %4804  ;;  %3029 = vmatpush.bf16.msra.mxu3 %v2973_v36 }
 0x7cb   : > { %v2742_v8 = vsub.f32 %v6961_v22, %v7111_v19  ;;  %4814 = vpow2.f32 %v2821_v31  ;;  %v4807_v37 = vpop.eup %4806  ;;  %v2829_v48 = vmul.f32 1.442695, %v2726_v24  ;;  %v2971_v22 = vpack.c.bf16 %v7158_v30, %v7153_v55 }
 0x7cc   : > { %v2904_v17 = vadd.f32 %v7215_v2, %v2903_v53  ;;  %v2926_v38 = vadd.f32 %v7299_v62, %v2925_v15  ;;  %3010 = vmatpush.bf16.msra.mxu2 %v2957_v9  ;;  %4816 = vpow2.f32 %v2873_v7  ;;  %v8396_v29 = vsub.f32 %v8391_v58, %v7111_v19 }
 0x7cd   : > { %4818 = vpow2.f32 %v2877_v51  ;;  %v2861_v1 = vmul.f32 1.442695, %v2742_v8  ;;  %v2969_v42 = vpack.c.bf16 %v7149_v34, %v7144_v25  ;;  %v2849_v7 = vmul.f32 1.442695, %v2736_v56  ;;  %v8399_v25 = vld [vmem:[#allocation30_spill] sm:$0xff] }
 0x7ce   : > { %v2905_v2 = vadd.f32 %v7227_v33, %v2904_v17  ;;  %v2927_v54 = vadd.f32 %v7309_v47, %v2926_v38  ;;  %v4809_v33 = vpop.eup %4808  ;;  %4820 = vpow2.f32 %v2865_v27  ;;  %3030 = vmatpush.bf16.msra.mxu3 %v2971_v22  ;;  %v2837_v60 = vmul.f32 1.442695, %v8396_v29  ;;  %v8403_v22 = vld [vmem:[#allocation47_spill] sm:$0xff] }
 0x7cf   : > { %v4811_v50 = vpop.eup %4810  ;;  %4822 = vpow2.f32 %v2869_v5  ;;  %v8397_v9 = vunpack.c.l.b16 %v8382_v39  ;;  %v8398_v58 = vunpack.c.l.b16 %v7190_v28  ;;  %v2734_v34 = vsub.f32 %v8399_v25, %v7111_v19 }
 0x7d0   : > { %v2906_v45 = vadd.f32 %v7176_v4, %v2905_v2  ;;  %v2928_v4 = vadd.f32 %v4807_v37, %v2927_v54  ;;  %3011 = vmatpush.bf16.msra.mxu2 %v2955_v63  ;;  %v7327_v24 = vpop.eup %4812  ;;  %4824 = vpow2.f32 %v2825_v18  ;;  %v2968_v13 = vpack.c.bf16 %v4811_v50, %v4809_v33 }
 0x7d1   : > { %v7332_v11 = vpop.eup %4814  ;;  %4826 = vpow2.f32 %v2829_v48  ;;  %v7350_v32 = vpack.c.b16 %v8398_v58, %v8397_v9  ;;  %v2853_v51 = vmul.f32 1.442695, %v2738_v43  ;;  %v8400_v38 = vunpack.c.h.b16 %v8382_v39  ;;  %v8402_v48 = vld [vmem:[#allocation46_spill] sm:$0xff]  ;;  %v8405_v9 = vld [vmem:[#allocation28_spill] sm:$0xff]  ;;  %v8406_v58 = vld [vmem:[#allocation29_spill] sm:$0xff] }
 0x7d2   : > { %v2907_v14 = vadd.f32 %v7205_v61, %v2906_v45  ;;  %v2929_v30 = vadd.f32 %v4809_v33, %v2928_v4  ;;  %v8394_v61 = vld [vmem:[#allocation65_spill] sm:$0xff]  ;;  %v7339_v31 = vpop.eup %4816  ;;  %4828 = vpow2.f32 %v2857_v20  ;;  %3031 = vmatpush.bf16.msra.mxu3 %v2969_v42  ;;  %v8401_v8 = vunpack.c.h.b16 %v7190_v28 }
 0x7d3   : > { %v2953_v53 = vpack.c.bf16 %v8395_v6, %v8394_v61  ;;  %v7344_v15 = vpop.eup %4818  ;;  %4830 = vpow2.f32 %v2861_v1  ;;  %v2841_v5 = vmul.f32 1.442695, %v2732_v10  ;;  %v2966_v45 = vpack.c.bf16 %v4807_v37, %v7309_v47 }
 0x7d4   : > { %v2908_v55 = vadd.f32 %v7181_v57, %v2907_v14  ;;  %v2930_v17 = vadd.f32 %v4811_v50, %v2929_v30  ;;  %4832 = vpow2.f32 %v2833_v46  ;;  %v2984_v2 = vpack.c.bf16 %v7344_v15, %v7339_v31 }
 0x7d5   : > { %3012 = vmatpush.bf16.msra.mxu2 %v2953_v53  ;;  %v7365_v18 = vpack.c.b16 %v8401_v8, %v8400_v38  ;;  %4834 = vpow2.f32 %v2837_v60  ;;  %v2845_v28 = vmul.f32 1.442695, %v2734_v34  ;;  %v2964_v47 = vpack.c.bf16 %v7299_v62, %v7291_v52  ;;  %v8404_v62 = vld [vmem:[#allocation45_spill] sm:$0xff]  ;;  %v8409_v8 = vld [vmem:[#allocation24_spill] sm:$0xff] }
 0x7d6   : > { %v7342_v57 = vadd.f32 %v7186_v40, %v2908_v55  ;;  %v7354_v40 = vpop.eup %4820  ;;  %v2931_v36 = vadd.f32 %v7327_v24, %v2930_v17  ;;  %4836 = vpow2.f32 %v2849_v7  ;;  %3062 = vmatpush.bf16.msrb.mxu3 %v2984_v2  ;;  %v765_v50 = vpack.c.bf16 %v8403_v22, %v8402_v48 }
 0x7d7   : > { %v7359_v27 = vpop.eup %4822  ;;  %4838 = vpow2.f32 %v2853_v51  ;;  %3032 = vmatmul.bf16.vlgmr.msra.gmra.mxu3 %v7365_v18  ;;  %v2962_v43 = vpack.c.bf16 %v7283_v0, %v7274_v41  ;;  %v2993_v1 = vunpack.c.l.b16 %v8404_v62  ;;  %v2994_v53 = vunpack.c.h.b16 %v8404_v62  ;;  %v8407_v51 = vld [vmem:[#allocation26_spill] sm:$0xff] }
 0x7d8   : > { %3013 = vmatmul.bf16.vlgmr.msra.gmra.mxu2 %v7350_v32  ;;  %v7372_v54 = vpop.eup %4824  ;;  %v2932_v63 = vadd.f32 %v7332_v11, %v2931_v36  ;;  %v2982_v19 = vpack.c.bf16 %v7359_v27, %v7354_v40  ;;  %4840 = vpow2.f32 %v2841_v5  ;;  %v2995_v55 = vunpack.c.l.b16 %v765_v50  ;;  %v8410_v5 = vld [vmem:[#allocation25_spill] sm:$0xff] }
 0x7d9   : > { %3043 = vmatpush.bf16.msrb.mxu2 %v2968_v13  ;;  %v7375_v39 = vpop.eup %4826  ;;  %4842 = vpow2.f32 %v2845_v28  ;;  %v2996_v29 = vunpack.c.h.b16 %v765_v50  ;;  %v2960_v60 = vpack.c.bf16 %v7267_v16, %v7255_v44  ;;  %v2958_v17 = vpack.c.bf16 %v7243_v21, %v7232_v23  ;;  %v8408_v16 = vld [vmem:[#allocation27_spill] sm:$0xff]  ;;  %v8411_v21 = vld [vmem:[#allocation22_spill] sm:$0xff] }
 0x7da   : > { %v4829_v33 = vpop.eup %4828  ;;  %v2933_v12 = vadd.f32 %v7372_v54, %v2932_v63  ;;  %3063 = vmatpush.bf16.msrb.mxu3 %v2982_v19  ;;  %v2999_v41 = vpack.c.b16 %v2995_v55, %v2993_v1  ;;  %v737_v25 = vpack.c.bf16 %v8406_v58, %v8405_v9  ;;  %v736_v44 = vpack.c.bf16 %v8408_v16, %v8407_v51  ;;  %v8412_v28 = vld [vmem:[#allocation23_spill] sm:$0xff] }
 0x7db   : > { %v4831_v10 = vpop.eup %4830  ;;  %v3000_v7 = vpack.c.b16 %v2996_v29, %v2994_v53  ;;  %v2956_v38 = vpack.c.bf16 %v7221_v35, %v7210_v26  ;;  %v2910_v55 = vrot.slane %v7342_v57, 4 }
 0x7dc   : > { %v4833_v37 = vpop.eup %4832  ;;  %v2934_v3 = vadd.f32 %v7375_v39, %v2933_v12  ;;  %v2980_v4 = vpack.c.bf16 %v4831_v10, %v4829_v33  ;;  %v3153_v63 = vunpack.c.l.b16 %v737_v25  ;;  %v734_v12 = vpack.c.bf16 %v8412_v28, %v8411_v21 }
 0x7dd   : > { %3044 = vmatpush.bf16.msrb.mxu2 %v2966_v45  ;;  %v4835_v56 = vpop.eup %4834  ;;  %v735_v45 = vpack.c.bf16 %v8410_v5, %v8409_v8  ;;  %v3151_v19 = vunpack.c.l.b16 %v736_v44 }
 0x7de   : > { %v4837_v14 = vpop.eup %4836  ;;  %v2935_v20 = vadd.f32 %v4833_v37, %v2934_v3  ;;  %3064 = vmatpush.bf16.msrb.mxu3 %v2980_v4  ;;  %v2974_v2 = vpack.c.bf16 %v4835_v56, %v4833_v37  ;;  %v3154_v37 = vunpack.c.h.b16 %v737_v25  ;;  %v8413_v3 = vld [vmem:[#allocation37_spill] sm:$0xff]  ;;  %v3147_v22 = vunpack.c.l.b16 %v734_v12  ;;  %v3127_v4 = vpop.trf.xlu0 }
 0x7df   : > { %v4839_v49 = vpop.eup %4838  ;;  %v2954_v26 = vpack.c.bf16 %v8413_v3, %v7194_v59  ;;  %v3149_v35 = vunpack.c.l.b16 %v735_v45 }
 0x7e0   : > { %v2936_v46 = vadd.f32 %v4835_v56, %v2935_v20  ;;  %v4841_v52 = vpop.eup %4840  ;;  %v2978_v61 = vpack.c.bf16 %v4839_v49, %v4837_v14  ;;  %v3157_v56 = vpack.c.b16 %v3153_v63, %v3151_v19  ;;  %v3148_v20 = vunpack.c.h.b16 %v734_v12 }
 0x7e1   : > { %3045 = vmatpush.bf16.msrb.mxu2 %v2964_v47  ;;  %v4843_v6 = vpop.eup %4842  ;;  %v3155_v59 = vpack.c.b16 %v3149_v35, %v3147_v22 }
 0x7e2   : > { %v2937_v30 = vadd.f32 %v4841_v52, %v2936_v46  ;;  %3065 = vmatpush.bf16.msrb.mxu3 %v2978_v61  ;;  %v2976_v13 = vpack.c.bf16 %v4843_v6, %v4841_v52 }
 0x7e4   : > { %v2938_v42 = vadd.f32 %v4843_v6, %v2937_v30  ;;  %v2911_v6 = vadd.f32 %v2910_v55, %v7342_v57 }
 0x7e5   : > { %3046 = vmatpush.bf16.msrb.mxu2 %v2962_v43 }
 0x7e6   : > { %v2939_v0 = vadd.f32 %v4837_v14, %v2938_v42  ;;  %3066 = vmatpush.bf16.msrb.mxu3 %v2976_v13  ;;  %v3150_v14 = vunpack.c.h.b16 %v735_v45  ;;  %v2912_v42 = vrot.slane %v2911_v6, 2 }
 0x7e7   : > { %3037 = vmatmul.bf16.gmra.mxu3 %v3000_v7 }
 0x7e8   : > { %3018 = vmatmul.bf16.gmra.mxu2 %v2999_v41  ;;  %v2940_v34 = vadd.f32 %v4839_v49, %v2939_v0  ;;  %v2913_v13 = vadd.f32 %v2912_v42, %v2911_v6 }
 0x7e9   : > { %3047 = vmatpush.bf16.msrb.mxu2 %v2960_v60 }
 0x7ea   : > { %v2941_v36 = vadd.f32 %v4829_v33, %v2940_v34  ;;  %3067 = vmatpush.bf16.msrb.mxu3 %v2974_v2  ;;  %v2972_v33 = vpack.c.bf16 %v7375_v39, %v7372_v54  ;;  %v2914_v9 = vrot.slane %v2913_v13, 1 }
 0x7ec   : > { %v2942_v23 = vadd.f32 %v4831_v10, %v2941_v36  ;;  %v3152_v10 = vunpack.c.h.b16 %v736_v44  ;;  %v2915_v51 = vadd.f32 %v2914_v9, %v2913_v13 }
 0x7ed   : > { %3048 = vmatpush.bf16.msrb.mxu2 %v2958_v17 }
 0x7ee   : > { %v2943_v47 = vadd.f32 %v7354_v40, %v2942_v23  ;;  %3068 = vmatpush.bf16.msrb.mxu3 %v2972_v33  ;;  %v2970_v40 = vpack.c.bf16 %v7332_v11, %v7327_v24  ;;  %v3158_v54 = vpack.c.b16 %v3154_v37, %v3152_v10  ;;  %4844 = vrcp.f32 %v2915_v51 }
 0x7f0   : > { %v2944_v48 = vadd.f32 %v7359_v27, %v2943_v47  ;;  %v3156_v27 = vpack.c.b16 %v3150_v14, %v3148_v20 }
 0x7f1   : > { %3049 = vmatpush.bf16.msrb.mxu2 %v2956_v38 }
 0x7f2   : > { %v2945_v50 = vadd.f32 %v7339_v31, %v2944_v48  ;;  %3069 = vmatpush.bf16.msrb.mxu3 %v2970_v40  ;;  %v7416_v31 = vpop.trf.xlu0 }
 0x7f4   : > { %v2946_v39 = vadd.f32 %v7344_v15, %v2945_v50  ;;  %v4845_v8 = vpop.eup %4844 }
 0x7f5   : > { %3050 = vmatpush.bf16.msrb.mxu2 %v2954_v26 }
 0x7f6   : > { %3306 = vmatpush.bf16.msra.mxu3 %v3158_v54  ;;  %v2947_v30 = vrot.slane %v2946_v39, 4 }
 0x7f7   : > { %3070 = vmatmul.bf16.vlgmr.msrb.gmra.mxu3 %v7365_v18 }
 0x7f8   : > { %3051 = vmatmul.bf16.vlgmr.msrb.gmra.mxu2 %v7350_v32  ;;  %v2948_v29 = vadd.f32 %v2947_v30, %v2946_v39 }
 0x7f9   : > { %3217 = vmatpush.bf16.msra.mxu2 %v3157_v56 }
 0x7fa   : > { %3307 = vmatpush.bf16.msra.mxu3 %v3156_v27  ;;  %v3129_v24 = vpop.trf.xlu0 }
 0x7fd   : > { %3218 = vmatpush.bf16.msra.mxu2 %v3155_v59 }
 0x802   : > { %v7418_v11 = vpop.trf.xlu0 }
 0x807   : > { %3075 = vmatmul.bf16.gmra.mxu3 %v3000_v7 }
 0x808   : > { %3056 = vmatmul.bf16.gmra.mxu2 %v2999_v41  ;;  %v2949_v41 = vrot.slane %v2948_v29, 2 }
 0x80a   : > { %v3131_v15 = vpop.trf.xlu0  ;;  %v2950_v17 = vadd.f32 %v2949_v41, %v2948_v29 }
 0x80c   : > { %v2951_v25 = vrot.slane %v2950_v17, 1 }
 0x80e   : > { %v2952_v16 = vadd.f32 %v2951_v25, %v2950_v17 }
 0x810   : > { %4846 = vrcp.f32 %v2952_v16 }
 0x812   : > { %v7424_v32 = vpop.trf.xlu0 }
 0x816   : > { %v4847_v45 = vpop.eup %4846 }
 0x817   : > { %4303 = vmatmul.msk.bf16.vlgmr.msra.gmra.mxu3 %vm834_vm2, %v3127_v4 }
 0x818   : > { %4287 = vmatmul.msk.bf16.vlgmr.msra.gmra.mxu2 %vm834_vm2, %v3127_v4 }
 0x81a   : > { %v3133_v49 = vpop.trf.xlu0 }
 0x822   : > { %v7428_v18 = vpop.trf.xlu0 }
 0x827   : > { %4304 = vmatmul.msk.bf16.gmra.mxu3 %vm834_vm2, %v3129_v24 }
 0x828   : > { %4288 = vmatmul.msk.bf16.gmra.mxu2 %vm834_vm2, %v3129_v24 }
 0x82a   : > { %v3135_v43 = vpop.trf.xlu0 }
 0x832   : > { %v7432_v46 = vpop.trf.xlu0 }
 0x837   : > { %4305 = vmatmul.msk.bf16.gmra.mxu3 %vm834_vm2, %v3131_v15 }
 0x838   : > { %4289 = vmatmul.msk.bf16.gmra.mxu2 %vm834_vm2, %v3131_v15 }
 0x83a   : > { %v3137_v1 = vpop.trf.xlu0 }
 0x842   : > { %v7438_v60 = vpop.trf.xlu0 }
 0x847   : > { %4306 = vmatmul.msk.bf16.gmra.mxu3 %vm834_vm2, %v3133_v49 }
 0x848   : > { %4290 = vmatmul.msk.bf16.gmra.mxu2 %vm834_vm2, %v3133_v49 }
 0x84a   : > { %v3139_v58 = vpop.trf.xlu0 }
 0x852   : > { %v7444_v36 = vpop.trf.xlu0 }
 0x857   : > { %4307 = vmatmul.msk.bf16.gmra.mxu3 %vm834_vm2, %v3135_v43 }
 0x858   : > { %4291 = vmatmul.msk.bf16.gmra.mxu2 %vm834_vm2, %v3135_v43 }
 0x85a   : > { %v3033_v62 = vpop.f32.mrf.mxu3  ;;  %v3141_v19 = vpop.trf.xlu0 }
 0x85b   : > { %v3014_v52 = vpop.f32.mrf.mxu2 }
 0x85c   : > { %v3034_v2 = vadd.f32 %v3033_v62, %v3014_v52 }
 0x85e   : > { %v3083_v63 = vmul.f32 %v4845_v8, %v3034_v2 }
 0x862   : > { %v3035_v53 = vpop.f32.mrf.mxu3 }
 0x863   : > { %v3016_v61 = vpop.f32.mrf.mxu2 }
 0x864   : > { %v3036_v12 = vadd.f32 %v3035_v53, %v3016_v61 }
 0x866   : > { %v3085_v37 = vmul.f32 %v4845_v8, %v3036_v12 }
 0x867   : > { %4308 = vmatmul.msk.bf16.gmra.mxu3 %vm834_vm2, %v3137_v1 }
 0x868   : > { %4292 = vmatmul.msk.bf16.gmra.mxu2 %vm834_vm2, %v3137_v1 }
 0x86a   : > { %v3038_v7 = vpop.f32.mrf.mxu3 }
 0x86b   : > { %v3019_v0 = vpop.f32.mrf.mxu2 }
 0x86c   : > { %v3039_v56 = vadd.f32 %v3038_v7, %v3019_v0 }
 0x86e   : > { %v3087_v22 = vmul.f32 %v4845_v8, %v3039_v56 }
 0x872   : > { %v3040_v57 = vpop.f32.mrf.mxu3 }
 0x873   : > { %v3021_v34 = vpop.f32.mrf.mxu2 }
 0x874   : > { %v3041_v54 = vadd.f32 %v3040_v57, %v3021_v34 }
 0x876   : > { %v3089_v20 = vmul.f32 %v4845_v8, %v3041_v54 }
 0x877   : > { %4309 = vmatmul.msk.bf16.gmra.mxu3 %vm834_vm2, %v3139_v58 }
 0x878   : > { %4293 = vmatmul.msk.bf16.gmra.mxu2 %vm834_vm2, %v3139_v58 }
 0x87a   : > { %v3071_v38 = vpop.f32.mrf.mxu3 }
 0x87b   : > { %v3052_v44 = vpop.f32.mrf.mxu2 }
 0x87c   : > { %v3072_v5 = vadd.f32 %v3071_v38, %v3052_v44 }
 0x87e   : > { %v3084_v23 = vmul.f32 %v4847_v45, %v3072_v5 }
 0x880   : > { %v3091_v21 = vpack.c.bf16 %v3084_v23, %v3083_v63 }
 0x882   : > { %3095 = vst [vmem:[#allocation2 + $0x40] sm:$0xff] %v3091_v21  ;;  %v3073_v47 = vpop.f32.mrf.mxu3 }
 0x883   : > { %v3054_v28 = vpop.f32.mrf.mxu2 }
 0x884   : > { %v3074_v33 = vadd.f32 %v3073_v47, %v3054_v28 }
 0x886   : > { %v3086_v3 = vmul.f32 %v4847_v45, %v3074_v33 }
 0x887   : > { %4310 = vmatmul.msk.bf16.gmra.mxu3 %vm834_vm2, %v3141_v19 }
 0x888   : > { %4294 = vmatmul.msk.bf16.gmra.mxu2 %vm834_vm2, %v3141_v19  ;;  %v3092_v26 = vpack.c.bf16 %v3086_v3, %v3085_v37 }
 0x88a   : > { %3096 = vst [vmem:[#allocation2 + $0x48] sm:$0xff] %v3092_v26  ;;  %v3076_v48 = vpop.f32.mrf.mxu3 }
 0x88b   : > { %v3057_v35 = vpop.f32.mrf.mxu2 }
 0x88c   : > { %v3077_v10 = vadd.f32 %v3076_v48, %v3057_v35 }
 0x88e   : > { %v3088_v50 = vmul.f32 %v4847_v45, %v3077_v10 }
 0x890   : > { %v3093_v40 = vpack.c.bf16 %v3088_v50, %v3087_v22 }
 0x892   : > { %3097 = vst [vmem:[#allocation2 + $0x50] sm:$0xff] %v3093_v40  ;;  %v3078_v39 = vpop.f32.mrf.mxu3 }
 0x893   : > { %v3059_v14 = vpop.f32.mrf.mxu2 }
 0x894   : > { %v3079_v59 = vadd.f32 %v3078_v39, %v3059_v14 }
 0x896   : > { %v3090_v27 = vmul.f32 %v4847_v45, %v3079_v59 }
 0x897   : > { %4311 = vmatmul.msk.bf16.gmra.mxu3 %vm834_vm2, %v7416_v31 }
 0x898   : > { %4295 = vmatmul.msk.bf16.gmra.mxu2 %vm834_vm2, %v7416_v31  ;;  %v3094_v4 = vpack.c.bf16 %v3090_v27, %v3089_v20 }
 0x89a   : > { %3098 = vst [vmem:[#allocation2 + $0x58] sm:$0xff] %v3094_v4  ;;  %v7454_v15 = vpop.f32.mrf.mxu3 }
 0x89b   : > { %v7452_v24 = vpop.f32.mrf.mxu2 }
 0x8a2   : > { %v7458_v43 = vpop.f32.mrf.mxu3 }
 0x8a3   : > { %v7456_v49 = vpop.f32.mrf.mxu2  ;;  %8414 = vst [vmem:[#allocation38_spill] sm:$0xff] %v7458_v43 }
 0x8a7   : > { %4312 = vmatmul.msk.bf16.gmra.mxu3 %vm834_vm2, %v7418_v11 }
 0x8a8   : > { %4296 = vmatmul.msk.bf16.gmra.mxu2 %vm834_vm2, %v7418_v11 }
 0x8aa   : > { %v7466_v62 = vpop.f32.mrf.mxu3 }
 0x8ab   : > { %v7464_v52 = vpop.f32.mrf.mxu2  ;;  %8416 = vst [vmem:[#allocation32_spill] sm:$0xff] %v7466_v62 }
 0x8ac   : > { %8415 = vst [vmem:[#allocation31_spill] sm:$0xff] %v7464_v52  ;;  %v3389_v40 = vmax.f32 %v7452_v24, %v7464_v52 }
 0x8b2   : > { %v7470_v1 = vpop.f32.mrf.mxu3 }
 0x8b3   : > { %v7468_v31 = vpop.f32.mrf.mxu2  ;;  %8418 = vst [vmem:[#allocation54_spill] sm:$0xff] %v7470_v1 }
 0x8b4   : > { %8417 = vst [vmem:[#allocation53_spill] sm:$0xff] %v7468_v31  ;;  %v3390_v14 = vmax.f32 %v7456_v49, %v7468_v31 }
 0x8b7   : > { %4313 = vmatmul.msk.bf16.gmra.mxu3 %vm834_vm2, %v7424_v32 }
 0x8b8   : > { %4297 = vmatmul.msk.bf16.gmra.mxu2 %vm834_vm2, %v7424_v32 }
 0x8ba   : > { %v7478_v30 = vpop.f32.mrf.mxu3 }
 0x8bb   : > { %v7476_v55 = vpop.f32.mrf.mxu2 }
 0x8bc   : > { %8419 = vst [vmem:[#allocation56_spill] sm:$0xff] %v7476_v55  ;;  %v3391_v54 = vmax.f32 %v3389_v40, %v7476_v55 }
 0x8c2   : > { %v7482_v11 = vpop.f32.mrf.mxu3 }
 0x8c3   : > { %v7480_v61 = vpop.f32.mrf.mxu2 }
 0x8c4   : > { %8420 = vst [vmem:[#allocation58_spill] sm:$0xff] %v7480_v61  ;;  %v3392_v39 = vmax.f32 %v3390_v14, %v7480_v61 }
 0x8c7   : > { %4314 = vmatmul.msk.bf16.gmra.mxu3 %vm834_vm2, %v7428_v18 }
 0x8c8   : > { %4298 = vmatmul.msk.bf16.gmra.mxu2 %vm834_vm2, %v7428_v18 }
 0x8ca   : > { %v7490_v53 = vpop.f32.mrf.mxu3 }
 0x8cb   : > { %v7488_v6 = vpop.f32.mrf.mxu2 }
 0x8cc   : > { %8421 = vst [vmem:[#allocation64_spill] sm:$0xff] %v7488_v6  ;;  %v3393_v27 = vmax.f32 %v3391_v54, %v7488_v6 }
 0x8d2   : > { %v7494_v32 = vpop.f32.mrf.mxu3 }
 0x8d3   : > { %v7492_v29 = vpop.f32.mrf.mxu2  ;;  %8422 = vst [vmem:[#allocation67_spill] sm:$0xff] %v7494_v32 }
 0x8d4   : > { %v3394_v4 = vmax.f32 %v3392_v39, %v7492_v29 }
 0x8d7   : > { %4315 = vmatmul.msk.bf16.gmra.mxu3 %vm834_vm2, %v7432_v46 }
 0x8d8   : > { %4299 = vmatmul.msk.bf16.gmra.mxu2 %vm834_vm2, %v7432_v46 }
 0x8da   : > { %v7502_v41 = vpop.f32.mrf.mxu3 }
 0x8db   : > { %v7500_v42 = vpop.f32.mrf.mxu2 }
 0x8e2   : > { %v7506_v18 = vpop.f32.mrf.mxu3 }
 0x8e3   : > { %v7504_v0 = vpop.f32.mrf.mxu2  ;;  %8423 = vst [vmem:[#allocation69_spill] sm:$0xff] %v7506_v18 }
 0x8e7   : > { %4316 = vmatmul.msk.bf16.gmra.mxu3 %vm834_vm2, %v7438_v60 }
 0x8e8   : > { %4300 = vmatmul.msk.bf16.gmra.mxu2 %vm834_vm2, %v7438_v60  ;;  %v3142_v60 = vpop.trf.xlu0 }
 0x8ea   : > { %v7514_v7 = vpop.f32.mrf.mxu3 }
 0x8eb   : > { %v7512_v13 = vpop.f32.mrf.mxu2 }
 0x8f2   : > { %v7518_v46 = vpop.f32.mrf.mxu3 }
 0x8f3   : > { %v7516_v17 = vpop.f32.mrf.mxu2  ;;  %8424 = vst [vmem:[#allocation63_spill] sm:$0xff] %v7518_v46 }
 0x8f7   : > { %4317 = vmatmul.msk.bf16.gmra.mxu3 %vm834_vm2, %v7444_v36 }
 0x8f8   : > { %4301 = vmatmul.msk.bf16.gmra.mxu2 %vm834_vm2, %v7444_v36 }
 0x8fa   : > { %v7526_v58 = vpop.f32.mrf.mxu3 }
 0x8fb   : > { %v7524_v9 = vpop.f32.mrf.mxu2 }
 0x902   : > { %v7530_v34 = vpop.f32.mrf.mxu3 }
 0x903   : > { %v7528_v25 = vpop.f32.mrf.mxu2  ;;  %8425 = vst [vmem:[#allocation71_spill] sm:$0xff] %v7530_v34 }
 0x907   : > { %4318 = vmatmul.msk.bf16.gmra.mxu3 %vm834_vm2, %v3142_v60 }
 0x908   : > { %4302 = vmatmul.msk.bf16.gmra.mxu2 %vm834_vm2, %v3142_v60  ;;  %v3395_v60 = vmax.f32 %v3393_v27, %v7500_v42 }
 0x90a   : > { %v7536_v57 = vpop.f32.mrf.mxu3  ;;  %v3397_v52 = vmax.f32 %v3395_v60, %v7512_v13 }
 0x90b   : > { %v7534_v51 = vpop.f32.mrf.mxu2 }
 0x90c   : > { %v3399_v40 = vmax.f32 %v3397_v52, %v7524_v9  ;;  %v3427_v52 = vmax.f32 %v7458_v43, %v7470_v1 }
 0x90e   : > { %v3401_v55 = vmax.f32 %v3399_v40, %v7534_v51 }
 0x912   : > { %v7540_v44 = vpop.f32.mrf.mxu3 }
 0x913   : > { %v7538_v16 = vpop.f32.mrf.mxu2 }
 0x91a   : > { %v7544_v2 = vpop.f32.mrf.mxu3 }
 0x91b   : > { %v7542_v36 = vpop.f32.mrf.mxu2 }
 0x91c   : > { %v3403_v39 = vmax.f32 %v3401_v55, %v7542_v36  ;;  %v3429_v55 = vmax.f32 %v3427_v52, %v7482_v11 }
 0x922   : > { %v7548_v8 = vpop.f32.mrf.mxu3 }
 0x923   : > { %v7546_v38 = vpop.f32.mrf.mxu2  ;;  %8426 = vst [vmem:[#allocation40_spill] sm:$0xff] %v7548_v8 }
 0x92a   : > { %v7552_v45 = vpop.f32.mrf.mxu3 }
 0x92b   : > { %v7550_v5 = vpop.f32.mrf.mxu2 }
 0x932   : > { %v7556_v23 = vpop.f32.mrf.mxu3 }
 0x933   : > { %v7554_v63 = vpop.f32.mrf.mxu2 }
 0x934   : > { %8427 = vst [vmem:[#allocation41_spill] sm:$0xff] %v7554_v63 }
 0x93a   : > { %v7560_v28 = vpop.f32.mrf.mxu3 }
 0x93b   : > { %v7558_v21 = vpop.f32.mrf.mxu2 }
 0x942   : > { %v7564_v19 = vpop.f32.mrf.mxu3 }
 0x943   : > { %v7562_v12 = vpop.f32.mrf.mxu2  ;;  %8428 = vst [vmem:[#allocation39_spill] sm:$0xff] %v7564_v19 }
 0x94a   : > { %v7568_v33 = vpop.f32.mrf.mxu3 }
 0x94b   : > { %v7566_v47 = vpop.f32.mrf.mxu2 }
 0x952   : > { %v7572_v3 = vpop.f32.mrf.mxu3 }
 0x953   : > { %v7570_v37 = vpop.f32.mrf.mxu2  ;;  %8429 = vst [vmem:[#allocation20_spill] sm:$0xff] %v7572_v3 }
 0x95a   : > { %v7576_v35 = vpop.f32.mrf.mxu3 }
 0x95b   : > { %v7574_v26 = vpop.f32.mrf.mxu2  ;;  %8430 = vst [vmem:[#allocation21_spill] sm:$0xff] %v7576_v35 }
 0x962   : > { %v7580_v48 = vpop.f32.mrf.mxu3 }
 0x963   : > { %v7578_v56 = vpop.f32.mrf.mxu2  ;;  %8431 = vst [vmem:[#allocation18_spill] sm:$0xff] %v7580_v48 }
 0x96a   : > { %v7584_v22 = vpop.f32.mrf.mxu3 }
 0x96b   : > { %v7582_v10 = vpop.f32.mrf.mxu2  ;;  %8432 = vst [vmem:[#allocation19_spill] sm:$0xff] %v7584_v22  ;;  %v3396_v22 = vmax.f32 %v3394_v4, %v7504_v0  ;;  %v3405_v4 = vmax.f32 %v3403_v39, %v7550_v5 }
 0x96d   : > { %v3398_v31 = vmax.f32 %v3396_v22, %v7516_v17 }
 0x96f   : > { %v3400_v14 = vmax.f32 %v3398_v31, %v7528_v25  ;;  %v3407_v31 = vmax.f32 %v3405_v4, %v7558_v21 }
 0x971   : > { %v3402_v54 = vmax.f32 %v3400_v14, %v7538_v16  ;;  %v3426_v14 = vmax.f32 %v7454_v15, %v7466_v62 }
 0x972   : > { %v7594_v59 = vpop.f32.mrf.mxu3 }
 0x973   : > { %v7586_v50 = vpop.f32.mrf.mxu2  ;;  %v3404_v27 = vmax.f32 %v3402_v54, %v7546_v38  ;;  %v3409_v54 = vmax.f32 %v3407_v31, %v7566_v47 }
 0x975   : > { %v3406_v22 = vmax.f32 %v3404_v27, %v7554_v63  ;;  %v3428_v27 = vmax.f32 %v3426_v14, %v7478_v30  ;;  %v3431_v63 = vmax.f32 %v3429_v55, %v7494_v32  ;;  %v3411_v1 = vmax.f32 %v3409_v54, %v7574_v26 }
 0x977   : > { %v3408_v60 = vmax.f32 %v3406_v22, %v7562_v12  ;;  %v3430_v43 = vmax.f32 %v3428_v27, %v7490_v53  ;;  %v3433_v62 = vmax.f32 %v3431_v63, %v7506_v18  ;;  %v3413_v52 = vmax.f32 %v3411_v1, %v7582_v10 }
 0x979   : > { %v3410_v39 = vmax.f32 %v3408_v60, %v7570_v37  ;;  %v3432_v60 = vmax.f32 %v3430_v43, %v7502_v41  ;;  %v3435_v14 = vmax.f32 %v3433_v62, %v7518_v46 }
 0x97a   : > { %v7610_v6 = vpop.f32.mrf.mxu3 }
 0x97b   : > { %v7596_v20 = vpop.f32.mrf.mxu2  ;;  %v3412_v4 = vmax.f32 %v3410_v39, %v7578_v56  ;;  %v3434_v39 = vmax.f32 %v3432_v60, %v7514_v7  ;;  %v3437_v27 = vmax.f32 %v3435_v14, %v7530_v34 }
 0x97c   : > { %v3415_v55 = vmax.f32 %v3413_v52, %v7596_v20 }
 0x97d   : > { %v3414_v31 = vmax.f32 %v3412_v4, %v7586_v50  ;;  %v3436_v4 = vmax.f32 %v3434_v39, %v7526_v58  ;;  %v3439_v43 = vmax.f32 %v3437_v27, %v7540_v44 }
 0x97f   : > { %v3438_v62 = vmax.f32 %v3436_v4, %v7536_v57  ;;  %v3441_v52 = vmax.f32 %v3439_v43, %v7548_v8 }
 0x981   : > { %v3440_v60 = vmax.f32 %v3438_v62, %v7544_v2  ;;  %v3443_v14 = vmax.f32 %v3441_v52, %v7556_v23 }
 0x982   : > { %v7631_v22 = vpop.f32.mrf.mxu3 }
 0x983   : > { %v7606_v61 = vpop.f32.mrf.mxu2 }
 0x984   : > { %v3416_v54 = vmax.f32 %v3414_v31, %v7606_v61 }
 0x98a   : > { %v7651_v46 = vpop.f32.mrf.mxu3 }
 0x98b   : > { %v7620_v40 = vpop.f32.mrf.mxu2 }
 0x98c   : > { %v3417_v63 = vmax.f32 %v3415_v55, %v7620_v40  ;;  %v3442_v55 = vmax.f32 %v3440_v60, %v7552_v45 }
 0x98e   : > { %v3444_v27 = vmax.f32 %v3442_v55, %v7560_v28 }
 0x990   : > { %v3446_v4 = vmax.f32 %v3444_v27, %v7568_v33 }
 0x992   : > { %v3448_v62 = vmax.f32 %v3446_v4, %v7576_v35  ;;  %v8438_v35 = vld [vmem:[#allocation64_spill] sm:$0xff] }
 0x993   : > { %v7641_v32 = vpop.f32.mrf.mxu2 }
 0x994   : > { %v3418_v1 = vmax.f32 %v3416_v54, %v7641_v32  ;;  %v3445_v54 = vmax.f32 %v3443_v14, %v7564_v19 }
 0x996   : > { %v3419_v18 = vmax.f32 %v3417_v63, %v3418_v1  ;;  %v3447_v63 = vmax.f32 %v3445_v54, %v7572_v3 }
 0x998   : > { %v3420_v31 = vrot.slane %v3419_v18, 4  ;;  %v3449_v43 = vmax.f32 %v3447_v63, %v7580_v48  ;;  %v8434_v63 = vld [vmem:[#allocation31_spill] sm:$0xff] }
 0x99a   : > { %v3421_v34 = vmax.f32 %v3419_v18, %v3420_v31  ;;  %v3451_v52 = vmax.f32 %v3449_v43, %v7594_v59  ;;  %v7663_v18 = vpop.f32.mrf.mxu3  ;;  %v8433_v31 = vld [vmem:[#allocation19_spill] sm:$0xff] }
 0x99b   : > { %v3450_v60 = vmax.f32 %v3448_v62, %v8433_v31  ;;  %v8435_v62 = vld [vmem:[#allocation53_spill] sm:$0xff] }
 0x99c   : > { %v3422_v39 = vrot.slane %v3421_v34, 2  ;;  %v3453_v14 = vmax.f32 %v3451_v52, %v7631_v22 }
 0x99d   : > { %v3452_v55 = vmax.f32 %v3450_v60, %v7610_v6  ;;  %v8436_v60 = vld [vmem:[#allocation56_spill] sm:$0xff] }
 0x99e   : > { %v3423_v1 = vmax.f32 %v3421_v34, %v3422_v39  ;;  %v3455_v34 = vmax.f32 %v3453_v14, %v7663_v18 }
 0x99f   : > { %v3454_v54 = vmax.f32 %v3452_v55, %v7651_v46 }
 0x9a0   : > { %v3424_v8 = vrot.slane %v3423_v1, 1 }
 0x9a1   : > { %v3456_v43 = vmax.f32 %v3454_v54, %v3455_v34 }
 0x9a2   : > { %v7667_v19 = vmax.f32 %v3423_v1, %v3424_v8 }
 0x9a3   : > { %v3457_v55 = vrot.slane %v3456_v43, 4 }
 0x9a4   : > { %v3463_v39 = vsub.f32 %v7452_v24, %v7667_v19  ;;  %v3465_v27 = vsub.f32 %v7456_v49, %v7667_v19  ;;  %v3467_v4 = vsub.f32 %v8434_v63, %v7667_v19  ;;  %v3469_v8 = vsub.f32 %v8435_v62, %v7667_v19  ;;  %v8437_v24 = vld [vmem:[#allocation58_spill] sm:$0xff] }
 0x9a5   : > { %v3471_v14 = vsub.f32 %v8436_v60, %v7667_v19  ;;  %v3473_v48 = vsub.f32 %v8437_v24, %v7667_v19  ;;  %v3475_v63 = vsub.f32 %v8438_v35, %v7667_v19  ;;  %v3458_v54 = vmax.f32 %v3456_v43, %v3457_v55 }
 0x9a6   : > { %v3527_v1 = vmul.f32 1.442695, %v3463_v39  ;;  %v3531_v52 = vmul.f32 1.442695, %v3465_v27  ;;  %v3535_v3 = vmul.f32 1.442695, %v3467_v4  ;;  %v3477_v39 = vsub.f32 %v7492_v29, %v7667_v19 }
 0x9a7   : > { %v3539_v49 = vmul.f32 1.442695, %v3469_v8  ;;  %v3543_v34 = vmul.f32 1.442695, %v3471_v14  ;;  %v3547_v27 = vmul.f32 1.442695, %v3473_v48  ;;  %v3479_v4 = vsub.f32 %v7500_v42, %v7667_v19 }
 0x9a8   : > { %4848 = vpow2.f32 %v3527_v1  ;;  %v3481_v8 = vsub.f32 %v7504_v0, %v7667_v19  ;;  %v3551_v35 = vmul.f32 1.442695, %v3475_v63  ;;  %v3459_v43 = vrot.slane %v3458_v54, 2 }
 0x9a9   : > { %4850 = vpow2.f32 %v3531_v52  ;;  %v3485_v52 = vsub.f32 %v7516_v17, %v7667_v19  ;;  %v3555_v42 = vmul.f32 1.442695, %v3477_v39  ;;  %v3487_v60 = vsub.f32 %v7524_v9, %v7667_v19 }
 0x9aa   : > { %4852 = vpow2.f32 %v3535_v3  ;;  %v3483_v3 = vsub.f32 %v7512_v13, %v7667_v19  ;;  %v3559_v0 = vmul.f32 1.442695, %v3479_v4  ;;  %v3489_v13 = vsub.f32 %v7528_v25, %v7667_v19 }
 0x9ab   : > { %4854 = vpow2.f32 %v3539_v49  ;;  %v3563_v24 = vmul.f32 1.442695, %v3481_v8  ;;  %v3491_v49 = vsub.f32 %v7534_v51, %v7667_v19  ;;  %v3493_v9 = vsub.f32 %v7538_v16, %v7667_v19 }
 0x9ac   : > { %4856 = vpow2.f32 %v3543_v34  ;;  %v3567_v63 = vmul.f32 1.442695, %v3483_v3  ;;  %v3460_v34 = vmax.f32 %v3458_v54, %v3459_v43  ;;  %v3495_v4 = vsub.f32 %v7542_v36, %v7667_v19 }
 0x9ad   : > { %4858 = vpow2.f32 %v3547_v27  ;;  %v3571_v27 = vmul.f32 1.442695, %v3485_v52  ;;  %v3575_v25 = vmul.f32 1.442695, %v3487_v60  ;;  %v3497_v51 = vsub.f32 %v7546_v38, %v7667_v19  ;;  %v8441_v52 = vld [vmem:[#allocation41_spill] sm:$0xff] }
 0x9ae   : > { %v7688_v62 = vpop.eup %4848  ;;  %4860 = vpow2.f32 %v3551_v35  ;;  %v3499_v54 = vsub.f32 %v7550_v5, %v7667_v19  ;;  %v3579_v3 = vmul.f32 1.442695, %v3489_v13  ;;  %v3583_v16 = vmul.f32 1.442695, %v3491_v49 }
 0x9af   : > { %8439 = vst [vmem:[#allocation16_spill] sm:$0xff] %v7688_v62  ;;  %v7692_v1 = vpop.eup %4850  ;;  %4862 = vpow2.f32 %v3555_v42  ;;  %v3461_v43 = vrot.slane %v3460_v34, 1  ;;  %v3501_v42 = vsub.f32 %v8441_v52, %v7667_v19  ;;  %v3587_v60 = vmul.f32 1.442695, %v3493_v9 }
 0x9b0   : > { %8440 = vst [vmem:[#allocation17_spill] sm:$0xff] %v7692_v1  ;;  %v3655_v29 = vadd.f32 %v7692_v1, %v7688_v62  ;;  %v7700_v48 = vpop.eup %4852  ;;  %4864 = vpow2.f32 %v3559_v0  ;;  %v3503_v38 = vsub.f32 %v7558_v21, %v7667_v19  ;;  %v3591_v0 = vmul.f32 1.442695, %v3495_v4 }
 0x9b1   : > { %v7707_v55 = vpop.eup %4854  ;;  %4866 = vpow2.f32 %v3563_v24  ;;  %v3505_v13 = vsub.f32 %v7562_v12, %v7667_v19  ;;  %v3507_v24 = vsub.f32 %v7566_v47, %v7667_v19  ;;  %v3595_v49 = vmul.f32 1.442695, %v3497_v51 }
 0x9b2   : > { %v3656_v14 = vadd.f32 %v7700_v48, %v3655_v29  ;;  %v7714_v39 = vpop.eup %4856  ;;  %4868 = vpow2.f32 %v3567_v63  ;;  %v7744_v9 = vmax.f32 %v3460_v34, %v3461_v43  ;;  %v3519_v4 = vsub.f32 %v7596_v20, %v7667_v19 }
 0x9b3   : > { %v7721_v35 = vpop.eup %4858  ;;  %4870 = vpow2.f32 %v3571_v27  ;;  %v3603_v12 = vmul.f32 1.442695, %v3501_v42  ;;  %v3523_v47 = vsub.f32 %v7620_v40, %v7667_v19  ;;  %v3525_v34 = vsub.f32 %v7641_v32, %v7667_v19  ;;  %v8442_v42 = vld [vmem:[#allocation38_spill] sm:$0xff] }
 0x9b4   : > { %v3657_v17 = vadd.f32 %v7707_v55, %v3656_v14  ;;  %v7728_v36 = vpop.eup %4860  ;;  %4872 = vpow2.f32 %v3575_v25  ;;  %v3615_v20 = vmul.f32 1.442695, %v3507_v24  ;;  %v3464_v40 = vsub.f32 %v7454_v15, %v7744_v9  ;;  %v8443_v24 = vld [vmem:[#allocation32_spill] sm:$0xff] }
 0x9b5   : > { %v7735_v14 = vpop.eup %4862  ;;  %4874 = vpow2.f32 %v3579_v3  ;;  %v3611_v3 = vmul.f32 1.442695, %v3505_v13  ;;  %v3639_v52 = vmul.f32 1.442695, %v3519_v4  ;;  %v3521_v32 = vsub.f32 %v7606_v61, %v7667_v19 }
 0x9b6   : > { %v3658_v8 = vadd.f32 %v7714_v39, %v3657_v17  ;;  %v7741_v63 = vpop.eup %4864  ;;  %4876 = vpow2.f32 %v3583_v16  ;;  %v3599_v17 = vmul.f32 1.442695, %v3499_v54  ;;  %v3651_v15 = vmul.f32 1.442695, %v3525_v34 }
 0x9b7   : > { %v7746_v27 = vpop.eup %4866  ;;  %4878 = vpow2.f32 %v3587_v60  ;;  %v3466_v60 = vsub.f32 %v8442_v42, %v7744_v9  ;;  %v3529_v61 = vmul.f32 1.442695, %v3464_v40  ;;  %v3472_v40 = vsub.f32 %v7478_v30, %v7744_v9 }
 0x9b8   : > { %v3659_v29 = vadd.f32 %v7721_v35, %v3658_v8  ;;  %v7750_v25 = vpop.eup %4868  ;;  %4880 = vpow2.f32 %v3591_v0  ;;  %v3607_v8 = vmul.f32 1.442695, %v3503_v38  ;;  %v3647_v0 = vmul.f32 1.442695, %v3523_v47  ;;  %v8444_v47 = vld [vmem:[#allocation54_spill] sm:$0xff] }
 0x9b9   : > { %v7755_v54 = vpop.eup %4870  ;;  %4882 = vpow2.f32 %v3595_v49  ;;  %v3468_v49 = vsub.f32 %v8443_v24, %v7744_v9  ;;  %v3513_v30 = vsub.f32 %v7578_v56, %v7667_v19 }
 0x9ba   : > { %v3660_v5 = vadd.f32 %v7728_v36, %v3659_v29  ;;  %v7759_v16 = vpop.eup %4872  ;;  %4884 = vpow2.f32 %v3599_v17 }
 0x9bb   : > { %v7764_v43 = vpop.eup %4874  ;;  %4886 = vpow2.f32 %v3603_v12  ;;  %v3627_v62 = vmul.f32 1.442695, %v3513_v30 }
 0x9bc   : > { %v3661_v21 = vadd.f32 %v7735_v14, %v3660_v5  ;;  %v7768_v38 = vpop.eup %4876  ;;  %4888 = vpow2.f32 %v3607_v8  ;;  %v3470_v8 = vsub.f32 %v8444_v47, %v7744_v9  ;;  %v3476_v47 = vsub.f32 %v7490_v53, %v7744_v9 }
 0x9bd   : > { %v7773_v13 = vpop.eup %4878  ;;  %4890 = vpow2.f32 %v3611_v3  ;;  %v3517_v3 = vsub.f32 %v7586_v50, %v7667_v19 }
 0x9be   : > { %v3662_v51 = vadd.f32 %v7741_v63, %v3661_v21  ;;  %v7777_v17 = vpop.eup %4880  ;;  %v3515_v21 = vsub.f32 %v7582_v10, %v7667_v19  ;;  %4892 = vpow2.f32 %v3615_v20 }
 0x9bf   : > { %v7782_v12 = vpop.eup %4882  ;;  %4894 = vpow2.f32 %v3639_v52  ;;  %v3537_v52 = vmul.f32 1.442695, %v3468_v49  ;;  %v3635_v49 = vmul.f32 1.442695, %v3517_v3 }
 0x9c0   : > { %v3663_v29 = vadd.f32 %v7746_v27, %v3662_v51  ;;  %v3533_v51 = vmul.f32 1.442695, %v3466_v60  ;;  %v7786_v34 = vpop.eup %4884  ;;  %4896 = vpow2.f32 %v3647_v0  ;;  %v3511_v60 = vsub.f32 %v7574_v26, %v7667_v19 }
 0x9c1   : > { %v7791_v20 = vpop.eup %4886  ;;  %4898 = vpow2.f32 %v3651_v15  ;;  %v3541_v0 = vmul.f32 1.442695, %v3470_v8  ;;  %v3509_v8 = vsub.f32 %v7570_v37, %v7667_v19  ;;  %v3743_v37 = vpack.c.bf16 %v7773_v13, %v7768_v38 }
 0x9c2   : > { %v3664_v5 = vadd.f32 %v7750_v25, %v3663_v29  ;;  %v3643_v29 = vmul.f32 1.442695, %v3521_v32  ;;  %v7795_v42 = vpop.eup %4888  ;;  %4900 = vpow2.f32 %v3529_v61  ;;  %v3474_v32 = vsub.f32 %v7482_v11, %v7744_v9  ;;  %v8448_v61 = vld [vmem:[#allocation67_spill] sm:$0xff] }
 0x9c3   : > { %v7800_v50 = vpop.eup %4890  ;;  %4902 = vpow2.f32 %v3533_v51  ;;  %v3545_v11 = vmul.f32 1.442695, %v3472_v40  ;;  %v3478_v53 = vsub.f32 %v8448_v61, %v7744_v9  ;;  %v3619_v61 = vmul.f32 1.442695, %v3509_v8  ;;  %3781 = vmatpush.bf16.msrb.mxu0 %v3743_v37 }
 0x9c4   : > { %v3665_v4 = vadd.f32 %v7755_v54, %v3664_v5  ;;  %v3631_v5 = vmul.f32 1.442695, %v3515_v21  ;;  %v7804_v15 = vpop.eup %4892  ;;  %4904 = vpow2.f32 %v3643_v29  ;;  %v8446_v29 = vld [vmem:[#allocation49_spill] sm:$0xff]  ;;  %v3549_v40 = vmul.f32 1.442695, %v3474_v32 }
 0x9c5   : > { %v7809_v21 = vpop.eup %4894  ;;  %4906 = vpow2.f32 %v3537_v52 }
 0x9c6   : > { %v3666_v10 = vadd.f32 %v7759_v16, %v3665_v4  ;;  %v8445_v4 = vld [vmem:[#allocation48_spill] sm:$0xff]  ;;  %v7814_v51 = vpop.eup %4896  ;;  %4908 = vpow2.f32 %v3631_v5  ;;  %v3480_v5 = vsub.f32 %v7502_v41, %v7744_v9  ;;  %v8450_v41 = vld [vmem:[#allocation69_spill] sm:$0xff] }
 0x9c7   : > { %v7819_v3 = vpop.eup %4898  ;;  %4910 = vpow2.f32 %v3541_v0 }
 0x9c8   : > { %v3667_v24 = vadd.f32 %v7764_v43, %v3666_v10  ;;  %v3623_v10 = vmul.f32 1.442695, %v3511_v60  ;;  %v7827_v52 = vpop.eup %4900  ;;  %4912 = vpow2.f32 %v3635_v49  ;;  %v3759_v0 = vpack.c.bf16 %v7819_v3, %v7814_v51 }
 0x9c9   : > { %v7832_v60 = vpop.eup %4902  ;;  %4914 = vpow2.f32 %v3545_v11  ;;  %v3557_v11 = vmul.f32 1.442695, %v3478_v53  ;;  %v3561_v37 = vmul.f32 1.442695, %v3480_v5 }
 0x9ca   : > { %v3668_v26 = vadd.f32 %v7768_v38, %v3667_v24  ;;  %v8447_v24 = vld [vmem:[#allocation50_spill] sm:$0xff]  ;;  %8449 = vst [vmem:[#allocation14_spill] sm:$0xff] %v7832_v60  ;;  %v7838_v32 = vpop.eup %4904  ;;  %4916 = vpow2.f32 %v3623_v10  ;;  %v3692_v49 = vadd.f32 %v7832_v60, %v7827_v52  ;;  %3800 = vmatpush.bf16.msrb.mxu1 %v3759_v0  ;;  %v3524_v60 = vsub.f32 %v7651_v46, %v7744_v9 }
 0x9cb   : > { %v7823_v1 = vpack.c.bf16 %v8447_v24, %v8446_v29  ;;  %v7843_v38 = vpop.eup %4906  ;;  %4918 = vpow2.f32 %v3549_v40  ;;  %v3741_v29 = vpack.c.bf16 %v7764_v43, %v7759_v16  ;;  %v3757_v53 = vpack.c.bf16 %v7838_v32, %v7809_v21  ;;  %v8452_v43 = vld [vmem:[#allocation71_spill] sm:$0xff] }
 0x9cc   : > { %v3669_v56 = vadd.f32 %v7773_v13, %v3668_v26  ;;  %v3553_v26 = vmul.f32 1.442695, %v3476_v47  ;;  %v3482_v47 = vsub.f32 %v8450_v41, %v7744_v9  ;;  %4920 = vpow2.f32 %v3627_v62 }
 0x9cd   : > { %v3693_v10 = vadd.f32 %v7843_v38, %v3692_v49  ;;  %3782 = vmatpush.bf16.msrb.mxu0 %v3741_v29  ;;  %v3490_v13 = vsub.f32 %v8452_v43, %v7744_v9 }
 0x9ce   : > { %v3670_v19 = vadd.f32 %v7777_v17, %v3669_v56  ;;  %v7848_v56 = vpop.eup %4908  ;;  %4922 = vpow2.f32 %v3553_v26  ;;  %v3565_v26 = vmul.f32 1.442695, %v3482_v47  ;;  %3801 = vmatpush.bf16.msrb.mxu1 %v3757_v53 }
 0x9cf   : > { %v7854_v24 = vpop.eup %4910  ;;  %4924 = vpow2.f32 %v3619_v61  ;;  %v3488_v61 = vsub.f32 %v7526_v58, %v7744_v9  ;;  %v3492_v58 = vsub.f32 %v7536_v57, %v7744_v9 }
 0x9d0   : > { %v3671_v30 = vadd.f32 %v7782_v12, %v3670_v19  ;;  %v3484_v19 = vsub.f32 %v7514_v7, %v7744_v9  ;;  %v7860_v40 = vpop.eup %4912  ;;  %v8451_v7 = vld [vmem:[#allocation63_spill] sm:$0xff]  ;;  %4926 = vpow2.f32 %v3557_v11 }
 0x9d1   : > { %v7865_v16 = vpop.eup %4914  ;;  %v3486_v5 = vsub.f32 %v8451_v7, %v7744_v9  ;;  %4928 = vpow2.f32 %v3561_v37  ;;  %v3755_v47 = vpack.c.bf16 %v7860_v40, %v7848_v56  ;;  %v8453_v37 = vld [vmem:[#allocation40_spill] sm:$0xff] }
 0x9d2   : > { %v3672_v8 = vadd.f32 %v7786_v34, %v3671_v30  ;;  %v3694_v30 = vadd.f32 %v7854_v24, %v3693_v10  ;;  %v4917_v49 = vpop.eup %4916  ;;  %v3739_v10 = vpack.c.bf16 %v7755_v54, %v7750_v25  ;;  %v3569_v11 = vmul.f32 1.442695, %v3484_v19 }
 0x9d3   : > { %v7876_v29 = vpop.eup %4918  ;;  %v3496_v19 = vsub.f32 %v7544_v2, %v7744_v9  ;;  %v3498_v43 = vsub.f32 %v8453_v37, %v7744_v9  ;;  %4930 = vpow2.f32 %v3565_v26  ;;  %v3573_v7 = vmul.f32 1.442695, %v3486_v5  ;;  %3802 = vmatpush.bf16.msrb.mxu1 %v3755_v47 }
 0x9d4   : > { %v3673_v0 = vadd.f32 %v7791_v20, %v3672_v8  ;;  %v3695_v8 = vadd.f32 %v7865_v16, %v3694_v30  ;;  %v4921_v53 = vpop.eup %4920  ;;  %v3494_v30 = vsub.f32 %v7540_v44, %v7744_v9  ;;  %3783 = vmatpush.bf16.msrb.mxu0 %v3739_v10  ;;  %v3500_v44 = vsub.f32 %v7552_v45, %v7744_v9 }
 0x9d5   : > { %v7888_v54 = vpop.eup %4922  ;;  %v3737_v10 = vpack.c.bf16 %v7746_v27, %v7741_v63  ;;  %v3502_v2 = vsub.f32 %v7556_v23, %v7744_v9  ;;  %4932 = vpow2.f32 %v3569_v11  ;;  %v3577_v26 = vmul.f32 1.442695, %v3488_v61  ;;  %v8454_v63 = vld [vmem:[#allocation39_spill] sm:$0xff] }
 0x9d6   : > { %v3674_v41 = vadd.f32 %v7795_v42, %v3673_v0  ;;  %v3696_v25 = vadd.f32 %v7876_v29, %v3695_v8  ;;  %v3753_v5 = vpack.c.bf16 %v4921_v53, %v4917_v49  ;;  %v3581_v37 = vmul.f32 1.442695, %v3490_v13 }
 0x9d7   : > { %4934 = vpow2.f32 %v3573_v7  ;;  %v3585_v23 = vmul.f32 1.442695, %v3492_v58  ;;  %v3589_v11 = vmul.f32 1.442695, %v3494_v30  ;;  %v3735_v13 = vpack.c.bf16 %v7735_v14, %v7728_v36 }
 0x9d8   : > { %v3675_v0 = vadd.f32 %v7800_v50, %v3674_v41  ;;  %v4925_v41 = vpop.eup %4924  ;;  %v3697_v8 = vadd.f32 %v7888_v54, %v3696_v25  ;;  %3784 = vmatpush.bf16.msrb.mxu0 %v3737_v10  ;;  %3803 = vmatpush.bf16.msrb.mxu1 %v3753_v5  ;;  %v3520_v10 = vsub.f32 %v7610_v6, %v7744_v9  ;;  %4936 = vpow2.f32 %v3577_v26 }
 0x9d9   : > { %v7900_v62 = vpop.eup %4926  ;;  %v3526_v27 = vsub.f32 %v7663_v18, %v7744_v9  ;;  %v3751_v46 = vpack.c.bf16 %v4925_v41, %v7804_v15  ;;  %4938 = vpow2.f32 %v3581_v37  ;;  %v3522_v36 = vsub.f32 %v7631_v22, %v7744_v9 }
 0x9da   : > { %v3676_v57 = vadd.f32 %v7804_v15, %v3675_v0  ;;  %v3504_v0 = vsub.f32 %v7560_v28, %v7744_v9  ;;  %v3698_v45 = vadd.f32 %v7900_v62, %v3697_v8  ;;  %v7907_v25 = vpop.eup %4928  ;;  %4940 = vpow2.f32 %v3585_v23 }
 0x9db   : > { %v7916_v8 = vpop.eup %4930  ;;  %v3597_v14 = vmul.f32 1.442695, %v3498_v43  ;;  %v3649_v6 = vmul.f32 1.442695, %v3524_v60  ;;  %4942 = vpow2.f32 %v3589_v11  ;;  %v3516_v22 = vsub.f32 %v8433_v31, %v7744_v9 }
 0x9dc   : > { %v3677_v47 = vadd.f32 %v4925_v41, %v3676_v57  ;;  %v3699_v57 = vadd.f32 %v7907_v25, %v3698_v45  ;;  %3785 = vmatpush.bf16.msrb.mxu0 %v3735_v13  ;;  %v7924_v7 = vpop.eup %4932  ;;  %3804 = vmatpush.bf16.msrb.mxu1 %v3751_v46  ;;  %v3508_v41 = vsub.f32 %v7568_v33, %v7744_v9  ;;  %v3653_v26 = vmul.f32 1.442695, %v3526_v27  ;;  %v8455_v27 = vld [vmem:[#allocation21_spill] sm:$0xff]  ;;  %v8456_v13 = vld [vmem:[#allocation18_spill] sm:$0xff] }
 0x9dd   : > { %v3749_v60 = vpack.c.bf16 %v7800_v50, %v7795_v42  ;;  %v3641_v43 = vmul.f32 1.442695, %v3520_v10  ;;  %v3645_v37 = vmul.f32 1.442695, %v3522_v36  ;;  %v3731_v50 = vpack.c.bf16 %v7707_v55, %v7700_v48  ;;  %v8458_v46 = vld [vmem:[#allocation17_spill] sm:$0xff] }
 0x9de   : > { %v3678_v61 = vadd.f32 %v4917_v49, %v3677_v47  ;;  %v3593_v49 = vmul.f32 1.442695, %v3496_v19  ;;  %v3700_v30 = vadd.f32 %v7916_v8, %v3699_v57  ;;  %v7932_v19 = vpop.eup %4934  ;;  %v3601_v47 = vmul.f32 1.442695, %v3500_v44 }
 0x9df   : > { %v3512_v23 = vsub.f32 %v8455_v27, %v7744_v9  ;;  %v3633_v57 = vmul.f32 1.442695, %v3516_v22  ;;  %v3514_v10 = vsub.f32 %v8456_v13, %v7744_v9  ;;  %v3609_v48 = vmul.f32 1.442695, %v3504_v0 }
 0x9e0   : > { %v3679_v58 = vadd.f32 %v4921_v53, %v3678_v61  ;;  %v3701_v15 = vadd.f32 %v7924_v7, %v3700_v30  ;;  %v3733_v53 = vpack.c.bf16 %v7721_v35, %v7714_v39  ;;  %4944 = vpow2.f32 %v3593_v49  ;;  %v7942_v39 = vpop.eup %4936  ;;  %3805 = vmatpush.bf16.msrb.mxu1 %v3749_v60 }
 0x9e1   : > { %v3518_v35 = vsub.f32 %v7594_v59, %v7744_v9  ;;  %4946 = vpow2.f32 %v3597_v14  ;;  %v4939_v31 = vpop.eup %4938  ;;  %v3605_v61 = vmul.f32 1.442695, %v3502_v2  ;;  %v3747_v59 = vpack.c.bf16 %v7791_v20, %v7786_v34 }
 0x9e2   : > { %v3680_v18 = vadd.f32 %v7848_v56, %v3679_v58  ;;  %v3702_v5 = vadd.f32 %v7932_v19, %v3701_v15  ;;  %3786 = vmatpush.bf16.msrb.mxu0 %v3733_v53  ;;  %4948 = vpow2.f32 %v3649_v6  ;;  %v8459_v30 = vsub.f32 %v8454_v63, %v7744_v9 }
 0x9e3   : > { %4950 = vpow2.f32 %v3653_v26  ;;  %v3637_v55 = vmul.f32 1.442695, %v3518_v35  ;;  %v3745_v0 = vpack.c.bf16 %v7782_v12, %v7777_v17  ;;  %v3625_v6 = vmul.f32 1.442695, %v3512_v23  ;;  %v8462_v17 = vld [vmem:[#allocation20_spill] sm:$0xff] }
 0x9e4   : > { %v3681_v56 = vadd.f32 %v7860_v40, %v3680_v18  ;;  %v3703_v42 = vadd.f32 %v7942_v39, %v3702_v5  ;;  %v4941_v40 = vpop.eup %4940  ;;  %4952 = vpow2.f32 %v3641_v43  ;;  %3806 = vmatpush.bf16.msrb.mxu1 %v3747_v59  ;;  %v3613_v28 = vmul.f32 1.442695, %v8459_v30  ;;  %v8466_v59 = vld [vmem:[#allocation62_spill] sm:$0xff] }
 0x9e5   : > { %v4943_v44 = vpop.eup %4942  ;;  %4954 = vpow2.f32 %v3645_v37  ;;  %v8460_v53 = vunpack.c.l.b16 %v8445_v4  ;;  %v8461_v63 = vunpack.c.l.b16 %v7823_v1  ;;  %v3510_v12 = vsub.f32 %v8462_v17, %v7744_v9 }
 0x9e6   : > { %v3682_v45 = vadd.f32 %v7809_v21, %v3681_v56  ;;  %v3704_v21 = vadd.f32 %v4939_v31, %v3703_v42  ;;  %3787 = vmatpush.bf16.msrb.mxu0 %v3731_v50  ;;  %v7960_v2 = vpop.eup %4944  ;;  %4956 = vpow2.f32 %v3601_v47  ;;  %v3744_v36 = vpack.c.bf16 %v4943_v44, %v4941_v40 }
 0x9e7   : > { %v7965_v49 = vpop.eup %4946  ;;  %4958 = vpow2.f32 %v3605_v61  ;;  %v7983_v22 = vpack.c.b16 %v8461_v63, %v8460_v53  ;;  %v3629_v26 = vmul.f32 1.442695, %v3514_v10  ;;  %v8463_v5 = vunpack.c.h.b16 %v8445_v4  ;;  %v8465_v61 = vld [vmem:[#allocation61_spill] sm:$0xff] }
 0x9e8   : > { %v3683_v11 = vadd.f32 %v7838_v32, %v3682_v45  ;;  %v3705_v20 = vadd.f32 %v4941_v40, %v3704_v21  ;;  %v8457_v32 = vld [vmem:[#allocation16_spill] sm:$0xff]  ;;  %v7972_v14 = vpop.eup %4948  ;;  %4960 = vpow2.f32 %v3633_v57  ;;  %3807 = vmatpush.bf16.msrb.mxu1 %v3745_v0  ;;  %v8464_v35 = vunpack.c.h.b16 %v7823_v1 }
 0x9e9   : > { %v3729_v58 = vpack.c.bf16 %v8458_v46, %v8457_v32  ;;  %v7977_v15 = vpop.eup %4950  ;;  %4962 = vpow2.f32 %v3637_v55  ;;  %v3617_v37 = vmul.f32 1.442695, %v3508_v41  ;;  %v3742_v45 = vpack.c.bf16 %v4939_v31, %v7942_v39 }
 0x9ea   : > { %v3684_v34 = vadd.f32 %v7814_v51, %v3683_v11  ;;  %v3706_v18 = vadd.f32 %v4943_v44, %v3705_v20  ;;  %4964 = vpow2.f32 %v3609_v48  ;;  %v3760_v56 = vpack.c.bf16 %v7977_v15, %v7972_v14 }
 0x9eb   : > { %3788 = vmatpush.bf16.msrb.mxu0 %v3729_v58  ;;  %v7998_v47 = vpack.c.b16 %v8464_v35, %v8463_v5  ;;  %4966 = vpow2.f32 %v3613_v28  ;;  %v3621_v4 = vmul.f32 1.442695, %v3510_v12  ;;  %v3740_v41 = vpack.c.bf16 %v7932_v19, %v7924_v7  ;;  %v8467_v7 = vld [vmem:[#allocation51_spill] sm:$0xff] }
 0x9ec   : > { %v7975_v51 = vadd.f32 %v7819_v3, %v3684_v34  ;;  %v7987_v3 = vpop.eup %4952  ;;  %v3707_v60 = vadd.f32 %v7960_v2, %v3706_v18  ;;  %4968 = vpow2.f32 %v3625_v6  ;;  %3838 = vmatpush.bf16.msra.mxu1 %v3760_v56  ;;  %v769_v44 = vpack.c.bf16 %v8466_v59, %v8465_v61 }
 0x9ed   : > { %v7992_v43 = vpop.eup %4954  ;;  %4970 = vpow2.f32 %v3629_v26  ;;  %3808 = vmatmul.bf16.vlgmr.msrb.gmra.mxu1 %v7998_v47  ;;  %v3738_v10 = vpack.c.bf16 %v7916_v8, %v7907_v25  ;;  %v3769_v19 = vunpack.c.l.b16 %v8467_v7  ;;  %v3770_v58 = vunpack.c.h.b16 %v8467_v7 }
 0x9ee   : > { %3789 = vmatmul.bf16.vlgmr.msrb.gmra.mxu0 %v7983_v22  ;;  %v4957_v42 = vpop.eup %4956  ;;  %v3708_v50 = vadd.f32 %v7965_v49, %v3707_v60  ;;  %v3758_v33 = vpack.c.bf16 %v7992_v43, %v7987_v3  ;;  %4972 = vpow2.f32 %v3617_v37  ;;  %v3771_v34 = vunpack.c.l.b16 %v769_v44  ;;  %v8468_v60 = vld [vmem:[#allocation14_spill] sm:$0xff] }
 0x9ef   : > { %3819 = vmatpush.bf16.msra.mxu0 %v3744_v36  ;;  %v4959_v40 = vpop.eup %4958  ;;  %4974 = vpow2.f32 %v3621_v4  ;;  %v3772_v30 = vunpack.c.h.b16 %v769_v44  ;;  %v3736_v28 = vpack.c.bf16 %v7900_v62, %v7888_v54  ;;  %v3734_v18 = vpack.c.bf16 %v7876_v29, %v7865_v16 }
 0x9f0   : > { %v4961_v1 = vpop.eup %4960  ;;  %v3709_v27 = vadd.f32 %v4957_v42, %v3708_v50  ;;  %3839 = vmatpush.bf16.msra.mxu1 %v3758_v33  ;;  %v3775_v25 = vpack.c.b16 %v3771_v34, %v3769_v19  ;;  %v3732_v62 = vpack.c.bf16 %v7854_v24, %v7843_v38  ;;  %v3748_v26 = vpack.c.bf16 %v4959_v40, %v4957_v42 }
 0x9f1   : > { %v4963_v9 = vpop.eup %4962  ;;  %v3776_v6 = vpack.c.b16 %v3772_v30, %v3770_v58  ;;  %v3730_v56 = vpack.c.bf16 %v8468_v60, %v7827_v52  ;;  %v3746_v5 = vpack.c.bf16 %v7965_v49, %v7960_v2  ;;  %v3892_v60 = vld [vmem:[%s8077_s3] sm:$0xf] }
 0x9f2   : > { %v4965_v39 = vpop.eup %4964  ;;  %v3710_v31 = vadd.f32 %v4959_v40, %v3709_v27  ;;  %v3756_v21 = vpack.c.bf16 %v4963_v9, %v4961_v1 }
 0x9f3   : > { %3820 = vmatpush.bf16.msra.mxu0 %v3742_v45  ;;  %v4967_v23 = vpop.eup %4966 }
 0x9f4   : > { %v4969_v11 = vpop.eup %4968  ;;  %v3711_v57 = vadd.f32 %v4965_v39, %v3710_v31  ;;  %3840 = vmatpush.bf16.msra.mxu1 %v3756_v21  ;;  %v3750_v17 = vpack.c.bf16 %v4967_v23, %v4965_v39 }
 0x9f5   : > { %v4971_v13 = vpop.eup %4970 }
 0x9f6   : > { %v3712_v48 = vadd.f32 %v4967_v23, %v3711_v57  ;;  %v4973_v55 = vpop.eup %4972  ;;  %v3754_v32 = vpack.c.bf16 %v4971_v13, %v4969_v11 }
 0x9f7   : > { %3821 = vmatpush.bf16.msra.mxu0 %v3740_v41  ;;  %v4975_v46 = vpop.eup %4974 }
 0x9f8   : > { %v3713_v20 = vadd.f32 %v4973_v55, %v3712_v48  ;;  %3841 = vmatpush.bf16.msra.mxu1 %v3754_v32  ;;  %v3752_v36 = vpack.c.bf16 %v4975_v46, %v4973_v55 }
 0x9fa   : > { %v3714_v0 = vadd.f32 %v4975_v46, %v3713_v20 }
 0x9fb   : > { %3822 = vmatpush.bf16.msra.mxu0 %v3738_v10 }
 0x9fc   : > { %v3715_v8 = vadd.f32 %v4969_v11, %v3714_v0  ;;  %3842 = vmatpush.bf16.msra.mxu1 %v3752_v36 }
 0x9fd   : > { %3813 = vmatmul.bf16.gmra.mxu1 %v3776_v6 }
 0x9fe   : > { %3794 = vmatmul.bf16.gmra.mxu0 %v3775_v25  ;;  %v3716_v53 = vadd.f32 %v4971_v13, %v3715_v8 }
 0x9ff   : > { %3823 = vmatpush.bf16.msra.mxu0 %v3736_v28 }
 0xa00   : > { %v3717_v63 = vadd.f32 %v4961_v1, %v3716_v53  ;;  %3843 = vmatpush.bf16.msra.mxu1 %v3750_v17 }
 0xa02   : > { %v3718_v54 = vadd.f32 %v4963_v9, %v3717_v63 }
 0xa03   : > { %3824 = vmatpush.bf16.msra.mxu0 %v3734_v18 }
 0xa04   : > { %v3719_v12 = vadd.f32 %v7987_v3, %v3718_v54  ;;  %3844 = vmatpush.bf16.msra.mxu1 %v3748_v26  ;;  %v3686_v3 = vrot.slane %v7975_v51, 4 }
 0xa06   : > { %v3720_v16 = vadd.f32 %v7992_v43, %v3719_v12 }
 0xa07   : > { %3825 = vmatpush.bf16.msra.mxu0 %v3732_v62 }
 0xa08   : > { %v3721_v29 = vadd.f32 %v7972_v14, %v3720_v16  ;;  %3845 = vmatpush.bf16.msra.mxu1 %v3746_v5  ;;  %v3687_v14 = vadd.f32 %v3686_v3, %v7975_v51  ;;  %v4361_v3 = vld [vmem:[#allocation2 + $0x50] sm:$0xf] }
 0xa0a   : > { %v3722_v38 = vadd.f32 %v7977_v15, %v3721_v29  ;;  %v3688_v2 = vrot.slane %v3687_v14, 2  ;;  %v5044_v29 = vmov 0  }
 0xa0b   : > { %3826 = vmatpush.bf16.msra.mxu0 %v3730_v56  ;;  %4450 = vset.pattern.permute.xlu1 %v5044_v29 }
 0xa0c   : > { %v3723_v43 = vrot.slane %v3722_v38, 4  ;;  %v3689_v42 = vadd.f32 %v3688_v2, %v3687_v14  ;;  %4451 = vset.pattern.permute.xlu0 %v5044_v29  ;;  %3895 = vperm.xlu1 %4450, %v3892_v60   ;;  %v4353_v2 = vld [vmem:[#allocation2 + $0x40] sm:$0xf] }
 0xa0d   : > { %3846 = vmatmul.bf16.vlgmr.msra.gmra.mxu1 %v7998_v47 }
 0xa0e   : > { %3827 = vmatmul.bf16.vlgmr.msra.gmra.mxu0 %v7983_v22  ;;  %v3724_v37 = vadd.f32 %v3723_v43, %v3722_v38  ;;  %v3690_v40 = vrot.slane %v3689_v42, 1  ;;  %v4399_v43 = vld [vmem:[#allocation2 + $0x54] sm:$0xf] }
 0xa10   : > { %v3725_v49 = vrot.slane %v3724_v37, 2  ;;  %v3691_v1 = vadd.f32 %v3690_v40, %v3689_v42  ;;  %v4345_v40 = vld [vmem:[#allocation2 + $0x30] sm:$0xf] }
 0xa12   : > { %v3726_v50 = vadd.f32 %v3725_v49, %v3724_v37  ;;  %4976 = vrcp.f32 %v3691_v1  ;;  %v4398_v37 = vld [vmem:[#allocation2 + $0x44] sm:$0xf0]  ;;  %v4397_v49 = vld [vmem:[#allocation2 + $0x44] sm:$0xf] }
 0xa14   : > { %v3727_v47 = vrot.slane %v3726_v50, 1 }
 0xa16   : > { %v3728_v27 = vadd.f32 %v3727_v47, %v3726_v50  ;;  %v4396_v50 = vld [vmem:[#allocation2 + $0x34] sm:$0xf0]  ;;  %v4395_v47 = vld [vmem:[#allocation2 + $0x34] sm:$0xf] }
 0xa18   : > { %4978 = vrcp.f32 %v3728_v27  ;;  %v4977_v51 = vpop.eup %4976  ;;  %v4394_v27 = vld [vmem:[#allocation2 + $0x24] sm:$0xf0] }
 0xa1d   : > { %3851 = vmatmul.bf16.gmra.mxu1 %v3776_v6 }
 0xa1e   : > { %3832 = vmatmul.bf16.gmra.mxu0 %v3775_v25  ;;  %v4979_v23 = vpop.eup %4978 }
 0xa6a   : > { %v3809_v52 = vpop.f32.mrf.mxu1 }
 0xa6b   : > { %v3790_v24 = vpop.f32.mrf.mxu0 }
 0xa6c   : > { %v3810_v41 = vadd.f32 %v3809_v52, %v3790_v24  ;;  %v4400_v24 = vld [vmem:[#allocation2 + $0x54] sm:$0xf0]  ;;  %v4363_v52 = vld [vmem:[#allocation2 + $0x58] sm:$0xf0] }
 0xa6d   : > { %v4366_v14 = vor.u32 %v4399_v43, %v4363_v52 }
 0xa6e   : > { %v3859_v61 = vmul.f32 %v4977_v51, %v3810_v41  ;;  %v4393_v41 = vld [vmem:[#allocation2 + $0x24] sm:$0xf] }
 0xa72   : > { %v3811_v45 = vpop.f32.mrf.mxu1 }
 0xa73   : > { %v3792_v35 = vpop.f32.mrf.mxu0 }
 0xa74   : > { %v3812_v57 = vadd.f32 %v3811_v45, %v3792_v35  ;;  %v4362_v35 = vor.u32 %v4400_v24, %v4361_v3  ;;  %v4355_v45 = vld [vmem:[#allocation2 + $0x48] sm:$0xf0] }
 0xa75   : > { %v4358_v42 = vor.u32 %v4397_v49, %v4355_v45 }
 0xa76   : > { %v3861_v10 = vmul.f32 %v4977_v51, %v3812_v57  ;;  %v4390_v57 = vld [vmem:[#allocation2 + $0x4] sm:$0xf0] }
 0xa7a   : > { %v3814_v22 = vpop.f32.mrf.mxu1 }
 0xa7b   : > { %v3795_v15 = vpop.f32.mrf.mxu0 }
 0xa7c   : > { %v3815_v19 = vadd.f32 %v3814_v22, %v3795_v15  ;;  %v4354_v15 = vor.u32 %v4398_v37, %v4353_v2  ;;  %v4347_v22 = vld [vmem:[#allocation2 + $0x38] sm:$0xf0] }
 0xa7d   : > { %v4350_v1 = vor.u32 %v4395_v47, %v4347_v22 }
 0xa7e   : > { %v3863_v32 = vmul.f32 %v4977_v51, %v3815_v19  ;;  %v3896_v19 = vpop.permute.xlu1 %3895 }
 0xa82   : > { %v3816_v33 = vpop.f32.mrf.mxu1 }
 0xa83   : > { %v3797_v4 = vpop.f32.mrf.mxu0 }
 0xa84   : > { %v3817_v28 = vadd.f32 %v3816_v33, %v3797_v4  ;;  %v4346_v4 = vor.u32 %v4396_v50, %v4345_v40  ;;  %v4339_v33 = vld [vmem:[#allocation2 + $0x28] sm:$0xf0] }
 0xa86   : > { %v3865_v8 = vmul.f32 %v4977_v51, %v3817_v28  ;;  %v4342_v51 = vor.u32 %v4393_v41, %v4339_v33 }
 0xa8a   : > { %v3847_v39 = vpop.f32.mrf.mxu1 }
 0xa8b   : > { %v3828_v9 = vpop.f32.mrf.mxu0 }
 0xa8c   : > { %v3848_v31 = vadd.f32 %v3847_v39, %v3828_v9  ;;  %v4337_v9 = vld [vmem:[#allocation2 + $0x20] sm:$0xf] }
 0xa8d   : > { %v4338_v39 = vor.u32 %v4394_v27, %v4337_v9 }
 0xa8e   : > { %v3860_v59 = vmul.f32 %v4979_v23, %v3848_v31  ;;  %v4392_v31 = vld [vmem:[#allocation2 + $0x14] sm:$0xf0] }
 0xa90   : > { %v3867_v44 = vpack.c.bf16 %v3860_v59, %v3859_v61  ;;  %v4329_v61 = vld [vmem:[#allocation2 + $0x10] sm:$0xf]  ;;  %v4391_v59 = vld [vmem:[#allocation2 + $0x14] sm:$0xf] }
 0xa92   : > { %3871 = vst [vmem:[#allocation2 + $0x60] sm:$0xff] %v3867_v44  ;;  %v3849_v21 = vpop.f32.mrf.mxu1  ;;  %v4330_v44 = vor.u32 %v4392_v31, %v4329_v61 }
 0xa93   : > { %v3830_v11 = vpop.f32.mrf.mxu0 }
 0xa94   : > { %v3850_v13 = vadd.f32 %v3849_v21, %v3830_v11  ;;  %v4323_v21 = vld [vmem:[#allocation2 + $0x8] sm:$0xf0] }
 0xa96   : > { %v3862_v48 = vmul.f32 %v4979_v23, %v3850_v13  ;;  %v4321_v13 = vld [vmem:[#allocation2] sm:$0xf] }
 0xa98   : > { %v3868_v55 = vpack.c.bf16 %v3862_v48, %v3861_v10  ;;  %v4389_v10 = vld [vmem:[#allocation2 + $0x4] sm:$0xf]  ;;  %v4322_v48 = vor.u32 %v4390_v57, %v4321_v13 }
 0xa99   : > { %v4369_v56 = vld [vmem:[#allocation2 + $0x60] sm:$0xf]  ;;  %v4401_v16 = vld [vmem:[#allocation2 + $0x64] sm:$0xf] }
 0xa9a   : > { %3872 = vst [vmem:[#allocation2 + $0x68] sm:$0xff] %v3868_v55  ;;  %v3852_v34 = vpop.f32.mrf.mxu1  ;;  %v4326_v55 = vor.u32 %v4389_v10, %v4323_v21 }
 0xa9b   : > { %v3833_v7 = vpop.f32.mrf.mxu0 }
 0xa9c   : > { %v3853_v20 = vadd.f32 %v3852_v34, %v3833_v7  ;;  %v3875_v7 = vld [vmem:[%s8076_s2] sm:$0x3] }
 0xa9e   : > { %v3864_v46 = vmul.f32 %v4979_v23, %v3853_v20 }
 0xaa0   : > { %v3869_v58 = vpack.c.bf16 %v3864_v46, %v3863_v32 }
 0xaa1   : > { %v4402_v12 = vld [vmem:[#allocation2 + $0x64] sm:$0xf0]  ;;  %v4371_v26 = vld [vmem:[#allocation2 + $0x68] sm:$0xf0] }
 0xaa2   : > { %3873 = vst [vmem:[#allocation2 + $0x70] sm:$0xff] %v3869_v58  ;;  %v3854_v0 = vpop.f32.mrf.mxu1  ;;  %v4370_v5 = vor.u32 %v4402_v12, %v4369_v56  ;;  %v4374_v38 = vor.u32 %v4401_v16, %v4371_v26 }
 0xaa3   : > { %v3835_v30 = vpop.f32.mrf.mxu0 }
 0xaa4   : > { %v3855_v25 = vadd.f32 %v3854_v0, %v3835_v30 }
 0xaa6   : > { %v3866_v36 = vmul.f32 %v4979_v23, %v3855_v25  ;;  %v4331_v23 = vld [vmem:[#allocation2 + $0x18] sm:$0xf0] }
 0xaa7   : > { %v4334_v11 = vor.u32 %v4391_v59, %v4331_v23 }
 0xaa8   : > { %v3870_v6 = vpack.c.bf16 %v3866_v36, %v3865_v8 }
 0xaa9   : > { %v4377_v18 = vld [vmem:[#allocation2 + $0x70] sm:$0xf]  ;;  %v4403_v63 = vld [vmem:[#allocation2 + $0x74] sm:$0xf] }
 0xaaa   : > { %3874 = vst [vmem:[#allocation2 + $0x78] sm:$0xff] %v3870_v6 }
 0xab1   : > { %v4404_v53 = vld [vmem:[#allocation2 + $0x74] sm:$0xf0]  ;;  %v4379_v17 = vld [vmem:[#allocation2 + $0x78] sm:$0xf0] }
 0xab2   : > { %v4378_v62 = vor.u32 %v4404_v53, %v4377_v18  ;;  %v4382_v54 = vor.u32 %v4403_v63, %v4379_v17 }
 0xab4   : > { %3978 = vmatpush.bf16.msrb.mxu0 %v4378_v62  ;;  %3991 = vmatpush.bf16.msrb.mxu1 %v4382_v54 }
 0xab8   : > { %3979 = vmatpush.bf16.msrb.mxu0 %v4370_v5  ;;  %3992 = vmatpush.bf16.msrb.mxu1 %v4374_v38 }
 0xabc   : > { %3980 = vmatpush.bf16.msrb.mxu0 %v4362_v35  ;;  %3993 = vmatpush.bf16.msrb.mxu1 %v4366_v14 }
 0xac0   : > { %3981 = vmatpush.bf16.msrb.mxu0 %v4354_v15  ;;  %3994 = vmatpush.bf16.msrb.mxu1 %v4358_v42 }
 0xac4   : > { %3982 = vmatpush.bf16.msrb.mxu0 %v4346_v4  ;;  %3995 = vmatpush.bf16.msrb.mxu1 %v4350_v1 }
 0xac8   : > { %3983 = vmatpush.bf16.msrb.mxu0 %v4338_v39  ;;  %3996 = vmatpush.bf16.msrb.mxu1 %v4342_v51 }
 0xacc   : > { %3984 = vmatpush.bf16.msrb.mxu0 %v4330_v44  ;;  %3997 = vmatpush.bf16.msrb.mxu1 %v4334_v11 }
 0xad0   : > { %3985 = vmatpush.bf16.msrb.mxu0 %v4322_v48  ;;  %3998 = vmatpush.bf16.msrb.mxu1 %v4326_v55 }
 0xad3   : > { %3986 = vmatmul.bf16.vlgmr.msrb.gmra.mxu0 %v3875_v7  ;;  %3999 = vmatmul.bf16.vlgmr.msrb.gmra.mxu1 %v3875_v7 }
 0xb50   : > { %v3987_v34 = vpop.f32.mrf.mxu0  ;;  %v4000_v20 = vpop.f32.mrf.mxu1 }
 0xb51   : > { %v4001_v32 = vadd.f32 %v4000_v20, %v3896_v19  ;;  %v3988_v46 = vadd.f32 %v3987_v34, %v3896_v19 }
 0xb53   : > { %v4006_v58 = vrot.slane %v4001_v32, 4 }
 0xb55   : > { %v4007_v30 = vsel %vm395_vm0, %v3988_v46, %v4006_v58 }
 0xb56   : > { %4009 = vst [vmem:[%s190_s10] sm:$0xff] %v4007_v30 }
 0xb57   : > { %5007 = shalt.err (!%p5004_p3)
}
 0xb58   : > { %4410 = dma.vmem_to_hbm [thread:$0]  (%p5108_p5), %s4025_s11, 128, %s4027_s12, %s4011_s19   ;;  %v3989_v28 = vpop.f32.mrf.mxu0  ;;  %v4002_v0 = vpop.f32.mrf.mxu1 }
 0xb59 PF: > { %p4416_p4 = scmp.ge.s32.totalorder %s5042_s18, 2  ;;  %s4038_s29 = sand.u32 1, %s5030_s15  }
 0xb5a   : > { %s4039_s30 = scalar_lea.sflag [#allocation4], %s4038_s29 }
 0xb5b   : > { %p4413_p7 = pnand %p4416_p4, %p5112_p6 }
 0xb5d   : > { %p4414_p8 = pneg %p4413_p7 }
 0xb5f   : > { %5025 = dma.done.wait (%p4414_p8), %s4039_s30, 128  }
 0xb60   : > { %5027 = vsyncadd (%p4414_p8), %s4039_s30, 4294967168  ;;  %p14_p5 = scmp.ge.s32.totalorder %s5095_s21, 4   ;;  %s8469_s15 = smov %s5034_s16 }
 0xb61   : > { %s8470_s16 = smov %s5038_s17  ;;  %s8471_s17 = smov %s5106_s24 }
 0xb62   : > { %s8472_s18 = smov %s5095_s21  ;;  %16 = sbr.rel (!%p14_p5) target bundleno = 3 (0x3), region = 71 }
 0xb67   :  { %4045 = vsyncpa [#allocation4], 1 }
 0xb68   :  { %4047 = vsyncpa [#allocation4 + $0x1], 1 }

</bundles_post_ra>
